<compile_context>
chip_gen: v7x
topology: tpu7x:2x2x1
jax: 0.10.0
libtpu: 0.0.40
codegen_flags: <defaults>
</compile_context>

<pallas_src>
import functools

import jax
import jax.numpy as jnp
from jax.experimental import pallas as pl
from jax.experimental.pallas import tpu as pltpu

# ----------------------------- model config ---------------------------------
DIM = 64              # transformer width
HEADS = 2
HEAD_DIM = DIM // HEADS
EXPAND = 2            # GLUMBConv expand ratio
FF_HIDDEN = DIM * EXPAND
EPS_LN = 1e-6
NEG_INF = -1e30


# ----------------------------- fused Pallas kernel ---------------------------
def _fused_sana_blocks_kernel(
        # per-batch inputs (re-fetched only when the batch index changes)
        x_in_ref, enc_ref,
        # resident inputs (loaded once)
        keybias_ref, mods_ref, convmask_ref,
        # per-layer streamed slabs (auto double-buffered)
        wslab_ref, wp_ref, fslab_ref,
        # output (doubles as the layer-to-layer hidden-state carry)
        out_ref,
        # scratch
        hpad_sc,
        *, batch, n_img, dim, heads, ff_hidden, width, conv_pad):
    N, D, F, P = n_img, dim, ff_hidden, conv_pad
    hd = D // heads
    b = pl.program_id(0)
    l = pl.program_id(1)

    # column offsets inside the fused slabs (must match the wrapper's layout)
    OFF_QKV1 = 0                    # wq1 | wk1 | wv1          (3D wide)
    OFF_KV2 = 3 * D                 # wk2 | wv2                (2D wide)
    OFF_INV = 5 * D                 # wia | wig                (2F wide)
    OFF_O1 = 5 * D + 2 * F          # wo1                      (D wide)
    OFF_Q2 = 6 * D + 2 * F          # wq2                      (D wide)
    OFF_O2 = 7 * D + 2 * F          # wo2                      (D wide)

    @pl.when(l == 0)
    def _init():
        # hidden-state carry lives directly in the VMEM-resident output block
        out_ref[0] = x_in_ref[0]
        # zero the vertical halo of the conv scratch once per batch (the body
        # rows are rewritten every layer; the halo stays zero afterwards)
        hpad_sc[0:P, :] = jnp.zeros((P, 2 * F), jnp.float32)
        hpad_sc[P + N:P + N + P, :] = jnp.zeros((P, 2 * F), jnp.float32)

    x = out_ref[0]                                             # (N, D) f32

    # ---- adaLN-single modulation rows, precomputed per (layer, batch) -------
    m6 = mods_ref[pl.ds(pl.multiple_of((l * batch + b) * 8, 8), 8), :]
    shift_msa, scale_msa, gate_msa = m6[0:1], m6[1:2], m6[2:3]
    shift_mlp, scale_mlp, gate_mlp = m6[3:4], m6[4:5], m6[5:6]

    def layer_norm(t):
        mu = jnp.mean(t, axis=-1, keepdims=True)
        var = jnp.mean(jnp.square(t - mu), axis=-1, keepdims=True)
        return (t - mu) * jax.lax.rsqrt(var + EPS_LN)

    def silu(t):
        # EUP-friendly: exp + approx reciprocal instead of a VALU divide
        return t * pl.reciprocal(1.0 + jnp.exp(-t), approx=True)

    def mm(a, w):
        # bf16 MXU operands, f32 accumulation
        return jnp.dot(a.astype(jnp.bfloat16), w,
                       preferred_element_type=jnp.float32)

    # ===================== 1. Sana multi-head linear attention ================
    xn = layer_norm(x) * (1.0 + scale_msa) + shift_msa
    qkv = (mm(xn, wslab_ref[0, :, OFF_QKV1:OFF_QKV1 + 3 * D])
           + fslab_ref[0, 0:1, OFF_QKV1:OFF_QKV1 + 3 * D])      # (N, 3D)
    qk = jnp.maximum(qkv[:, :2 * D], 0.0)      # relu(q|k) in one lane-dense pass
    v = qkv[:, 2 * D:3 * D]

    w_o1 = wslab_ref[0, :, OFF_O1:OFF_O1 + D]                   # (D, D) bf16
    attn1 = jnp.zeros((N, D), jnp.float32) + fslab_ref[0, 0:1, OFF_O1:OFF_O1 + D]
    for h in range(heads):                                      # static unroll
        q_h = qk[:, h * hd:(h + 1) * hd]
        k_h = qk[:, D + h * hd:D + (h + 1) * hd]
        v_h = v[:, h * hd:(h + 1) * hd]
        kv_h = jax.lax.dot_general(k_h, v_h, (((0,), (0,)), ((), ())),
                                   preferred_element_type=jnp.float32)   # (hd,hd)
        ksum_h = jnp.sum(k_h, axis=0, keepdims=True)                     # (1, hd)
        num_h = jnp.dot(q_h, kv_h, preferred_element_type=jnp.float32)   # (N, hd)
        den_h = jnp.sum(q_h * ksum_h, axis=-1, keepdims=True)            # (N, 1)
        lin_h = num_h / (den_h + 1e-15)                                  # exact
        # fold the output projection in per head (no lane concatenation)
        attn1 = attn1 + jnp.dot(lin_h.astype(jnp.bfloat16),
                                w_o1[h * hd:(h + 1) * hd, :],
                                preferred_element_type=jnp.float32)
    x = x + gate_msa * attn1

    # ===================== 2. softmax cross attention to text =================
    q2 = (mm(x, wslab_ref[0, :, OFF_Q2:OFF_Q2 + D])
          + fslab_ref[0, 0:1, OFF_Q2:OFF_Q2 + D])               # (N, D)
    kv_t = (jnp.dot(enc_ref[0], wslab_ref[0, :, OFF_KV2:OFF_KV2 + 2 * D],
                    preferred_element_type=jnp.float32)
            + fslab_ref[0, 0:1, OFF_KV2:OFF_KV2 + 2 * D])       # (Tpad, 2D)
    bias_row = keybias_ref[pl.ds(b, 1), :]                      # (1, Tpad)
    scale = 1.0 / (hd ** 0.5)

    w_o2 = wslab_ref[0, :, OFF_O2:OFF_O2 + D]
    attn2 = jnp.zeros((N, D), jnp.float32) + fslab_ref[0, 0:1, OFF_O2:OFF_O2 + D]
    for h in range(heads):
        q_h = q2[:, h * hd:(h + 1) * hd]
        k_h = kv_t[:, h * hd:(h + 1) * hd]                      # (Tpad, hd)
        v_h = kv_t[:, D + h * hd:D + (h + 1) * hd]
        logits = jax.lax.dot_general(q_h, k_h, (((1,), (1,)), ((), ())),
                                     preferred_element_type=jnp.float32)
        logits = logits * scale + bias_row                      # (N, Tpad)
        mx = jnp.max(logits, axis=-1, keepdims=True)
        p = jnp.exp(logits - mx)
        p = p / jnp.sum(p, axis=-1, keepdims=True)              # exact softmax norm
        o_h = jnp.dot(p, v_h, preferred_element_type=jnp.float32)        # (N, hd)
        attn2 = attn2 + jnp.dot(o_h.astype(jnp.bfloat16),
                                w_o2[h * hd:(h + 1) * hd, :],
                                preferred_element_type=jnp.float32)
    x = x + attn2

    # ===================== 3. GLUMBConv feed-forward ==========================
    xn = layer_norm(x) * (1.0 + scale_mlp) + shift_mlp
    h_inv = silu(mm(xn, wslab_ref[0, :, OFF_INV:OFF_INV + 2 * F])
                 + fslab_ref[0, 0:1, OFF_INV:OFF_INV + 2 * F])  # (N, 2F) value|gate
    hpad_sc[P:P + N, :] = h_inv

    # 3x3 depthwise conv (padding=1) on the (height, width) token grid: shifted
    # windows are static slices of the padded scratch; vertical out-of-range
    # lands in the zero halo, horizontal wrap is masked by resident edge masks.
    mask_l = convmask_ref[:, 0:1]                               # x > 0
    mask_r = convmask_ref[:, 1:2]                               # x < width - 1
    dw = fslab_ref[0, 1:10, 0:2 * F]                            # (9, 2F) taps
    acc = jnp.zeros((N, 2 * F), jnp.float32) + fslab_ref[0, 10:11, 0:2 * F]
    for ky in range(3):
        for kx in range(3):
            dy, dx = ky - 1, kx - 1
            s = dy * width + dx
            shifted = hpad_sc[P + s:P + s + N, :]
            term = shifted * dw[ky * 3 + kx:ky * 3 + kx + 1, :]
            if dx == -1:
                term = term * mask_l
            elif dx == 1:
                term = term * mask_r
            acc = acc + term

    glu = acc[:, :F] * silu(acc[:, F:])                         # GLU gate
    x = x + gate_mlp * mm(glu, wp_ref[0])                       # conv_point (no bias)

    out_ref[0] = x


# --------------------- NunchakuSanaTransformerBlocks.forward -----------------
@functools.partial(jax.jit,
                   static_argnames=("height", "width", "skip_first_layer"))
def nunchaku_sana_forward(params, hidden_states, encoder_hidden_states,
                          encoder_attention_mask, timestep,
                          height=None, width=None, skip_first_layer=False):
    B, N, D = hidden_states.shape
    T = encoder_hidden_states.shape[1]
    assert encoder_attention_mask.shape == (B, 1, T)
    orig_dtype = hidden_states.dtype

    if height is None and width is None:
        height = width = int(N ** 0.5)
    elif height is None:
        height = N // width
    elif width is None:
        width = N // height
    assert height * width == N

    layers = list(params[1:]) if skip_first_layer else list(params)
    L = len(layers)
    if L == 0:
        return hidden_states

    heads = HEADS
    F = layers[0]["ff_wia"].shape[1]
    CW = 8 * D + 2 * F                     # fused slab width
    Tpad = ((T + 127) // 128) * 128        # lane-dense padded text length
    P = ((width + 1 + 7) // 8) * 8         # conv vertical halo rows (>= width+1)

    bf16, f32 = jnp.bfloat16, jnp.float32

    # ---- fused per-layer slabs: 3 streamed DMAs per grid step instead of 16 --
    def w_row(p):
        return jnp.concatenate(
            [p["attn1_wq"], p["attn1_wk"], p["attn1_wv"],       # OFF_QKV1
             p["attn2_wk"], p["attn2_wv"],                      # OFF_KV2
             p["ff_wia"], p["ff_wig"],                          # OFF_INV
             p["attn1_wo"], p["attn2_wq"], p["attn2_wo"]],      # OFF_O1/Q2/O2
            axis=1)

    def f_rows(p):
        bias = jnp.concatenate(
            [p["attn1_bq"], p["attn1_bk"], p["attn1_bv"],
             p["attn2_bk"], p["attn2_bv"],
             p["ff_bia"], p["ff_big"],
             p["attn1_bo"], p["attn2_bq"], p["attn2_bo"]], axis=1)          # (1, CW)
        dwdb = jnp.concatenate(
            [jnp.concatenate([p["ff_dwa"], p["ff_dwg"]], axis=1),           # (9, 2F)
             jnp.concatenate([p["ff_dba"], p["ff_dbg"]], axis=1)], axis=0)  # (10, 2F)
        dwdb = jnp.pad(dwdb, ((0, 0), (0, CW - 2 * F)))
        return jnp.concatenate(
            [bias, dwdb, jnp.zeros((5, CW), f32)], axis=0)                   # (16, CW)

    wslab = jnp.stack([w_row(p) for p in layers]).astype(bf16)   # (L, D, CW)
    fslab = jnp.stack([f_rows(p) for p in layers]).astype(f32)   # (L, 16, CW)
    wp = jnp.stack([p["ff_wp"] for p in layers]).astype(bf16)    # (L, F, D)

    # ---- adaLN-single modulation rows per (layer, batch): (L*B*8, D) resident
    sst = jnp.stack([p["scale_shift_table"] for p in layers]).astype(f32)  # (L,6,D)
    ts6 = timestep.astype(f32).reshape(B, 6, D)
    mods = sst[:, None] + ts6[None]                                         # (L,B,6,D)
    mods = jnp.pad(mods, ((0, 0), (0, 0), (0, 2), (0, 0))).reshape(L * B * 8, D)

    # ---- per-batch padded text keys + tiny resident key-bias table ----------
    enc = jnp.pad(encoder_hidden_states.astype(bf16),
                  ((0, 0), (0, Tpad - T), (0, 0)))               # (B, Tpad, D)
    mask2d = encoder_attention_mask.reshape(B, T) > -9000.0
    keyok = jnp.pad(mask2d, ((0, 0), (0, Tpad - T)))             # pad -> invalid
    keybias = jnp.where(keyok, 0.0, NEG_INF).astype(f32)         # (B, Tpad)

    # ---- hoisted horizontal-edge masks for the 3x3 depthwise conv -----------
    xx = jnp.arange(N) % width
    convmask = jnp.stack([xx > 0, xx < width - 1], axis=1).astype(f32)  # (N, 2)

    x_in = hidden_states.astype(f32)                             # (B, N, D)

    kernel = functools.partial(
        _fused_sana_blocks_kernel,
        batch=B, n_img=N, dim=D, heads=heads, ff_hidden=F,
        width=width, conv_pad=P)

    out = pl.pallas_call(
        kernel,
        out_shape=jax.ShapeDtypeStruct((B, N, D), jnp.float32),
        grid=(B, L),
        in_specs=[
            pl.BlockSpec((1, N, D), lambda b, l: (b, 0, 0)),        # x_in  (per batch)
            pl.BlockSpec((1, Tpad, D), lambda b, l: (b, 0, 0)),     # enc   (per batch)
            pl.BlockSpec((B, Tpad), lambda b, l: (0, 0)),           # keybias (resident)
            pl.BlockSpec((L * B * 8, D), lambda b, l: (0, 0)),      # mods    (resident)
            pl.BlockSpec((N, 2), lambda b, l: (0, 0)),              # convmask(resident)
            pl.BlockSpec((1, D, CW), lambda b, l: (l, 0, 0)),       # weight slab
            pl.BlockSpec((1, F, D), lambda b, l: (l, 0, 0)),        # conv_point weight
            pl.BlockSpec((1, 16, CW), lambda b, l: (l, 0, 0)),      # bias/dwconv slab
        ],
        out_specs=pl.BlockSpec((1, N, D), lambda b, l: (b, 0, 0)),  # carry + output
        scratch_shapes=[
            pltpu.VMEM((N + 2 * P, 2 * F), jnp.float32),            # conv halo buffer
        ],
        compiler_params=pltpu.CompilerParams(
            dimension_semantics=("parallel", "arbitrary"),
            vmem_limit_bytes=48 * 1024 * 1024),
    )(x_in, enc, keybias, mods, convmask, wslab, wp, fslab)

    return out.astype(orig_dtype)


# ----------------------------- parameters ------------------------------------
def init_params(key, num_layers):
    hc = FF_HIDDEN
    layers = []
    for _ in range(num_layers):
        key, sub = jax.random.split(key)
        ks = iter(jax.random.split(sub, 32))

        def n(shape, scale=0.02):
            return jax.random.normal(next(ks), shape, jnp.float32) * scale

        layers.append({
            "scale_shift_table": n((6, DIM), 1.0 / DIM ** 0.5),
            "attn1_wq": n((DIM, DIM)), "attn1_bq": n((1, DIM)),
            "attn1_wk": n((DIM, DIM)), "attn1_bk": n((1, DIM)),
            "attn1_wv": n((DIM, DIM), 0.05), "attn1_bv": n((1, DIM)),
            "attn1_wo": n((DIM, DIM)), "attn1_bo": n((1, DIM)),
            "attn2_wq": n((DIM, DIM)), "attn2_bq": n((1, DIM)),
            "attn2_wk": n((DIM, DIM)), "attn2_bk": n((1, DIM)),
            "attn2_wv": n((DIM, DIM), 0.05), "attn2_bv": n((1, DIM)),
            "attn2_wo": n((DIM, DIM)), "attn2_bo": n((1, DIM)),
            "ff_wia": n((DIM, hc)), "ff_bia": n((1, hc)),
            "ff_wig": n((DIM, hc)), "ff_big": n((1, hc)),
            "ff_dwa": n((9, hc), 0.1), "ff_dba": n((1, hc)),
            "ff_dwg": n((9, hc), 0.1), "ff_dbg": n((1, hc)),
            "ff_wp": n((hc, DIM)),
        })
    return layers


# ----------------------------- pure-JAX reference ----------------------------
def reference_forward(params, hidden_states, encoder_hidden_states,
                      encoder_attention_mask, timestep,
                      height=None, width=None, skip_first_layer=False):
    B, N, D = hidden_states.shape
    T = encoder_hidden_states.shape[1]
    if height is None and width is None:
        height = width = int(N ** 0.5)
    x = hidden_states.astype(jnp.float32)
    enc = encoder_hidden_states.astype(jnp.float32)
    ts = timestep.astype(jnp.float32)
    mask = encoder_attention_mask

    def ln(a):
        mu = a.mean(-1, keepdims=True)
        var = jnp.square(a - mu).mean(-1, keepdims=True)
        return (a - mu) / jnp.sqrt(var + EPS_LN)

    for idx, p in enumerate(params):
        if skip_first_layer and idx == 0:
            continue
        mods_all = p["scale_shift_table"][None] + ts.reshape(B, 6, D)
        sm, scm, gm, smlp, sclp, gmlp = [mods_all[:, i:i + 1, :] for i in range(6)]

        # linear attention
        xn = ln(x) * (1 + scm) + sm
        q = jax.nn.relu(xn @ p["attn1_wq"] + p["attn1_bq"]).reshape(B, N, HEADS, HEAD_DIM)
        k = jax.nn.relu(xn @ p["attn1_wk"] + p["attn1_bk"]).reshape(B, N, HEADS, HEAD_DIM)
        v = (xn @ p["attn1_wv"] + p["attn1_bv"]).reshape(B, N, HEADS, HEAD_DIM)
        kv = jnp.einsum("bnhk,bnhv->bhkv", k, v)
        ksum = k.sum(axis=1)
        num = jnp.einsum("bnhk,bhkv->bnhv", q, kv)
        den = jnp.einsum("bnhk,bhk->bnh", q, ksum)[..., None]
        a1 = (num / (den + 1e-15)).reshape(B, N, D) @ p["attn1_wo"] + p["attn1_bo"]
        x = x + gm * a1

        # cross attention
        q = (x @ p["attn2_wq"] + p["attn2_bq"]).reshape(B, N, HEADS, HEAD_DIM)
        k = (enc @ p["attn2_wk"] + p["attn2_bk"]).reshape(B, T, HEADS, HEAD_DIM)
        v = (enc @ p["attn2_wv"] + p["attn2_bv"]).reshape(B, T, HEADS, HEAD_DIM)
        logits = jnp.einsum("bnhd,bthd->bhnt", q, k) / (HEAD_DIM ** 0.5)
        bias = jnp.where(mask > -9000.0, 0.0, -1e30)[:, :, None, :]
        pr = jax.nn.softmax(logits + bias, axis=-1)
        a2 = jnp.einsum("bhnt,bthd->bnhd", pr, v).reshape(B, N, D) @ p["attn2_wo"] + p["attn2_bo"]
        x = x + a2

        # GLUMBConv feed-forward
        xn = ln(x) * (1 + sclp) + smlp
        ha = jax.nn.silu(xn @ p["ff_wia"] + p["ff_bia"])
        hg = jax.nn.silu(xn @ p["ff_wig"] + p["ff_big"])

        def dwconv(h, w, b):
            img = h.reshape(B, height, width, -1)
            padi = jnp.pad(img, ((0, 0), (1, 1), (1, 1), (0, 0)))
            acc = jnp.zeros_like(img) + b
            for ky in range(3):
                for kx in range(3):
                    acc = acc + padi[:, ky:ky + height, kx:kx + width, :] * w[ky * 3 + kx]
            return acc.reshape(B, N, -1)

        ca = dwconv(ha, p["ff_dwa"], p["ff_dba"])
        cg = dwconv(hg, p["ff_dwg"], p["ff_dbg"])
        x = x + gmlp * ((ca * jax.nn.silu(cg)) @ p["ff_wp"])
    return x.astype(hidden_states.dtype)


# ----------------------------------- main ------------------------------------
if __name__ == "__main__":
    B, H_IMG, W_IMG, T = 2, 8, 8, 8
    N = H_IMG * W_IMG
    NUM_LAYERS = 2

    key = jax.random.PRNGKey(0)
    k_h, k_e, k_t, k_p = jax.random.split(key, 4)
    hidden_states = jax.random.normal(k_h, (B, N, DIM), jnp.float32)
    encoder_hidden_states = jax.random.normal(k_e, (B, T, DIM), jnp.float32)
    timestep = jax.random.normal(k_t, (B, 6 * DIM), jnp.float32) * 0.1

    # additive text mask, shape (B, 1, T): 0 = valid token, -10000 = padding
    valid_lens = jnp.array([T, T - 3], dtype=jnp.int32)
    tok = jnp.arange(T)[None, :]
    encoder_attention_mask = jnp.where(
        tok < valid_lens[:, None], 0.0, -10000.0)[:, None, :].astype(jnp.float32)

    params = init_params(k_p, NUM_LAYERS)

    out = nunchaku_sana_forward(params, hidden_states, encoder_hidden_states,
                                encoder_attention_mask, timestep)
    out = jax.block_until_ready(out)

    ref = reference_forward(params, hidden_states, encoder_hidden_states,
                            encoder_attention_mask, timestep)
    assert out.shape == hidden_states.shape and out.dtype == hidden_states.dtype
    assert bool(jnp.all(jnp.isfinite(out)))
    assert bool(jnp.allclose(out, ref, rtol=5e-2, atol=5e-2))
    print("KERNEL_OK")
</pallas_src>

<mosaic_0001>
module attributes {stable_mosaic.version = 11 : i64} {
  func.func @_fused_sana_blocks_kernel(%arg0: i32, %arg1: i32, %arg2: memref<1x64x64xf32, #tpu.memory_space<vmem>>, %arg3: memref<1x128x64xbf16, #tpu.memory_space<vmem>>, %arg4: memref<2x128xf32, #tpu.memory_space<vmem>>, %arg5: memref<32x64xf32, #tpu.memory_space<vmem>>, %arg6: memref<64x2xf32, #tpu.memory_space<vmem>>, %arg7: memref<1x64x768xbf16, #tpu.memory_space<vmem>>, %arg8: memref<1x128x64xbf16, #tpu.memory_space<vmem>>, %arg9: memref<1x16x768xf32, #tpu.memory_space<vmem>>, %arg10: memref<1x64x64xf32, #tpu.memory_space<vmem>>, %arg11: memref<96x256xf32, #tpu.memory_space<vmem>>) attributes {dimension_semantics = [#tpu.dimension_semantics<parallel>, #tpu.dimension_semantics<arbitrary>], iteration_bounds = array<i64: 2, 2>, scalar_prefetch = 0 : i64, scratch_operands = 1 : i64, tpu.core_type = #tpu.core_type<tc>, window_params = [{transform_indices = @transform_0, window_bounds = array<i64: 1, 64, 64>}, {transform_indices = @transform_1, window_bounds = array<i64: 1, 128, 64>}, {pipeline_mode = #tpu.pipeline_mode<synchronous>, transform_indices = @transform_2, window_bounds = array<i64: 2, 128>}, {pipeline_mode = #tpu.pipeline_mode<synchronous>, transform_indices = @transform_3, window_bounds = array<i64: 32, 64>}, {pipeline_mode = #tpu.pipeline_mode<synchronous>, transform_indices = @transform_4, window_bounds = array<i64: 64, 2>}, {transform_indices = @transform_5, window_bounds = array<i64: 1, 64, 768>}, {transform_indices = @transform_6, window_bounds = array<i64: 1, 128, 64>}, {transform_indices = @transform_7, window_bounds = array<i64: 1, 16, 768>}, {transform_indices = @transform_8, window_bounds = array<i64: 1, 64, 64>}]} {
    %c0_i32 = arith.constant 0 : i32
    %0 = arith.cmpi eq, %arg1, %c0_i32 : i32
    %1 = arith.extui %0 : i1 to i32
    %c0_i32_0 = arith.constant 0 : i32
    %2 = arith.cmpi ne, %1, %c0_i32_0 : i32
    scf.if %2 {
      %c0_112 = arith.constant 0 : index
      %c0_113 = arith.constant 0 : index
      %c0_114 = arith.constant 0 : index
      %298 = vector.load %arg2[%c0_112, %c0_113, %c0_114] : memref<1x64x64xf32, #tpu.memory_space<vmem>>, vector<1x64x64xf32>
      %299 = vector.shape_cast %298 : vector<1x64x64xf32> to vector<64x64xf32>
      %c0_115 = arith.constant 0 : index
      %c0_116 = arith.constant 0 : index
      %c0_117 = arith.constant 0 : index
      %300 = vector.load %arg10[%c0_115, %c0_116, %c0_117] : memref<1x64x64xf32, #tpu.memory_space<vmem>>, vector<1x64x64xf32>
      %301 = vector.shape_cast %300 : vector<1x64x64xf32> to vector<64x64xf32>
      %302 = vector.shape_cast %299 : vector<64x64xf32> to vector<1x64x64xf32>
      tpu.vector_store %arg10[%c0_115, %c0_116, %c0_117], %302 {strides = array<i32>} : memref<1x64x64xf32, #tpu.memory_space<vmem>>, vector<1x64x64xf32>,
      %cst_118 = arith.constant 0.000000e+00 : f32
      %303 = vector.broadcast %cst_118 : f32 to vector<16x256xf32>
      %c0_119 = arith.constant 0 : index
      %c0_120 = arith.constant 0 : index
      %304 = vector.load %arg11[%c0_119, %c0_120] : memref<96x256xf32, #tpu.memory_space<vmem>>, vector<16x256xf32>
      tpu.vector_store %arg11[%c0_119, %c0_120], %303 {strides = array<i32>} : memref<96x256xf32, #tpu.memory_space<vmem>>, vector<16x256xf32>,
      %cst_121 = arith.constant 0.000000e+00 : f32
      %305 = vector.broadcast %cst_121 : f32 to vector<16x256xf32>
      %c80 = arith.constant 80 : index
      %c0_122 = arith.constant 0 : index
      %306 = vector.load %arg11[%c80, %c0_122] : memref<96x256xf32, #tpu.memory_space<vmem>>, vector<16x256xf32>
      tpu.vector_store %arg11[%c80, %c0_122], %305 {strides = array<i32>} : memref<96x256xf32, #tpu.memory_space<vmem>>, vector<16x256xf32>,
    } else {
    }
    %c0 = arith.constant 0 : index
    %c0_1 = arith.constant 0 : index
    %c0_2 = arith.constant 0 : index
    %3 = vector.load %arg10[%c0, %c0_1, %c0_2] : memref<1x64x64xf32, #tpu.memory_space<vmem>>, vector<1x64x64xf32>
    %4 = vector.shape_cast %3 : vector<1x64x64xf32> to vector<64x64xf32>
    %c2_i32 = arith.constant 2 : i32
    %5 = arith.muli %arg1, %c2_i32 : i32
    %6 = arith.addi %5, %arg0 : i32
    %c8_i32 = arith.constant 8 : i32
    %7 = arith.muli %6, %c8_i32 : i32
    %8 = tpu.assume_multiple %7, 8 : i32
    %9 = arith.index_cast %8 : i32 to index
    %c0_3 = arith.constant 0 : index
    %10 = vector.load %arg5[%9, %c0_3] : memref<32x64xf32, #tpu.memory_space<vmem>>, vector<8x64xf32>
    %11 = vector.extract_strided_slice %10 {offsets = [0, 0], sizes = [1, 64], strides = [1, 1]} : vector<8x64xf32> to vector<1x64xf32>
    %12 = vector.extract_strided_slice %10 {offsets = [1, 0], sizes = [1, 64], strides = [1, 1]} : vector<8x64xf32> to vector<1x64xf32>
    %13 = vector.extract_strided_slice %10 {offsets = [2, 0], sizes = [1, 64], strides = [1, 1]} : vector<8x64xf32> to vector<1x64xf32>
    %14 = vector.extract_strided_slice %10 {offsets = [3, 0], sizes = [1, 64], strides = [1, 1]} : vector<8x64xf32> to vector<1x64xf32>
    %15 = vector.extract_strided_slice %10 {offsets = [4, 0], sizes = [1, 64], strides = [1, 1]} : vector<8x64xf32> to vector<1x64xf32>
    %16 = vector.extract_strided_slice %10 {offsets = [5, 0], sizes = [1, 64], strides = [1, 1]} : vector<8x64xf32> to vector<1x64xf32>
    %cst = arith.constant dense<0.000000e+00> : vector<64xf32>
    %17 = vector.multi_reduction <add>, %4, %cst [1] : vector<64x64xf32> to vector<64xf32>
    %18 = vector.shape_cast %17 : vector<64xf32> to vector<64x1xf32>
    %cst_4 = arith.constant 6.400000e+01 : f32
    %19 = vector.broadcast %cst_4 : f32 to vector<64x1xf32>
    %20 = arith.divf %18, %19 : vector<64x1xf32>
    %21 = vector.broadcast %20 : vector<64x1xf32> to vector<64x64xf32>
    %22 = arith.subf %4, %21 : vector<64x64xf32>
    %23 = arith.mulf %22, %22 : vector<64x64xf32>
    %cst_5 = arith.constant dense<0.000000e+00> : vector<64xf32>
    %24 = vector.multi_reduction <add>, %23, %cst_5 [1] : vector<64x64xf32> to vector<64xf32>
    %25 = vector.shape_cast %24 : vector<64xf32> to vector<64x1xf32>
    %cst_6 = arith.constant 6.400000e+01 : f32
    %26 = vector.broadcast %cst_6 : f32 to vector<64x1xf32>
    %27 = arith.divf %25, %26 : vector<64x1xf32>
    %28 = vector.broadcast %20 : vector<64x1xf32> to vector<64x64xf32>
    %29 = arith.subf %4, %28 : vector<64x64xf32>
    %cst_7 = arith.constant 9.99999997E-7 : f32
    %30 = vector.broadcast %cst_7 : f32 to vector<64x1xf32>
    %31 = arith.addf %27, %30 : vector<64x1xf32>
    %32 = math.rsqrt %31 : vector<64x1xf32>
    %33 = vector.broadcast %32 : vector<64x1xf32> to vector<64x64xf32>
    %34 = arith.mulf %29, %33 : vector<64x64xf32>
    %cst_8 = arith.constant 1.000000e+00 : f32
    %35 = vector.broadcast %cst_8 : f32 to vector<1x64xf32>
    %36 = arith.addf %35, %12 : vector<1x64xf32>
    %37 = vector.broadcast %36 : vector<1x64xf32> to vector<64x64xf32>
    %38 = arith.mulf %34, %37 : vector<64x64xf32>
    %39 = vector.broadcast %11 : vector<1x64xf32> to vector<64x64xf32>
    %40 = arith.addf %38, %39 : vector<64x64xf32>
    %c0_9 = arith.constant 0 : index
    %c0_10 = arith.constant 0 : index
    %c0_11 = arith.constant 0 : index
    %41 = vector.load %arg7[%c0_9, %c0_10, %c0_11] : memref<1x64x768xbf16, #tpu.memory_space<vmem>>, vector<1x64x192xbf16>
    %42 = vector.shape_cast %41 : vector<1x64x192xbf16> to vector<64x192xbf16>
    %43 = arith.truncf %40 : vector<64x64xf32> to vector<64x64xbf16>
    %cst_12 = arith.constant dense<0.000000e+00> : vector<64x192xf32>
    %44 = tpu.matmul %43, %42, %cst_12 {dimension_numbers = #tpu.dot_dimension_numbers<[1], [0], [0], [1], [0, 0, 1, 1], [], []>} : vector<64x64xbf16>, vector<64x192xbf16>, vector<64x192xf32> -> vector<64x192xf32>
    %c0_13 = arith.constant 0 : index
    %c0_14 = arith.constant 0 : index
    %c0_15 = arith.constant 0 : index
    %45 = vector.load %arg9[%c0_13, %c0_14, %c0_15] : memref<1x16x768xf32, #tpu.memory_space<vmem>>, vector<1x1x192xf32>
    %46 = vector.shape_cast %45 : vector<1x1x192xf32> to vector<1x192xf32>
    %47 = vector.broadcast %46 : vector<1x192xf32> to vector<64x192xf32>
    %48 = arith.addf %44, %47 : vector<64x192xf32>
    %49 = vector.extract_strided_slice %48 {offsets = [0, 0], sizes = [64, 128], strides = [1, 1]} : vector<64x192xf32> to vector<64x128xf32>
    %cst_16 = arith.constant 0.000000e+00 : f32
    %50 = vector.broadcast %cst_16 : f32 to vector<64x128xf32>
    %51 = arith.maximumf %49, %50 : vector<64x128xf32>
    %52 = vector.extract_strided_slice %48 {offsets = [0, 128], sizes = [64, 64], strides = [1, 1]} : vector<64x192xf32> to vector<64x64xf32>
    %c0_17 = arith.constant 0 : index
    %c0_18 = arith.constant 0 : index
    %c576 = arith.constant 576 : index
    %53 = vector.load %arg7[%c0_17, %c0_18, %c576] : memref<1x64x768xbf16, #tpu.memory_space<vmem>>, vector<1x64x64xbf16>
    %54 = vector.shape_cast %53 : vector<1x64x64xbf16> to vector<64x64xbf16>
    %cst_19 = arith.constant 0.000000e+00 : f32
    %55 = vector.broadcast %cst_19 : f32 to vector<64x64xf32>
    %c0_20 = arith.constant 0 : index
    %c0_21 = arith.constant 0 : index
    %c576_22 = arith.constant 576 : index
    %56 = vector.load %arg9[%c0_20, %c0_21, %c576_22] : memref<1x16x768xf32, #tpu.memory_space<vmem>>, vector<1x1x64xf32>
    %57 = vector.shape_cast %56 : vector<1x1x64xf32> to vector<1x64xf32>
    %58 = vector.broadcast %57 : vector<1x64xf32> to vector<64x64xf32>
    %59 = arith.addf %55, %58 : vector<64x64xf32>
    %60 = vector.extract_strided_slice %51 {offsets = [0, 0], sizes = [64, 32], strides = [1, 1]} : vector<64x128xf32> to vector<64x32xf32>
    %61 = vector.extract_strided_slice %51 {offsets = [0, 64], sizes = [64, 32], strides = [1, 1]} : vector<64x128xf32> to vector<64x32xf32>
    %62 = vector.extract_strided_slice %52 {offsets = [0, 0], sizes = [64, 32], strides = [1, 1]} : vector<64x64xf32> to vector<64x32xf32>
    %cst_23 = arith.constant dense<0.000000e+00> : vector<32x32xf32>
    %63 = tpu.matmul %61, %62, %cst_23 {dimension_numbers = #tpu.dot_dimension_numbers<[0], [0], [1], [1], [0, 1, 1, 1], [], []>} : vector<64x32xf32>, vector<64x32xf32>, vector<32x32xf32> -> vector<32x32xf32>
    %cst_24 = arith.constant dense<0.000000e+00> : vector<32xf32>
    %64 = vector.multi_reduction <add>, %61, %cst_24 [0] : vector<64x32xf32> to vector<32xf32>
    %65 = vector.shape_cast %64 : vector<32xf32> to vector<1x32xf32>
    %cst_25 = arith.constant dense<0.000000e+00> : vector<64x32xf32>
    %66 = tpu.matmul %60, %63, %cst_25 {dimension_numbers = #tpu.dot_dimension_numbers<[1], [0], [0], [1], [0, 0, 1, 1], [], []>} : vector<64x32xf32>, vector<32x32xf32>, vector<64x32xf32> -> vector<64x32xf32>
    %67 = vector.broadcast %65 : vector<1x32xf32> to vector<64x32xf32>
    %68 = arith.mulf %60, %67 : vector<64x32xf32>
    %cst_26 = arith.constant dense<0.000000e+00> : vector<64xf32>
    %69 = vector.multi_reduction <add>, %68, %cst_26 [1] : vector<64x32xf32> to vector<64xf32>
    %70 = vector.shape_cast %69 : vector<64xf32> to vector<64x1xf32>
    %cst_27 = arith.constant 1.000000e-15 : f32
    %71 = vector.broadcast %cst_27 : f32 to vector<64x1xf32>
    %72 = arith.addf %70, %71 : vector<64x1xf32>
    %73 = vector.broadcast %72 : vector<64x1xf32> to vector<64x32xf32>
    %74 = arith.divf %66, %73 : vector<64x32xf32>
    %75 = arith.truncf %74 : vector<64x32xf32> to vector<64x32xbf16>
    %76 = vector.extract_strided_slice %54 {offsets = [0, 0], sizes = [32, 64], strides = [1, 1]} : vector<64x64xbf16> to vector<32x64xbf16>
    %cst_28 = arith.constant dense<0.000000e+00> : vector<64x64xf32>
    %77 = tpu.matmul %75, %76, %cst_28 {dimension_numbers = #tpu.dot_dimension_numbers<[1], [0], [0], [1], [0, 0, 1, 1], [], []>} : vector<64x32xbf16>, vector<32x64xbf16>, vector<64x64xf32> -> vector<64x64xf32>
    %78 = arith.addf %59, %77 : vector<64x64xf32>
    %79 = vector.extract_strided_slice %51 {offsets = [0, 32], sizes = [64, 32], strides = [1, 1]} : vector<64x128xf32> to vector<64x32xf32>
    %80 = vector.extract_strided_slice %51 {offsets = [0, 96], sizes = [64, 32], strides = [1, 1]} : vector<64x128xf32> to vector<64x32xf32>
    %81 = vector.extract_strided_slice %52 {offsets = [0, 32], sizes = [64, 32], strides = [1, 1]} : vector<64x64xf32> to vector<64x32xf32>
    %cst_29 = arith.constant dense<0.000000e+00> : vector<32x32xf32>
    %82 = tpu.matmul %80, %81, %cst_29 {dimension_numbers = #tpu.dot_dimension_numbers<[0], [0], [1], [1], [0, 1, 1, 1], [], []>} : vector<64x32xf32>, vector<64x32xf32>, vector<32x32xf32> -> vector<32x32xf32>
    %cst_30 = arith.constant dense<0.000000e+00> : vector<32xf32>
    %83 = vector.multi_reduction <add>, %80, %cst_30 [0] : vector<64x32xf32> to vector<32xf32>
    %84 = vector.shape_cast %83 : vector<32xf32> to vector<1x32xf32>
    %cst_31 = arith.constant dense<0.000000e+00> : vector<64x32xf32>
    %85 = tpu.matmul %79, %82, %cst_31 {dimension_numbers = #tpu.dot_dimension_numbers<[1], [0], [0], [1], [0, 0, 1, 1], [], []>} : vector<64x32xf32>, vector<32x32xf32>, vector<64x32xf32> -> vector<64x32xf32>
    %86 = vector.broadcast %84 : vector<1x32xf32> to vector<64x32xf32>
    %87 = arith.mulf %79, %86 : vector<64x32xf32>
    %cst_32 = arith.constant dense<0.000000e+00> : vector<64xf32>
    %88 = vector.multi_reduction <add>, %87, %cst_32 [1] : vector<64x32xf32> to vector<64xf32>
    %89 = vector.shape_cast %88 : vector<64xf32> to vector<64x1xf32>
    %cst_33 = arith.constant 1.000000e-15 : f32
    %90 = vector.broadcast %cst_33 : f32 to vector<64x1xf32>
    %91 = arith.addf %89, %90 : vector<64x1xf32>
    %92 = vector.broadcast %91 : vector<64x1xf32> to vector<64x32xf32>
    %93 = arith.divf %85, %92 : vector<64x32xf32>
    %94 = arith.truncf %93 : vector<64x32xf32> to vector<64x32xbf16>
    %95 = vector.extract_strided_slice %54 {offsets = [32, 0], sizes = [32, 64], strides = [1, 1]} : vector<64x64xbf16> to vector<32x64xbf16>
    %cst_34 = arith.constant dense<0.000000e+00> : vector<64x64xf32>
    %96 = tpu.matmul %94, %95, %cst_34 {dimension_numbers = #tpu.dot_dimension_numbers<[1], [0], [0], [1], [0, 0, 1, 1], [], []>} : vector<64x32xbf16>, vector<32x64xbf16>, vector<64x64xf32> -> vector<64x64xf32>
    %97 = arith.addf %78, %96 : vector<64x64xf32>
    %98 = vector.broadcast %13 : vector<1x64xf32> to vector<64x64xf32>
    %99 = arith.mulf %98, %97 : vector<64x64xf32>
    %100 = arith.addf %4, %99 : vector<64x64xf32>
    %c0_35 = arith.constant 0 : index
    %c0_36 = arith.constant 0 : index
    %c640 = arith.constant 640 : index
    %101 = vector.load %arg7[%c0_35, %c0_36, %c640] : memref<1x64x768xbf16, #tpu.memory_space<vmem>>, vector<1x64x64xbf16>
    %102 = vector.shape_cast %101 : vector<1x64x64xbf16> to vector<64x64xbf16>
    %103 = arith.truncf %100 : vector<64x64xf32> to vector<64x64xbf16>
    %cst_37 = arith.constant dense<0.000000e+00> : vector<64x64xf32>
    %104 = tpu.matmul %103, %102, %cst_37 {dimension_numbers = #tpu.dot_dimension_numbers<[1], [0], [0], [1], [0, 0, 1, 1], [], []>} : vector<64x64xbf16>, vector<64x64xbf16>, vector<64x64xf32> -> vector<64x64xf32>
    %c0_38 = arith.constant 0 : index
    %c0_39 = arith.constant 0 : index
    %c640_40 = arith.constant 640 : index
    %105 = vector.load %arg9[%c0_38, %c0_39, %c640_40] : memref<1x16x768xf32, #tpu.memory_space<vmem>>, vector<1x1x64xf32>
    %106 = vector.shape_cast %105 : vector<1x1x64xf32> to vector<1x64xf32>
    %107 = vector.broadcast %106 : vector<1x64xf32> to vector<64x64xf32>
    %108 = arith.addf %104, %107 : vector<64x64xf32>
    %c0_41 = arith.constant 0 : index
    %c0_42 = arith.constant 0 : index
    %c0_43 = arith.constant 0 : index
    %109 = vector.load %arg3[%c0_41, %c0_42, %c0_43] : memref<1x128x64xbf16, #tpu.memory_space<vmem>>, vector<1x128x64xbf16>
    %110 = vector.shape_cast %109 : vector<1x128x64xbf16> to vector<128x64xbf16>
    %c0_44 = arith.constant 0 : index
    %c0_45 = arith.constant 0 : index
    %c192 = arith.constant 192 : index
    %111 = vector.load %arg7[%c0_44, %c0_45, %c192] : memref<1x64x768xbf16, #tpu.memory_space<vmem>>, vector<1x64x128xbf16>
    %112 = vector.shape_cast %111 : vector<1x64x128xbf16> to vector<64x128xbf16>
    %cst_46 = arith.constant dense<0.000000e+00> : vector<128x128xf32>
    %113 = tpu.matmul %110, %112, %cst_46 {dimension_numbers = #tpu.dot_dimension_numbers<[1], [0], [0], [1], [0, 0, 1, 1], [], []>} : vector<128x64xbf16>, vector<64x128xbf16>, vector<128x128xf32> -> vector<128x128xf32>
    %c0_47 = arith.constant 0 : index
    %c0_48 = arith.constant 0 : index
    %c192_49 = arith.constant 192 : index
    %114 = vector.load %arg9[%c0_47, %c0_48, %c192_49] : memref<1x16x768xf32, #tpu.memory_space<vmem>>, vector<1x1x128xf32>
    %115 = vector.shape_cast %114 : vector<1x1x128xf32> to vector<1x128xf32>
    %116 = vector.broadcast %115 : vector<1x128xf32> to vector<128x128xf32>
    %117 = arith.addf %113, %116 : vector<128x128xf32>
    %118 = arith.index_cast %arg0 : i32 to index
    %c0_50 = arith.constant 0 : index
    %119 = vector.load %arg4[%118, %c0_50] : memref<2x128xf32, #tpu.memory_space<vmem>>, vector<1x128xf32>
    %c0_51 = arith.constant 0 : index
    %c0_52 = arith.constant 0 : index
    %c704 = arith.constant 704 : index
    %120 = vector.load %arg7[%c0_51, %c0_52, %c704] : memref<1x64x768xbf16, #tpu.memory_space<vmem>>, vector<1x64x64xbf16>
    %121 = vector.shape_cast %120 : vector<1x64x64xbf16> to vector<64x64xbf16>
    %cst_53 = arith.constant 0.000000e+00 : f32
    %122 = vector.broadcast %cst_53 : f32 to vector<64x64xf32>
    %c0_54 = arith.constant 0 : index
    %c0_55 = arith.constant 0 : index
    %c704_56 = arith.constant 704 : index
    %123 = vector.load %arg9[%c0_54, %c0_55, %c704_56] : memref<1x16x768xf32, #tpu.memory_space<vmem>>, vector<1x1x64xf32>
    %124 = vector.shape_cast %123 : vector<1x1x64xf32> to vector<1x64xf32>
    %125 = vector.broadcast %124 : vector<1x64xf32> to vector<64x64xf32>
    %126 = arith.addf %122, %125 : vector<64x64xf32>
    %127 = vector.extract_strided_slice %108 {offsets = [0, 0], sizes = [64, 32], strides = [1, 1]} : vector<64x64xf32> to vector<64x32xf32>
    %128 = vector.extract_strided_slice %117 {offsets = [0, 0], sizes = [128, 32], strides = [1, 1]} : vector<128x128xf32> to vector<128x32xf32>
    %129 = vector.extract_strided_slice %117 {offsets = [0, 64], sizes = [128, 32], strides = [1, 1]} : vector<128x128xf32> to vector<128x32xf32>
    %cst_57 = arith.constant dense<0.000000e+00> : vector<64x128xf32>
    %130 = tpu.matmul %127, %128, %cst_57 {dimension_numbers = #tpu.dot_dimension_numbers<[1], [1], [0], [0], [0, 0, 1, 0], [], []>} : vector<64x32xf32>, vector<128x32xf32>, vector<64x128xf32> -> vector<64x128xf32>
    %cst_58 = arith.constant 0.176776692 : f32
    %131 = vector.broadcast %cst_58 : f32 to vector<64x128xf32>
    %132 = arith.mulf %130, %131 : vector<64x128xf32>
    %133 = vector.broadcast %119 : vector<1x128xf32> to vector<64x128xf32>
    %134 = arith.addf %132, %133 : vector<64x128xf32>
    %cst_59 = arith.constant dense<0xFF800000> : vector<64xf32>
    %135 = vector.multi_reduction <maximumf>, %134, %cst_59 [1] : vector<64x128xf32> to vector<64xf32>
    %136 = vector.shape_cast %135 : vector<64xf32> to vector<64x1xf32>
    %137 = vector.broadcast %136 : vector<64x1xf32> to vector<64x128xf32>
    %138 = arith.subf %134, %137 : vector<64x128xf32>
    %139 = math.exp %138 : vector<64x128xf32>
    %cst_60 = arith.constant dense<0.000000e+00> : vector<64xf32>
    %140 = vector.multi_reduction <add>, %139, %cst_60 [1] : vector<64x128xf32> to vector<64xf32>
    %141 = vector.shape_cast %140 : vector<64xf32> to vector<64x1xf32>
    %142 = vector.broadcast %141 : vector<64x1xf32> to vector<64x128xf32>
    %143 = arith.divf %139, %142 : vector<64x128xf32>
    %cst_61 = arith.constant dense<0.000000e+00> : vector<64x32xf32>
    %144 = tpu.matmul %143, %129, %cst_61 {dimension_numbers = #tpu.dot_dimension_numbers<[1], [0], [0], [1], [0, 0, 1, 1], [], []>} : vector<64x128xf32>, vector<128x32xf32>, vector<64x32xf32> -> vector<64x32xf32>
    %145 = arith.truncf %144 : vector<64x32xf32> to vector<64x32xbf16>
    %146 = vector.extract_strided_slice %121 {offsets = [0, 0], sizes = [32, 64], strides = [1, 1]} : vector<64x64xbf16> to vector<32x64xbf16>
    %cst_62 = arith.constant dense<0.000000e+00> : vector<64x64xf32>
    %147 = tpu.matmul %145, %146, %cst_62 {dimension_numbers = #tpu.dot_dimension_numbers<[1], [0], [0], [1], [0, 0, 1, 1], [], []>} : vector<64x32xbf16>, vector<32x64xbf16>, vector<64x64xf32> -> vector<64x64xf32>
    %148 = arith.addf %126, %147 : vector<64x64xf32>
    %149 = vector.extract_strided_slice %108 {offsets = [0, 32], sizes = [64, 32], strides = [1, 1]} : vector<64x64xf32> to vector<64x32xf32>
    %150 = vector.extract_strided_slice %117 {offsets = [0, 32], sizes = [128, 32], strides = [1, 1]} : vector<128x128xf32> to vector<128x32xf32>
    %151 = vector.extract_strided_slice %117 {offsets = [0, 96], sizes = [128, 32], strides = [1, 1]} : vector<128x128xf32> to vector<128x32xf32>
    %cst_63 = arith.constant dense<0.000000e+00> : vector<64x128xf32>
    %152 = tpu.matmul %149, %150, %cst_63 {dimension_numbers = #tpu.dot_dimension_numbers<[1], [1], [0], [0], [0, 0, 1, 0], [], []>} : vector<64x32xf32>, vector<128x32xf32>, vector<64x128xf32> -> vector<64x128xf32>
    %cst_64 = arith.constant 0.176776692 : f32
    %153 = vector.broadcast %cst_64 : f32 to vector<64x128xf32>
    %154 = arith.mulf %152, %153 : vector<64x128xf32>
    %155 = vector.broadcast %119 : vector<1x128xf32> to vector<64x128xf32>
    %156 = arith.addf %154, %155 : vector<64x128xf32>
    %cst_65 = arith.constant dense<0xFF800000> : vector<64xf32>
    %157 = vector.multi_reduction <maximumf>, %156, %cst_65 [1] : vector<64x128xf32> to vector<64xf32>
    %158 = vector.shape_cast %157 : vector<64xf32> to vector<64x1xf32>
    %159 = vector.broadcast %158 : vector<64x1xf32> to vector<64x128xf32>
    %160 = arith.subf %156, %159 : vector<64x128xf32>
    %161 = math.exp %160 : vector<64x128xf32>
    %cst_66 = arith.constant dense<0.000000e+00> : vector<64xf32>
    %162 = vector.multi_reduction <add>, %161, %cst_66 [1] : vector<64x128xf32> to vector<64xf32>
    %163 = vector.shape_cast %162 : vector<64xf32> to vector<64x1xf32>
    %164 = vector.broadcast %163 : vector<64x1xf32> to vector<64x128xf32>
    %165 = arith.divf %161, %164 : vector<64x128xf32>
    %cst_67 = arith.constant dense<0.000000e+00> : vector<64x32xf32>
    %166 = tpu.matmul %165, %151, %cst_67 {dimension_numbers = #tpu.dot_dimension_numbers<[1], [0], [0], [1], [0, 0, 1, 1], [], []>} : vector<64x128xf32>, vector<128x32xf32>, vector<64x32xf32> -> vector<64x32xf32>
    %167 = arith.truncf %166 : vector<64x32xf32> to vector<64x32xbf16>
    %168 = vector.extract_strided_slice %121 {offsets = [32, 0], sizes = [32, 64], strides = [1, 1]} : vector<64x64xbf16> to vector<32x64xbf16>
    %cst_68 = arith.constant dense<0.000000e+00> : vector<64x64xf32>
    %169 = tpu.matmul %167, %168, %cst_68 {dimension_numbers = #tpu.dot_dimension_numbers<[1], [0], [0], [1], [0, 0, 1, 1], [], []>} : vector<64x32xbf16>, vector<32x64xbf16>, vector<64x64xf32> -> vector<64x64xf32>
    %170 = arith.addf %148, %169 : vector<64x64xf32>
    %171 = arith.addf %100, %170 : vector<64x64xf32>
    %cst_69 = arith.constant dense<0.000000e+00> : vector<64xf32>
    %172 = vector.multi_reduction <add>, %171, %cst_69 [1] : vector<64x64xf32> to vector<64xf32>
    %173 = vector.shape_cast %172 : vector<64xf32> to vector<64x1xf32>
    %cst_70 = arith.constant 6.400000e+01 : f32
    %174 = vector.broadcast %cst_70 : f32 to vector<64x1xf32>
    %175 = arith.divf %173, %174 : vector<64x1xf32>
    %176 = vector.broadcast %175 : vector<64x1xf32> to vector<64x64xf32>
    %177 = arith.subf %171, %176 : vector<64x64xf32>
    %178 = arith.mulf %177, %177 : vector<64x64xf32>
    %cst_71 = arith.constant dense<0.000000e+00> : vector<64xf32>
    %179 = vector.multi_reduction <add>, %178, %cst_71 [1] : vector<64x64xf32> to vector<64xf32>
    %180 = vector.shape_cast %179 : vector<64xf32> to vector<64x1xf32>
    %cst_72 = arith.constant 6.400000e+01 : f32
    %181 = vector.broadcast %cst_72 : f32 to vector<64x1xf32>
    %182 = arith.divf %180, %181 : vector<64x1xf32>
    %183 = vector.broadcast %175 : vector<64x1xf32> to vector<64x64xf32>
    %184 = arith.subf %171, %183 : vector<64x64xf32>
    %cst_73 = arith.constant 9.99999997E-7 : f32
    %185 = vector.broadcast %cst_73 : f32 to vector<64x1xf32>
    %186 = arith.addf %182, %185 : vector<64x1xf32>
    %187 = math.rsqrt %186 : vector<64x1xf32>
    %188 = vector.broadcast %187 : vector<64x1xf32> to vector<64x64xf32>
    %189 = arith.mulf %184, %188 : vector<64x64xf32>
    %cst_74 = arith.constant 1.000000e+00 : f32
    %190 = vector.broadcast %cst_74 : f32 to vector<1x64xf32>
    %191 = arith.addf %190, %15 : vector<1x64xf32>
    %192 = vector.broadcast %191 : vector<1x64xf32> to vector<64x64xf32>
    %193 = arith.mulf %189, %192 : vector<64x64xf32>
    %194 = vector.broadcast %14 : vector<1x64xf32> to vector<64x64xf32>
    %195 = arith.addf %193, %194 : vector<64x64xf32>
    %c0_75 = arith.constant 0 : index
    %c0_76 = arith.constant 0 : index
    %c320 = arith.constant 320 : index
    %196 = vector.load %arg7[%c0_75, %c0_76, %c320] : memref<1x64x768xbf16, #tpu.memory_space<vmem>>, vector<1x64x256xbf16>
    %197 = vector.shape_cast %196 : vector<1x64x256xbf16> to vector<64x256xbf16>
    %198 = arith.truncf %195 : vector<64x64xf32> to vector<64x64xbf16>
    %cst_77 = arith.constant dense<0.000000e+00> : vector<64x256xf32>
    %199 = tpu.matmul %198, %197, %cst_77 {dimension_numbers = #tpu.dot_dimension_numbers<[1], [0], [0], [1], [0, 0, 1, 1], [], []>} : vector<64x64xbf16>, vector<64x256xbf16>, vector<64x256xf32> -> vector<64x256xf32>
    %c0_78 = arith.constant 0 : index
    %c0_79 = arith.constant 0 : index
    %c320_80 = arith.constant 320 : index
    %200 = vector.load %arg9[%c0_78, %c0_79, %c320_80] : memref<1x16x768xf32, #tpu.memory_space<vmem>>, vector<1x1x256xf32>
    %201 = vector.shape_cast %200 : vector<1x1x256xf32> to vector<1x256xf32>
    %202 = vector.broadcast %201 : vector<1x256xf32> to vector<64x256xf32>
    %203 = arith.addf %199, %202 : vector<64x256xf32>
    %cst_81 = arith.constant 0.000000e+00 : f32
    %204 = vector.broadcast %cst_81 : f32 to vector<64x256xf32>
    %205 = arith.subf %204, %203 : vector<64x256xf32>
    %206 = math.exp %205 : vector<64x256xf32>
    %cst_82 = arith.constant 1.000000e+00 : f32
    %207 = vector.broadcast %cst_82 : f32 to vector<64x256xf32>
    %208 = arith.addf %207, %206 : vector<64x256xf32>
    %209 = tpu.reciprocal %208 {approx = true} : vector<64x256xf32> -> vector<64x256xf32>
    %210 = arith.mulf %203, %209 : vector<64x256xf32>
    %c16 = arith.constant 16 : index
    %c0_83 = arith.constant 0 : index
    %211 = vector.load %arg11[%c16, %c0_83] : memref<96x256xf32, #tpu.memory_space<vmem>>, vector<64x256xf32>
    tpu.vector_store %arg11[%c16, %c0_83], %210 {strides = array<i32>} : memref<96x256xf32, #tpu.memory_space<vmem>>, vector<64x256xf32>,
    %c0_84 = arith.constant 0 : index
    %c0_85 = arith.constant 0 : index
    %212 = vector.load %arg6[%c0_84, %c0_85] : memref<64x2xf32, #tpu.memory_space<vmem>>, vector<64x1xf32>
    %c0_86 = arith.constant 0 : index
    %c1 = arith.constant 1 : index
    %213 = vector.load %arg6[%c0_86, %c1] : memref<64x2xf32, #tpu.memory_space<vmem>>, vector<64x1xf32>
    %c0_87 = arith.constant 0 : index
    %c1_88 = arith.constant 1 : index
    %c0_89 = arith.constant 0 : index
    %214 = vector.load %arg9[%c0_87, %c1_88, %c0_89] : memref<1x16x768xf32, #tpu.memory_space<vmem>>, vector<1x9x256xf32>
    %215 = vector.shape_cast %214 : vector<1x9x256xf32> to vector<9x256xf32>
    %cst_90 = arith.constant 0.000000e+00 : f32
    %216 = vector.broadcast %cst_90 : f32 to vector<64x256xf32>
    %c0_91 = arith.constant 0 : index
    %c10 = arith.constant 10 : index
    %c0_92 = arith.constant 0 : index
    %217 = vector.load %arg9[%c0_91, %c10, %c0_92] : memref<1x16x768xf32, #tpu.memory_space<vmem>>, vector<1x1x256xf32>
    %218 = vector.shape_cast %217 : vector<1x1x256xf32> to vector<1x256xf32>
    %219 = vector.broadcast %218 : vector<1x256xf32> to vector<64x256xf32>
    %220 = arith.addf %216, %219 : vector<64x256xf32>
    %c7 = arith.constant 7 : index
    %c0_93 = arith.constant 0 : index
    %221 = vector.load %arg11[%c7, %c0_93] : memref<96x256xf32, #tpu.memory_space<vmem>>, vector<64x256xf32>
    %222 = vector.extract_strided_slice %215 {offsets = [0, 0], sizes = [1, 256], strides = [1, 1]} : vector<9x256xf32> to vector<1x256xf32>
    %223 = vector.broadcast %222 : vector<1x256xf32> to vector<64x256xf32>
    %224 = arith.mulf %221, %223 : vector<64x256xf32>
    %225 = vector.broadcast %212 : vector<64x1xf32> to vector<64x256xf32>
    %226 = arith.mulf %224, %225 : vector<64x256xf32>
    %227 = arith.addf %220, %226 : vector<64x256xf32>
    %c8 = arith.constant 8 : index
    %c0_94 = arith.constant 0 : index
    %228 = vector.load %arg11[%c8, %c0_94] : memref<96x256xf32, #tpu.memory_space<vmem>>, vector<64x256xf32>
    %229 = vector.extract_strided_slice %215 {offsets = [1, 0], sizes = [1, 256], strides = [1, 1]} : vector<9x256xf32> to vector<1x256xf32>
    %230 = vector.broadcast %229 : vector<1x256xf32> to vector<64x256xf32>
    %231 = arith.mulf %228, %230 : vector<64x256xf32>
    %232 = arith.addf %227, %231 : vector<64x256xf32>
    %c9 = arith.constant 9 : index
    %c0_95 = arith.constant 0 : index
    %233 = vector.load %arg11[%c9, %c0_95] : memref<96x256xf32, #tpu.memory_space<vmem>>, vector<64x256xf32>
    %234 = vector.extract_strided_slice %215 {offsets = [2, 0], sizes = [1, 256], strides = [1, 1]} : vector<9x256xf32> to vector<1x256xf32>
    %235 = vector.broadcast %234 : vector<1x256xf32> to vector<64x256xf32>
    %236 = arith.mulf %233, %235 : vector<64x256xf32>
    %237 = vector.broadcast %213 : vector<64x1xf32> to vector<64x256xf32>
    %238 = arith.mulf %236, %237 : vector<64x256xf32>
    %239 = arith.addf %232, %238 : vector<64x256xf32>
    %c15 = arith.constant 15 : index
    %c0_96 = arith.constant 0 : index
    %240 = vector.load %arg11[%c15, %c0_96] : memref<96x256xf32, #tpu.memory_space<vmem>>, vector<64x256xf32>
    %241 = vector.extract_strided_slice %215 {offsets = [3, 0], sizes = [1, 256], strides = [1, 1]} : vector<9x256xf32> to vector<1x256xf32>
    %242 = vector.broadcast %241 : vector<1x256xf32> to vector<64x256xf32>
    %243 = arith.mulf %240, %242 : vector<64x256xf32>
    %244 = vector.broadcast %212 : vector<64x1xf32> to vector<64x256xf32>
    %245 = arith.mulf %243, %244 : vector<64x256xf32>
    %246 = arith.addf %239, %245 : vector<64x256xf32>
    %c16_97 = arith.constant 16 : index
    %c0_98 = arith.constant 0 : index
    %247 = vector.load %arg11[%c16_97, %c0_98] : memref<96x256xf32, #tpu.memory_space<vmem>>, vector<64x256xf32>
    %248 = vector.extract_strided_slice %215 {offsets = [4, 0], sizes = [1, 256], strides = [1, 1]} : vector<9x256xf32> to vector<1x256xf32>
    %249 = vector.broadcast %248 : vector<1x256xf32> to vector<64x256xf32>
    %250 = arith.mulf %247, %249 : vector<64x256xf32>
    %251 = arith.addf %246, %250 : vector<64x256xf32>
    %c17 = arith.constant 17 : index
    %c0_99 = arith.constant 0 : index
    %252 = vector.load %arg11[%c17, %c0_99] : memref<96x256xf32, #tpu.memory_space<vmem>>, vector<64x256xf32>
    %253 = vector.extract_strided_slice %215 {offsets = [5, 0], sizes = [1, 256], strides = [1, 1]} : vector<9x256xf32> to vector<1x256xf32>
    %254 = vector.broadcast %253 : vector<1x256xf32> to vector<64x256xf32>
    %255 = arith.mulf %252, %254 : vector<64x256xf32>
    %256 = vector.broadcast %213 : vector<64x1xf32> to vector<64x256xf32>
    %257 = arith.mulf %255, %256 : vector<64x256xf32>
    %258 = arith.addf %251, %257 : vector<64x256xf32>
    %c23 = arith.constant 23 : index
    %c0_100 = arith.constant 0 : index
    %259 = vector.load %arg11[%c23, %c0_100] : memref<96x256xf32, #tpu.memory_space<vmem>>, vector<64x256xf32>
    %260 = vector.extract_strided_slice %215 {offsets = [6, 0], sizes = [1, 256], strides = [1, 1]} : vector<9x256xf32> to vector<1x256xf32>
    %261 = vector.broadcast %260 : vector<1x256xf32> to vector<64x256xf32>
    %262 = arith.mulf %259, %261 : vector<64x256xf32>
    %263 = vector.broadcast %212 : vector<64x1xf32> to vector<64x256xf32>
    %264 = arith.mulf %262, %263 : vector<64x256xf32>
    %265 = arith.addf %258, %264 : vector<64x256xf32>
    %c24 = arith.constant 24 : index
    %c0_101 = arith.constant 0 : index
    %266 = vector.load %arg11[%c24, %c0_101] : memref<96x256xf32, #tpu.memory_space<vmem>>, vector<64x256xf32>
    %267 = vector.extract_strided_slice %215 {offsets = [7, 0], sizes = [1, 256], strides = [1, 1]} : vector<9x256xf32> to vector<1x256xf32>
    %268 = vector.broadcast %267 : vector<1x256xf32> to vector<64x256xf32>
    %269 = arith.mulf %266, %268 : vector<64x256xf32>
    %270 = arith.addf %265, %269 : vector<64x256xf32>
    %c25 = arith.constant 25 : index
    %c0_102 = arith.constant 0 : index
    %271 = vector.load %arg11[%c25, %c0_102] : memref<96x256xf32, #tpu.memory_space<vmem>>, vector<64x256xf32>
    %272 = vector.extract_strided_slice %215 {offsets = [8, 0], sizes = [1, 256], strides = [1, 1]} : vector<9x256xf32> to vector<1x256xf32>
    %273 = vector.broadcast %272 : vector<1x256xf32> to vector<64x256xf32>
    %274 = arith.mulf %271, %273 : vector<64x256xf32>
    %275 = vector.broadcast %213 : vector<64x1xf32> to vector<64x256xf32>
    %276 = arith.mulf %274, %275 : vector<64x256xf32>
    %277 = arith.addf %270, %276 : vector<64x256xf32>
    %278 = vector.extract_strided_slice %277 {offsets = [0, 0], sizes = [64, 128], strides = [1, 1]} : vector<64x256xf32> to vector<64x128xf32>
    %279 = vector.extract_strided_slice %277 {offsets = [0, 128], sizes = [64, 128], strides = [1, 1]} : vector<64x256xf32> to vector<64x128xf32>
    %cst_103 = arith.constant 0.000000e+00 : f32
    %280 = vector.broadcast %cst_103 : f32 to vector<64x128xf32>
    %281 = arith.subf %280, %279 : vector<64x128xf32>
    %282 = math.exp %281 : vector<64x128xf32>
    %cst_104 = arith.constant 1.000000e+00 : f32
    %283 = vector.broadcast %cst_104 : f32 to vector<64x128xf32>
    %284 = arith.addf %283, %282 : vector<64x128xf32>
    %285 = tpu.reciprocal %284 {approx = true} : vector<64x128xf32> -> vector<64x128xf32>
    %286 = arith.mulf %279, %285 : vector<64x128xf32>
    %287 = arith.mulf %278, %286 : vector<64x128xf32>
    %c0_105 = arith.constant 0 : index
    %c0_106 = arith.constant 0 : index
    %c0_107 = arith.constant 0 : index
    %288 = vector.load %arg8[%c0_105, %c0_106, %c0_107] : memref<1x128x64xbf16, #tpu.memory_space<vmem>>, vector<1x128x64xbf16>
    %289 = vector.shape_cast %288 : vector<1x128x64xbf16> to vector<128x64xbf16>
    %290 = arith.truncf %287 : vector<64x128xf32> to vector<64x128xbf16>
    %cst_108 = arith.constant dense<0.000000e+00> : vector<64x64xf32>
    %291 = tpu.matmul %290, %289, %cst_108 {dimension_numbers = #tpu.dot_dimension_numbers<[1], [0], [0], [1], [0, 0, 1, 1], [], []>} : vector<64x128xbf16>, vector<128x64xbf16>, vector<64x64xf32> -> vector<64x64xf32>
    %292 = vector.broadcast %16 : vector<1x64xf32> to vector<64x64xf32>
    %293 = arith.mulf %292, %291 : vector<64x64xf32>
    %294 = arith.addf %171, %293 : vector<64x64xf32>
    %c0_109 = arith.constant 0 : index
    %c0_110 = arith.constant 0 : index
    %c0_111 = arith.constant 0 : index
    %295 = vector.load %arg10[%c0_109, %c0_110, %c0_111] : memref<1x64x64xf32, #tpu.memory_space<vmem>>, vector<1x64x64xf32>
    %296 = vector.shape_cast %295 : vector<1x64x64xf32> to vector<64x64xf32>
    %297 = vector.shape_cast %294 : vector<64x64xf32> to vector<1x64x64xf32>
    tpu.vector_store %arg10[%c0_109, %c0_110, %c0_111], %297 {strides = array<i32>} : memref<1x64x64xf32, #tpu.memory_space<vmem>>, vector<1x64x64xf32>,
    return
  }
  func.func @transform_0(%arg0: i32, %arg1: i32) -> (i32, i32, i32) {
    %c0_i32 = arith.constant 0 : i32
    %c0_i32_0 = arith.constant 0 : i32
    %c0_i32_1 = arith.constant 0 : i32
    return %arg0, %c0_i32, %c0_i32_0 : i32, i32, i32
  }
  func.func @transform_1(%arg0: i32, %arg1: i32) -> (i32, i32, i32) {
    %c0_i32 = arith.constant 0 : i32
    %c0_i32_0 = arith.constant 0 : i32
    %c0_i32_1 = arith.constant 0 : i32
    return %arg0, %c0_i32, %c0_i32_0 : i32, i32, i32
  }
  func.func @transform_2(%arg0: i32, %arg1: i32) -> (i32, i32) {
    %c0_i32 = arith.constant 0 : i32
    %c0_i32_0 = arith.constant 0 : i32
    %c0_i32_1 = arith.constant 0 : i32
    return %c0_i32, %c0_i32_0 : i32, i32
  }
  func.func @transform_3(%arg0: i32, %arg1: i32) -> (i32, i32) {
    %c0_i32 = arith.constant 0 : i32
    %c0_i32_0 = arith.constant 0 : i32
    %c0_i32_1 = arith.constant 0 : i32
    return %c0_i32, %c0_i32_0 : i32, i32
  }
  func.func @transform_4(%arg0: i32, %arg1: i32) -> (i32, i32) {
    %c0_i32 = arith.constant 0 : i32
    %c0_i32_0 = arith.constant 0 : i32
    %c0_i32_1 = arith.constant 0 : i32
    return %c0_i32, %c0_i32_0 : i32, i32
  }
  func.func @transform_5(%arg0: i32, %arg1: i32) -> (i32, i32, i32) {
    %c0_i32 = arith.constant 0 : i32
    %c0_i32_0 = arith.constant 0 : i32
    %c0_i32_1 = arith.constant 0 : i32
    return %arg1, %c0_i32, %c0_i32_0 : i32, i32, i32
  }
  func.func @transform_6(%arg0: i32, %arg1: i32) -> (i32, i32, i32) {
    %c0_i32 = arith.constant 0 : i32
    %c0_i32_0 = arith.constant 0 : i32
    %c0_i32_1 = arith.constant 0 : i32
    return %arg1, %c0_i32, %c0_i32_0 : i32, i32, i32
  }
  func.func @transform_7(%arg0: i32, %arg1: i32) -> (i32, i32, i32) {
    %c0_i32 = arith.constant 0 : i32
    %c0_i32_0 = arith.constant 0 : i32
    %c0_i32_1 = arith.constant 0 : i32
    return %arg1, %c0_i32, %c0_i32_0 : i32, i32, i32
  }
  func.func @transform_8(%arg0: i32, %arg1: i32) -> (i32, i32, i32) {
    %c0_i32 = arith.constant 0 : i32
    %c0_i32_0 = arith.constant 0 : i32
    %c0_i32_1 = arith.constant 0 : i32
    return %arg0, %c0_i32, %c0_i32_0 : i32, i32, i32
  }
}

</mosaic_0001>

<bundles_post_ra>
// kernel: nunchaku_sana_forward.1
= control target key start
LH: loop header
LB: loop body
LE: loop exit
PB: predicated region body
PF: predicated region fallthrough
CT: control target
= control target key end

     0   :  { %s9808_s0 = inlined_call_operand.vmem [shape: f32[2,64,64], index: 0, kind: input, shape index: {}]   ;;  %s9809_s1 = inlined_call_operand.vmem [shape: bf16[2,128,64], index: 1, kind: input, shape index: {}]   ;;  %s9810_s2 = inlined_call_operand.vmem [shape: f32[2,128], index: 2, kind: input, shape index: {}]   ;;  %s9811_s3 = inlined_call_operand.vmem [shape: f32[32,64], index: 3, kind: input, shape index: {}]   ;;  %s9812_s4 = inlined_call_operand.vmem [shape: f32[64,2], index: 4, kind: input, shape index: {}]   ;;  %s9813_s5 = inlined_call_operand.vmem [shape: bf16[2,64,768], index: 5, kind: input, shape index: {}]   ;;  %s9814_s6 = inlined_call_operand.vmem [shape: bf16[2,128,64], index: 6, kind: input, shape index: {}]   ;;  %s9815_s7 = inlined_call_operand.vmem [shape: f32[2,16,768], index: 7, kind: input, shape index: {}]   ;;  %s9816_s8 = inlined_call_operand.hbm [shape: f32[2,64,64], index: 8, kind: output, shape index: {}]  }
   0x1   :  { %9958 = sst [smem:[#allocation103_spill]] %s9808_s0 }
   0x2   :  { %13 = vsyncpa [#allocation4], 0 }
   0x3   :  { %15 = vsyncpa [#allocation4 + $0x1], 0  ;;  %s6994_s27 = smov 0   ;;  %s6996_s28 = smov 0  }
   0x4   :  { %s6998_s29 = smov 0   ;;  %s7000_s30 = smov 0  }
   0x5   :  { %s7002_s9 = smov 0   ;;  %s7004_s10 = smov 0  }
   0x6   :  { %s7006_s11 = smov 0   ;;  %s7008_s12 = smov 0  }
   0x7 LB: > { %9959 = sst [smem:[#allocation6_spill]] %s6910_s27  ;;  %s5347_s13 = sadd.s32 4294967295, %s6938_s12   ;;  %s6938_s12 = sphi %s7008_s12, %s21_s12   ;;  %s6934_s11 = sphi %s7006_s11, %s10329_s11   ;;  %s6930_s10 = sphi %s7004_s10, %s10328_s10   ;;  %s6926_s9 = sphi %s7002_s9, %s10332_s9   ;;  %s6922_s30 = sphi %s7000_s30, %s10326_s30   ;;  %s6918_s29 = sphi %s6998_s29, %s10325_s29   ;;  %s6914_s28 = sphi %s6996_s28, %s10331_s28   ;;  %s6910_s27 = sphi %s6994_s27, %s10330_s27  }
   0x8   : > { %9960 = sst [smem:[#allocation7_spill]] %s6918_s29  ;;  %s5348_s14 = sadd.s32 4294967294, %s6938_s12  }
   0x9   : > { %9961 = sst [smem:[#allocation8_spill]] %s6930_s10  ;;  %s30_s15 = sadd.s32 1, %s6930_s10 }
   0xa   : > { %9962 = sst [smem:[#allocation9_spill]] %s6934_s11  ;;  %p31_p0 = scmp.ge.s32.totalorder %s30_s15, 2 }
   0xb   : > { %9963 = sst [smem:[#allocation10_spill]] %s6938_s12  ;;  %s33_s16 = sadd.s32 1, %s6934_s11 }
   0xc   : > { %p243_p1 = scmp.ne.s32.totalorder %s6918_s29, %s6914_s28  ;;  %p244_p2 = scmp.eq.s32.totalorder %s5347_s13, 3 }
   0xd   : > { %s10334_s15 = smov (%p31_p0, %s30_s15), 0  ;;  %s10336_s16 = smov (!%p31_p0, %s33_s16), %s6934_s11 }
   0xe   : > { %9964 = sst [smem:[#allocation11_spill]] %s10334_s15  ;;  %p7043_p3 = por %p244_p2, %p243_p1 }
   0xf   : > { %p249_p4 = scmp.ne.s32.totalorder %s6914_s28, %s6910_s27  ;;  %p35_p5 = scmp.ge.s32.totalorder %s10336_s16, 2 }
  0x10   : > { %p250_p6 = scmp.eq.s32.totalorder %s5348_s14, 3  ;;  %p5351_p7 = scmp.ge.s32.totalorder %s6938_s12, 1 }
  0x11   : > { %p317_p8 = scmp.lt.s32.totalorder %s6938_s12, 5  ;;  %s10338_s16 = smov (%p35_p5, %s10336_s16), 0 }
  0x12   : > { %9966 = sst [smem:[#allocation12_spill]] %s10338_s16  ;;  %p7053_p9 = por %p250_p6, %p249_p4 }
  0x13   : > { %p318_p10 = pnand %p5351_p7, %p317_p8  ;;  %s230_s19 = ssub.s32 %s6934_s11, %s10338_s16 }
  0x14   : > { %s9967_s18 = scalar_select %p7053_p9, 1, 0 }
  0x15   : > { %s233_s20 = sadd.s32 1, %s6918_s29  ;;  %p231_p11 = scmp.eq.s32.totalorder %s230_s19, 0 }
  0x16   : > { %9968 = sst [smem:[#allocation13_spill]] %s9967_s18  ;;  %321 = sbr.rel (%p318_p10) target bundleno = 5150 (0x141e), region = 52 }
  0x17   : > { %s7061_s21 = scalar_select %p231_p11, %s6918_s29, %s233_s20  }
  0x19   : > { %9969 = sst [smem:[#allocation14_spill]] %s7061_s21 }
  0x1d   : > { %s9821_s22 = sand.u32 1, %s6914_s28   ;;  %p371_p12 = scmp.lt.s32.totalorder %s6926_s9, 1 }
  0x1e   : > { %s5352_s23 = sshll.u32 %s9821_s22, 6  ;;  %p381_p13 = scmp.lt.s32.totalorder %s6922_s30, 1 }
  0x1f   : > { %s372_s24 = scalar_select %p371_p12, %s6926_s9, 1 }
  0x20   : > { %s382_s25 = scalar_select %p381_p13, %s6922_s30, 1 }
  0x21   : > { %s5528_s26 = sshll.u32 %s372_s24, 6  ;;  %s9970_s0 = sld [smem:[#allocation103_spill]] }
  0x22   : > { %s7078_s15 = scalar_lea.vmem %s9809_s1, %s5528_s26  ;;  %s6312_s11 = smul.u32 192, %s382_s25 }
  0x23   : > { %s5530_s10 = sshll.u32 %s382_s25, 6  ;;  %s6313_s18 = smul.u32 96, %s382_s25 }
  0x24   : > { %s7083_s22 = scalar_lea.vmem %s9814_s6, %s5530_s10  ;;  %s7088_s12 = scalar_lea.vmem %s9813_s5, %s6312_s11 }
  0x25   : > { %s7095_s16 = scalar_lea.vmem [#allocation3], %s5352_s23  ;;  %p5361_p0 = scmp.ne.s32.totalorder %s6922_s30, 0 }
  0x26   : > { %vm409_vm0 = vcmask (!%p5361_p0), 523264   ;;  %v6940_v6 = vmov (!%p5361_p0), 0.0  }
  0x27   : > { %s7073_s19 = scalar_lea.vmem %s9970_s0, %s5528_s26  ;;  %s7093_s0 = scalar_lea.vmem %s9815_s7, %s6313_s18  ;;  %418 = vst [vmem:[#allocation2] sm:$0xff] (!%p5361_p0), %v6940_v6  ;;  %419 = vst [vmem:[#allocation2 + $0x8] sm:$0xff] (!%p5361_p0), %v6940_v6 }
  0x28   : > { %400 = sbr.rel (%p5361_p0) target bundleno = 48 (0x30), region = 56  ;;  %v401_v0 = vld [vmem:[%s7073_s19] sm:$0xff] (!%p5361_p0)  ;;  %v402_v1 = vld [vmem:[%s7073_s19 + $0x8] sm:$0xff] (!%p5361_p0)  ;;  %v403_v2 = vld [vmem:[%s7073_s19 + $0x10] sm:$0xff] (!%p5361_p0)  ;;  %420 = vst [vmem:[#allocation2 + $0x10] sm:$0xff] (!%p5361_p0), %v6940_v6 }
  0x29   : > { %410 = vst.msk [vmem:[%s7095_s16] sm:$0xff] (!%p5361_p0), %vm409_vm0, %v401_v0  ;;  %411 = vst.msk [vmem:[%s7095_s16 + $0x8] sm:$0xff] (!%p5361_p0), %vm409_vm0, %v402_v1  ;;  %v404_v3 = vld [vmem:[%s7073_s19 + $0x18] sm:$0xff] (!%p5361_p0)  ;;  %v405_v4 = vld [vmem:[%s7073_s19 + $0x20] sm:$0xff] (!%p5361_p0) }
  0x2a   : > { %412 = vst.msk [vmem:[%s7095_s16 + $0x10] sm:$0xff] (!%p5361_p0), %vm409_vm0, %v403_v2  ;;  %v406_v5 = vld [vmem:[%s7073_s19 + $0x28] sm:$0xff] (!%p5361_p0)  ;;  %421 = vst [vmem:[#allocation2 + $0x18] sm:$0xff] (!%p5361_p0), %v6940_v6  ;;  %v407_v7 = vld [vmem:[%s7073_s19 + $0x30] sm:$0xff] (!%p5361_p0) }
  0x2b   : > { %422 = vst [vmem:[#allocation2 + $0xa0] sm:$0xff] (!%p5361_p0), %v6940_v6  ;;  %423 = vst [vmem:[#allocation2 + $0xa8] sm:$0xff] (!%p5361_p0), %v6940_v6  ;;  %v408_v8 = vld [vmem:[%s7073_s19 + $0x38] sm:$0xff] (!%p5361_p0) }
  0x2c   : > { %424 = vst [vmem:[#allocation2 + $0xb0] sm:$0xff] (!%p5361_p0), %v6940_v6  ;;  %425 = vst [vmem:[#allocation2 + $0xb8] sm:$0xff] (!%p5361_p0), %v6940_v6 }
  0x2d   : > { %413 = vst.msk [vmem:[%s7095_s16 + $0x18] sm:$0xff] (!%p5361_p0), %vm409_vm0, %v404_v3  ;;  %414 = vst.msk [vmem:[%s7095_s16 + $0x20] sm:$0xff] (!%p5361_p0), %vm409_vm0, %v405_v4 }
  0x2e   : > { %415 = vst.msk [vmem:[%s7095_s16 + $0x28] sm:$0xff] (!%p5361_p0), %vm409_vm0, %v406_v5  ;;  %416 = vst.msk [vmem:[%s7095_s16 + $0x30] sm:$0xff] (!%p5361_p0), %vm409_vm0, %v407_v7 }
  0x2f   : > { %417 = vst.msk [vmem:[%s7095_s16 + $0x38] sm:$0xff] %vm409_vm0, %v408_v8 }
  0x30 PF: > { %vm439_vm1 = vcmask 523264   ;;  %v6542_v1 = vld [vmem:[%s7088_s12 + $0x4] ss:$24 sps:$4 sm:$0xff]   ;;  %v6544_v2 = vld [vmem:[%s7088_s12] ss:$24 sps:$4 sm:$0xff]   ;;  %s5362_s27 = sshll.u32 %s6922_s30, 1  ;;  %s2230_s19 = scalar_lea.vmem %s9810_s2, %s6926_s9 }
  0x31   : > { %v426_v9 = vld [vmem:[%s7095_s16] sm:$0xff]  ;;  %v427_v11 = vld [vmem:[%s7095_s16 + $0x8] sm:$0xff]  ;;  %646 = vmatprep.subr.bf16.mxu0 %v6542_v1  ;;  %s435_s29 = sadd.s32 %s6926_s9, %s5362_s27  ;;  %s6942_s30 = smov 64   ;;  %vm898_vm2 = vcmask 785920   ;;  %vm1424_vm3 = vcmask 1048320   ;;  %vm920_vm4 = vcmask 261120  }
  0x32   : > { %v428_v10 = vld [vmem:[%s7095_s16 + $0x10] sm:$0xff]  ;;  %v440_v12 = vsel %vm439_vm1, %v426_v9, 0.0  ;;  %v443_v17 = vsel %vm439_vm1, %v427_v11, 0.0  ;;  %647 = vmatpush1.bf16.msra.mxu0 %v6544_v2  ;;  %v6548_v5 = vld [vmem:[%s7088_s12 + $0x64] ss:$24 sps:$4 sm:$0xff]   ;;  %s5363_s10 = sshll.u32 %s435_s29, 3  ;;  %vm7588_vm5 = vmpackc.low %vm920_vm4, %vm920_vm4 }
  0x33   : > { %v446_v13 = vsel %vm439_vm1, %v428_v10, 0.0  ;;  %441 = vadd.xlane.f32.xlu0 %v440_v12  ;;  %v6545_v3 = vld [vmem:[%s7088_s12 + $0x34] ss:$24 sps:$4 sm:$0xff]   ;;  %v6547_v4 = vld [vmem:[%s7088_s12 + $0x30] ss:$24 sps:$4 sm:$0xff]   ;;  %s7192_s21 = scalar_lea.vmem %s9811_s3, %s5363_s10  ;;  %s6943_s23 = smov 32  }
  0x34   : > { %447 = vadd.xlane.f32.xlu1 %v446_v13  ;;  %648 = vmatprep.subr.bf16.mxu0 %v6545_v3  ;;  %v6550_v6 = vld [vmem:[%s7088_s12 + $0x60] ss:$24 sps:$4 sm:$0xff]   ;;  %v6551_v7 = vld [vmem:[%s7088_s12 + $0x94] ss:$24 sps:$4 sm:$0xff]   ;;  %v6553_v8 = vld [vmem:[%s7088_s12 + $0x90] ss:$24 sps:$4 sm:$0xff]  }
  0x35   : > { %v429_v14 = vld [vmem:[%s7095_s16 + $0x18] sm:$0xff]  ;;  %v430_v15 = vld [vmem:[%s7095_s16 + $0x20] sm:$0xff]  ;;  %s6944_s25 = smov 96   ;;  %vm3920_vm6 = vcmask 1046528   ;;  %vm4155_vm7 = vcmask 1040384   ;;  %vm4216_vm8 = vcmask 1045504  }
  0x36   : > { %v431_v16 = vld [vmem:[%s7095_s16 + $0x28] sm:$0xff]  ;;  %v449_v18 = vsel %vm439_vm1, %v429_v14, 0.0  ;;  %v452_v19 = vsel %vm439_vm1, %v430_v15, 0.0  ;;  %v432_v21 = vld [vmem:[%s7095_s16 + $0x30] sm:$0xff]  ;;  %v433_v22 = vld [vmem:[%s7095_s16 + $0x38] sm:$0xff]  ;;  %649 = vmatpush1.bf16.msra.mxu0 %v6547_v4  ;;  %s6946_s14 = smov [#allocation3]  }
  0x37   : > { %v455_v20 = vsel %vm439_vm1, %v431_v16, 0.0  ;;  %444 = vadd.xlane.f32.xlu0 %v443_v17  ;;  %v458_v23 = vsel %vm439_vm1, %v432_v21, 0.0  ;;  %v461_v24 = vsel %vm439_vm1, %v433_v22, 0.0  ;;  %650 = vmatprep.subr.bf16.mxu0 %v6548_v5  ;;  %vm5017_vm9 = vsmask.f32 4352  ;;  %s6848_s27 = sshll.u32 %s6946_s14, 4  ;;  %s6849_s27 = int_to_ptr.vmem [resolvable:$false] %s6848_s27 }
  0x38   : > { %450 = vadd.xlane.f32.xlu1 %v449_v18  ;;  %s6850_s29 = scalar_lea.vmem %s6849_s27, 2048 }
  0x3a   : > { %651 = vmatpush1.bf16.msra.mxu0 %v6550_v6 }
  0x3b   : > { %453 = vadd.xlane.f32.xlu0 %v452_v19  ;;  %652 = vmatprep.subr.bf16.mxu0 %v6551_v7 }
  0x3c   : > { %456 = vadd.xlane.f32.xlu1 %v455_v20 }
  0x3e   : > { %653 = vmatpush1.bf16.msra.mxu0 %v6553_v8 }
  0x3f   : > { %459 = vadd.xlane.f32.xlu0 %v458_v23 }
  0x40   : > { %462 = vadd.xlane.f32.xlu1 %v461_v24  ;;  %v438_v24 = vld [vmem:[%s7192_s21] sm:$0xff] }
  0xc0   : > { %v442_v25 = vpop.xlane.xlu0 %441 }
  0xc1   : > { %v448_v26 = vpop.xlane.xlu1 %447  ;;  %v465_v27 = vmul.f32 0.015625, %v442_v25 }
  0xc2   : > { %v467_v28 = vmul.f32 0.015625, %v448_v26 }
  0xc3   : > { %v7138_v29 = vsub.f32 %v426_v9, %v465_v27  ;;  %v6941_v9 = vmov 0  }
  0xc4   : > { %v7140_v30 = vsub.f32 %v428_v10, %v467_v28  ;;  %v445_v31 = vpop.xlane.xlu0 %444  ;;  %678 = vmatprep.mubr.bf16.mxu0 %v6941_v9  ;;  %v7197_v28 = vadd.f32 1.0, %v438_v24 }
  0xc5   : > { %v451_v32 = vpop.xlane.xlu1 %450  ;;  %v466_v33 = vmul.f32 0.015625, %v445_v31  ;;  %v481_v35 = vmul.f32 %v7138_v29, %v7138_v29 }
  0xc6   : > { %v468_v34 = vmul.f32 0.015625, %v451_v32  ;;  %v483_v36 = vmul.f32 %v7140_v30, %v7140_v30 }
  0xc7   : > { %v7146_v37 = vsub.f32 %v427_v11, %v466_v33  ;;  %v489_v39 = vsel %vm439_vm1, %v481_v35, 0.0 }
  0xc8   : > { %v7148_v38 = vsub.f32 %v429_v14, %v468_v34  ;;  %490 = vadd.xlane.f32.xlu0 %v489_v39  ;;  %v454_v40 = vpop.xlane.xlu0 %453  ;;  %v495_v42 = vsel %vm439_vm1, %v483_v36, 0.0 }
  0xc9   : > { %v457_v41 = vpop.xlane.xlu1 %456  ;;  %v469_v43 = vmul.f32 0.015625, %v454_v40  ;;  %v482_v45 = vmul.f32 %v7146_v37, %v7146_v37 }
  0xca   : > { %v470_v44 = vmul.f32 0.015625, %v457_v41  ;;  %v484_v46 = vmul.f32 %v7148_v38, %v7148_v38 }
  0xcb   : > { %v7156_v47 = vsub.f32 %v430_v15, %v469_v43  ;;  %v492_v49 = vsel %vm439_vm1, %v482_v45, 0.0  ;;  %v546_v15 = vlaneseq }
  0xcc   : > { %v7158_v48 = vsub.f32 %v431_v16, %v470_v44  ;;  %496 = vadd.xlane.f32.xlu0 %v495_v42  ;;  %493 = vadd.xlane.f32.xlu1 %v492_v49  ;;  %v460_v50 = vpop.xlane.xlu0 %459  ;;  %v498_v52 = vsel %vm439_vm1, %v484_v46, 0.0 }
  0xcd   : > { %v463_v51 = vpop.xlane.xlu1 %462  ;;  %v471_v53 = vmul.f32 0.015625, %v460_v50  ;;  %v485_v55 = vmul.f32 %v7156_v47, %v7156_v47 }
  0xce   : > { %v472_v54 = vmul.f32 0.015625, %v463_v51  ;;  %v486_v56 = vmul.f32 %v7158_v48, %v7158_v48 }
  0xcf   : > { %v7166_v57 = vsub.f32 %v432_v21, %v471_v53  ;;  %v501_v59 = vsel %vm439_vm1, %v485_v55, 0.0 }
  0xd0   : > { %v7168_v58 = vsub.f32 %v433_v22, %v472_v54  ;;  %499 = vadd.xlane.f32.xlu1 %v498_v52  ;;  %502 = vadd.xlane.f32.xlu0 %v501_v59  ;;  %v504_v60 = vsel %vm439_vm1, %v486_v56, 0.0  ;;  %v7194_v22 = vshrl.u32 %v546_v15, 7 }
  0xd1   : > { %v487_v61 = vmul.f32 %v7166_v57, %v7166_v57 }
  0xd2   : > { %v488_v62 = vmul.f32 %v7168_v58, %v7168_v58  ;;  %v7200_v31 = vsub.s32 1, %v7194_v22  ;;  %v7206_v42 = vsub.s32 0, %v7194_v22 }
  0xd3   : > { %v507_v63 = vsel %vm439_vm1, %v487_v61, 0.0 }
  0xd4   : > { %505 = vadd.xlane.f32.xlu1 %v504_v60  ;;  %508 = vadd.xlane.f32.xlu0 %v507_v63  ;;  %v510_v0 = vsel %vm439_vm1, %v488_v62, 0.0  ;;  %v549_v41 = vrot.slane %v7197_v28, %v7200_v31  ;;  %v561_v50 = vrot.slane %v438_v24, %v7206_v42 }
  0xd8   : > { %511 = vadd.xlane.f32.xlu1 %v510_v0 }
 0x155   : > { %v491_v10 = vpop.xlane.xlu0 %490 }
 0x156   : > { %v513_v11 = vmul.f32 0.015625, %v491_v10 }
 0x158   : > { %v521_v12 = vadd.f32 1e-06, %v513_v11 }
 0x159   : > { %v494_v13 = vpop.xlane.xlu1 %493  ;;  %v497_v14 = vpop.xlane.xlu0 %496 }
 0x15a   : > { %6602 = vrsqrt.f32 %v521_v12  ;;  %v514_v16 = vmul.f32 0.015625, %v494_v13  ;;  %v515_v17 = vmul.f32 0.015625, %v497_v14 }
 0x15c   : > { %v522_v18 = vadd.f32 1e-06, %v514_v16  ;;  %v523_v19 = vadd.f32 1e-06, %v515_v17 }
 0x15d   : > { %v500_v20 = vpop.xlane.xlu1 %499  ;;  %v503_v21 = vpop.xlane.xlu0 %502  ;;  %v582_v17 = vld [vmem:[%s7093_s0] ss:$8 sm:$0x3] }
 0x15e   : > { %6604 = vrsqrt.f32 %v522_v18  ;;  %v516_v23 = vmul.f32 0.015625, %v500_v20  ;;  %v517_v26 = vmul.f32 0.015625, %v503_v21  ;;  %v7225_v18 = vrot.slane %v582_v17, %v7206_v42 }
 0x15f   : > { %6606 = vrsqrt.f32 %v523_v19  ;;  %v591_v19 = vrot.slane %v582_v17, %v7200_v31 }
 0x160   : > { %v524_v25 = vadd.f32 1e-06, %v516_v23  ;;  %v525_v34 = vadd.f32 1e-06, %v517_v26 }
 0x161   : > { %v506_v27 = vpop.xlane.xlu1 %505  ;;  %v509_v36 = vpop.xlane.xlu0 %508 }
 0x162   : > { %6608 = vrsqrt.f32 %v524_v25  ;;  %v518_v32 = vmul.f32 0.015625, %v506_v27  ;;  %v519_v45 = vmul.f32 0.015625, %v509_v36 }
 0x164   : > { %v6603_v33 = vpop.eup %6602  ;;  %v526_v35 = vadd.f32 1e-06, %v518_v32  ;;  %v527_v54 = vadd.f32 1e-06, %v519_v45 }
 0x165   : > { %v512_v39 = vpop.xlane.xlu1 %511  ;;  %v537_v40 = vmul.f32 %v6603_v33, %v7138_v29 }
 0x166   : > { %6610 = vrsqrt.f32 %v526_v35  ;;  %v520_v43 = vmul.f32 0.015625, %v512_v39 }
 0x167   : > { %6612 = vrsqrt.f32 %v525_v34  ;;  %v550_v49 = vmul.f32 %v549_v41, %v537_v40 }
 0x168   : > { %v6605_v44 = vpop.eup %6604  ;;  %v528_v52 = vadd.f32 1e-06, %v520_v43 }
 0x169   : > { %v538_v46 = vmul.f32 %v6605_v44, %v7146_v37  ;;  %v6607_v51 = vpop.eup %6606  ;;  %v562_v55 = vadd.f32 %v561_v50, %v550_v49 }
 0x16a   : > { %v539_v59 = vmul.f32 %v6607_v51, %v7140_v30  ;;  %6614 = vrsqrt.f32 %v528_v52 }
 0x16b   : > { %v551_v53 = vmul.f32 %v549_v41, %v538_v46  ;;  %6616 = vrsqrt.f32 %v527_v54 }
 0x16c   : > { %v6609_v29 = vpop.eup %6608  ;;  %v552_v37 = vmul.f32 %v549_v41, %v539_v59 }
 0x16d   : > { %v563_v56 = vadd.f32 %v561_v50, %v551_v53  ;;  %v540_v60 = vmul.f32 %v6609_v29, %v7148_v38 }
 0x16e   : > { %v564_v3 = vadd.f32 %v561_v50, %v552_v37 }
 0x16f   : > { %v578_v61 = vpack.c.bf16 %v563_v56, %v562_v55  ;;  %v553_v62 = vmul.f32 %v549_v41, %v540_v60 }
 0x170   : > { %v6611_v63 = vpop.eup %6610 }
 0x171   : > { %5372 = vmatmul.mubr.msk.bf16.vlgmr.msra.gmra.mrb[0].mxu0 %vm439_vm1, %v578_v61  ;;  %v6613_v0 = vpop.eup %6612  ;;  %v565_v1 = vadd.f32 %v561_v50, %v553_v62  ;;  %v542_v2 = vmul.f32 %v6611_v63, %v7158_v48 }
 0x172   : > { %688 = vmatprep.mubr.bf16.mxu0 %v6941_v9  ;;  %v541_v4 = vmul.f32 %v6613_v0, %v7156_v47 }
 0x173   : > { %v579_v30 = vpack.c.bf16 %v565_v1, %v564_v3  ;;  %v555_v5 = vmul.f32 %v549_v41, %v542_v2 }
 0x174   : > { %v6615_v38 = vpop.eup %6614  ;;  %v554_v6 = vmul.f32 %v549_v41, %v541_v4 }
 0x175   : > { %v6617_v7 = vpop.eup %6616  ;;  %v567_v8 = vadd.f32 %v561_v50, %v555_v5  ;;  %v544_v10 = vmul.f32 %v6615_v38, %v7168_v58 }
 0x176   : > { %v566_v11 = vadd.f32 %v561_v50, %v554_v6  ;;  %v543_v12 = vmul.f32 %v6617_v7, %v7166_v57 }
 0x177   : > { %v557_v13 = vmul.f32 %v549_v41, %v544_v10 }
 0x178   : > { %v580_v48 = vpack.c.bf16 %v567_v8, %v566_v11  ;;  %v556_v47 = vmul.f32 %v549_v41, %v543_v12 }
 0x179   : > { %5373 = vmatmul.mubr.msk.bf16.gmra.mrb[4].mxu0 %vm439_vm1, %v579_v30  ;;  %v569_v14 = vadd.f32 %v561_v50, %v557_v13 }
 0x17a   : > { %698 = vmatprep.mubr.bf16.mxu0 %v6941_v9  ;;  %v568_v15 = vadd.f32 %v561_v50, %v556_v47 }
 0x17c   : > { %v581_v16 = vpack.c.bf16 %v569_v14, %v568_v15 }
 0x181   : > { %5374 = vmatmul.mubr.msk.bf16.gmra.mrb[8].mxu0 %vm439_vm1, %v580_v48 }
 0x182   : > { %708 = vmatprep.mubr.bf16.mxu0 %v6941_v9 }
 0x189   : > { %5375 = vmatmul.mubr.msk.bf16.gmra.mrb[12].mxu0 %vm439_vm1, %v581_v16 }
 0x244   : > { %v680_v58 = vpop.f32.mrb[0].mxu0 }
 0x245   : > { %v681_v57 = vadd.f32 %v680_v58, %v7225_v18  ;;  %v682_v20 = vpop.f32.mrb[1].mxu0 }
 0x246   : > { %v684_v21 = vpop.f32.mrb[2].mxu0  ;;  %v683_v26 = vadd.f32 %v682_v20, %v591_v19 }
 0x247   : > { %v7229_v23 = vmax.f32 %v681_v57, 0.0  ;;  %v685_v24 = vadd.f32 %v684_v21, %v7225_v18  ;;  %v686_v25 = vpop.f32.mrb[3].mxu0 }
 0x248   : > { %v687_v27 = vadd.f32 %v686_v25, %v591_v19 }
 0x249   : > { %v7232_v32 = vmax.f32 %v685_v24, 0.0  ;;  %745 = vrot.lane.b32.xlu0 %v7229_v23, %s6942_s30 }
 0x24a   : > { %v6394_v33 = vpack.i.bf16 %v687_v27, %v683_v26  ;;  %v6104_v34 = vpack.c.bf16 %v687_v27, %v683_v26 }
 0x24b   : > { %747 = vrot.lane.b32.xlu1 %v7232_v32, %s6942_s30 }
 0x24c   : > { %v690_v35 = vpop.f32.mrb[4].mxu0  ;;  %6105 = vmatprep.subr.bf16.mxu1 %v6104_v34 }
 0x24d   : > { %v691_v36 = vadd.f32 %v690_v35, %v7225_v18  ;;  %6107 = vmatpush3.bf16.msra.mxu1 %v6104_v34  ;;  %1239 = vrot.lane.b32.xlu0 %v7229_v23, %s6943_s23  ;;  %v692_v39 = vpop.f32.mrb[5].mxu0 }
 0x24e   : > { %v694_v40 = vpop.f32.mrb[6].mxu0  ;;  %v693_v43 = vadd.f32 %v692_v39, %v591_v19 }
 0x24f   : > { %1241 = vrot.lane.b32.xlu1 %v7232_v32, %s6943_s23  ;;  %v696_v41 = vpop.f32.mrb[7].mxu0  ;;  %v7243_v45 = vmax.f32 %v691_v36, 0.0  ;;  %v695_v51 = vadd.f32 %v694_v40, %v7225_v18 }
 0x250   : > { %v697_v44 = vadd.f32 %v696_v41, %v591_v19 }
 0x251   : > { %6395 = vrot.lane.b32.xlu0 %v6394_v33, %s6944_s25  ;;  %v7255_v60 = vmax.f32 %v695_v51, 0.0 }
 0x252   : > { %v6399_v46 = vpack.i.bf16 %v697_v44, %v693_v43  ;;  %v6108_v49 = vpack.c.bf16 %v697_v44, %v693_v43 }
 0x253   : > { %749 = vrot.lane.b32.xlu1 %v7243_v45, %s6942_s30 }
 0x254   : > { %v700_v50 = vpop.f32.mrb[8].mxu0  ;;  %6109 = vmatprep.subr.bf16.mxu1 %v6108_v49 }
 0x255   : > { %v701_v52 = vadd.f32 %v700_v50, %v7225_v18  ;;  %6111 = vmatpush3.bf16.msra.mxu1 %v6108_v49  ;;  %1243 = vrot.lane.b32.xlu0 %v7243_v45, %s6943_s23  ;;  %v702_v53 = vpop.f32.mrb[9].mxu0 }
 0x256   : > { %v704_v29 = vpop.f32.mrb[10].mxu0  ;;  %v703_v56 = vadd.f32 %v702_v53, %v591_v19  ;;  %v899_v53 = vsel %vm898_vm2, %v7229_v23, 0.0 }
 0x257   : > { %v7252_v54 = vmax.f32 %v701_v52, 0.0  ;;  %6400 = vrot.lane.b32.xlu1 %v6399_v46, %s6944_s25  ;;  %v706_v55 = vpop.f32.mrb[11].mxu0  ;;  %v705_v37 = vadd.f32 %v704_v29, %v7225_v18  ;;  %v900_v52 = vsel %vm898_vm2, %v7232_v32, 0.0  ;;  %v902_v29 = vsel %vm898_vm2, %v7243_v45, 0.0 }
 0x258   : > { %v707_v59 = vadd.f32 %v706_v55, %v591_v19  ;;  %v901_v55 = vadd.f32 %v900_v52, %v899_v53 }
 0x259   : > { %753 = vrot.lane.b32.xlu0 %v7252_v54, %s6942_s30  ;;  %v7267_v5 = vmax.f32 %v705_v37, 0.0 }
 0x25a   : > { %v6404_v61 = vpack.i.bf16 %v707_v59, %v703_v56  ;;  %v6112_v62 = vpack.c.bf16 %v707_v59, %v703_v56  ;;  %v1426_v56 = vsel %vm1424_vm3, %v7232_v32, 0.0  ;;  %v903_v59 = vadd.f32 %v902_v29, %v901_v55 }
 0x25b   : > { %751 = vrot.lane.b32.xlu1 %v7255_v60, %s6942_s30 }
 0x25c   : > { %v710_v63 = vpop.f32.mrb[12].mxu0  ;;  %6113 = vmatprep.subr.bf16.mxu1 %v6112_v62 }
 0x25d   : > { %6115 = vmatpush3.bf16.msra.mxu1 %v6112_v62  ;;  %1247 = vrot.lane.b32.xlu0 %v7252_v54, %s6943_s23  ;;  %v712_v0 = vpop.f32.mrb[13].mxu0  ;;  %v711_v2 = vadd.f32 %v710_v63, %v7225_v18  ;;  %v1428_v62 = vsel %vm1424_vm3, %v7243_v45, 0.0  ;;  %v904_v63 = vsel %vm898_vm2, %v7255_v60, 0.0 }
 0x25e   : > { %v714_v1 = vpop.f32.mrb[14].mxu0  ;;  %v713_v4 = vadd.f32 %v712_v0, %v591_v19  ;;  %v906_v0 = vsel %vm898_vm2, %v7252_v54, 0.0 }
 0x25f   : > { %1245 = vrot.lane.b32.xlu1 %v7255_v60, %s6943_s23  ;;  %v716_v3 = vpop.f32.mrb[15].mxu0  ;;  %v7270_v7 = vmax.f32 %v711_v2, 0.0  ;;  %v715_v8 = vadd.f32 %v714_v1, %v7225_v18  ;;  %v905_v2 = vadd.f32 %v904_v63, %v903_v59 }
 0x260   : > { %v717_v30 = vadd.f32 %v716_v3, %v591_v19  ;;  %v1430_v3 = vsel %vm1424_vm3, %v7255_v60, 0.0 }
 0x261   : > { %6405 = vrot.lane.b32.xlu0 %v6404_v61, %s6944_s25  ;;  %v7279_v10 = vmax.f32 %v715_v8, 0.0  ;;  %v1425_v61 = vsel %vm1424_vm3, %v7229_v23, 0.0  ;;  %v910_v8 = vsel %vm898_vm2, %v7270_v7, 0.0 }
 0x262   : > { %v6409_v38 = vpack.i.bf16 %v717_v30, %v713_v4  ;;  %v6116_v6 = vpack.c.bf16 %v717_v30, %v713_v4  ;;  %v1427_v37 = vadd.f32 %v1426_v56, %v1425_v61  ;;  %v907_v4 = vadd.f32 %v906_v0, %v905_v2 }
 0x263   : > { %755 = vrot.lane.b32.xlu1 %v7267_v5, %s6942_s30  ;;  %v1432_v30 = vsel %vm1424_vm3, %v7252_v54, 0.0 }
 0x264   : > { %6117 = vmatprep.subr.bf16.mxu1 %v6116_v6  ;;  %v1429_v1 = vadd.f32 %v1428_v62, %v1427_v37 }
 0x265   : > { %6119 = vmatpush3.bf16.msra.mxu1 %v6116_v6  ;;  %757 = vrot.lane.b32.xlu0 %v7270_v7, %s6942_s30 }
 0x266   : > { %v1431_v6 = vadd.f32 %v1430_v3, %v1429_v1 }
 0x267   : > { %1249 = vrot.lane.b32.xlu1 %v7267_v5, %s6943_s23 }
 0x269   : > { %1251 = vrot.lane.b32.xlu0 %v7270_v7, %s6943_s23 }
 0x26b   : > { %759 = vrot.lane.b32.xlu1 %v7279_v10, %s6942_s30 }
 0x26f   : > { %6410 = vrot.lane.b32.xlu1 %v6409_v38, %s6944_s25  ;;  %v908_v38 = vsel %vm898_vm2, %v7267_v5, 0.0 }
 0x273   : > { %1253 = vrot.lane.b32.xlu1 %v7279_v10, %s6943_s23 }
 0x2bb   : > { %v746_v11 = vpop.permute.xlu0 %745 }
 0x2bc   : > { %769 = vxpose.xlu0.b32.start [1/8] (short) (narrow) %v746_v11, 32  ;;  %v1433_v11 = vadd.f32 %v1432_v30, %v1431_v6 }
 0x2bd   : > { %v748_v12 = vpop.permute.xlu1 %747 }
 0x2bf   : > { %v1240_v48 = vpop.permute.xlu0 %1239 }
 0x2c0   : > { %770 = vxpose.xlu0.b32.cont [2/8] (short) (narrow) %v748_v12, 32  ;;  %1263 = vxpose.xlu1.b32.start [1/8] (short) (narrow) %v1240_v48, 32  ;;  %v909_v12 = vadd.f32 %v908_v38, %v907_v4  ;;  %v1434_v48 = vsel %vm1424_vm3, %v7267_v5, 0.0 }
 0x2c1   : > { %v1242_v13 = vpop.permute.xlu1 %1241 }
 0x2c3   : > { %v6396_v47 = vpop.permute.xlu0 %6395 }
 0x2c4   : > { %v6398_v14 = vunpack.i.h.bf16 %v6396_v47  ;;  %v6397_v15 = vunpack.i.l.bf16 %v6396_v47  ;;  %1264 = vxpose.xlu1.b32.cont [2/8] (short) (narrow) %v1242_v13, 32  ;;  %v911_v13 = vadd.f32 %v910_v8, %v909_v12  ;;  %v1436_v47 = vsel %vm1424_vm3, %v7270_v7, 0.0 }
 0x2c5   : > { %v750_v16 = vpop.permute.xlu1 %749 }
 0x2c6   : > { %771 = vxpose.xlu0.b32.cont [3/8] (short) (narrow) %v750_v16, 32  ;;  %v6128_v17 = vpack.c.bf16 %v6398_v14, %v6397_v15  ;;  %v912_v14 = vsel %vm898_vm2, %v7279_v10, 0.0  ;;  %v1435_v15 = vadd.f32 %v1434_v48, %v1433_v11 }
 0x2c7   : > { %v1244_v18 = vpop.permute.xlu0 %1243 }
 0x2c8   : > { %1265 = vxpose.xlu1.b32.cont [3/8] (short) (narrow) %v1244_v18, 32  ;;  %6129 = vmatprep.subr.bf16.mxu0 %v6128_v17  ;;  %v1437_v16 = vadd.f32 %v1436_v47, %v1435_v15  ;;  %v1438_v18 = vsel %vm1424_vm3, %v7279_v10, 0.0 }
 0x2c9   : > { %v6401_v58 = vpop.permute.xlu1 %6400  ;;  %6131 = vmatpush3.bf16.msra.mxu0 %v6128_v17  ;;  %v913_v17 = vadd.f32 %v912_v14, %v911_v13 }
 0x2ca   : > { %v6403_v19 = vunpack.i.h.bf16 %v6401_v58  ;;  %v6402_v57 = vunpack.i.l.bf16 %v6401_v58  ;;  %v1439_v58 = vadd.f32 %v1438_v18, %v1437_v16 }
 0x2cb   : > { %v754_v20 = vpop.permute.xlu0 %753 }
 0x2cc   : > { %v6132_v21 = vpack.c.bf16 %v6403_v19, %v6402_v57  ;;  %v914_v19 = vrot.slane %v913_v17, 4  ;;  %v1440_v57 = vrot.slane %v1439_v58, 4 }
 0x2cd   : > { %v752_v24 = vpop.permute.xlu1 %751 }
 0x2ce   : > { %772 = vxpose.xlu0.b32.cont [4/8] (short) (narrow) %v752_v24, 32  ;;  %6133 = vmatprep.subr.bf16.mxu0 %v6132_v21 }
 0x2cf   : > { %v1248_v25 = vpop.permute.xlu0 %1247  ;;  %6135 = vmatpush3.bf16.msra.mxu0 %v6132_v21  ;;  %v1441_v21 = vadd.f32 %v1440_v57, %v1439_v58 }
 0x2d1   : > { %v1246_v26 = vpop.permute.xlu1 %1245 }
 0x2d2   : > { %1266 = vxpose.xlu1.b32.cont [4/8] (short) (narrow) %v1246_v26, 32  ;;  %773 = vxpose.xlu0.b32.cont [5/8] (short) (narrow) %v754_v20, 32  ;;  %v915_v20 = vadd.f32 %v914_v19, %v913_v17 }
 0x2d3   : > { %v6406_v27 = vpop.permute.xlu0 %6405 }
 0x2d4   : > { %v6408_v33 = vunpack.i.h.bf16 %v6406_v27  ;;  %v6407_v34 = vunpack.i.l.bf16 %v6406_v27  ;;  %v916_v24 = vrot.slane %v915_v20, 2 }
 0x2d5   : > { %v756_v35 = vpop.permute.xlu1 %755 }
 0x2d6   : > { %774 = vxpose.xlu0.b32.cont [6/8] (short) (narrow) %v756_v35, 32  ;;  %1267 = vxpose.xlu1.b32.cont [5/8] (short) (narrow) %v1248_v25, 32  ;;  %v6136_v36 = vpack.c.bf16 %v6408_v33, %v6407_v34  ;;  %v1442_v25 = vrot.slane %v1441_v21, 2  ;;  %v917_v26 = vadd.f32 %v916_v24, %v915_v20 }
 0x2d7   : > { %v758_v39 = vpop.permute.xlu0 %757 }
 0x2d8   : > { %6137 = vmatprep.subr.bf16.mxu0 %v6136_v36  ;;  %v1443_v27 = vadd.f32 %v1442_v25, %v1441_v21  ;;  %v918_v33 = vrot.slane %v917_v26, 1 }
 0x2d9   : > { %v1250_v40 = vpop.permute.xlu1 %1249  ;;  %6139 = vmatpush3.bf16.msra.mxu0 %v6136_v36 }
 0x2da   : > { %1268 = vxpose.xlu1.b32.cont [6/8] (short) (narrow) %v1250_v40, 32  ;;  %775 = vxpose.xlu0.b32.cont [7/8] (short) (narrow) %v758_v39, 32  ;;  %v1444_v34 = vrot.slane %v1443_v27, 1  ;;  %v919_v35 = vadd.f32 %v918_v33, %v917_v26 }
 0x2db   : > { %v1252_v41 = vpop.permute.xlu0 %1251 }
 0x2dc   : > { %v1445_v36 = vadd.f32 %v1444_v34, %v1443_v27 }
 0x2dd   : > { %v760_v43 = vpop.permute.xlu1 %759 }
 0x2de   : > { %776 = vxpose.xlu0.b32.end [8/8] (short) (narrow) %v760_v43, 32  ;;  %1269 = vxpose.xlu1.b32.cont [7/8] (short) (narrow) %v1252_v41, 32 }
 0x2e1   : > { %v6411_v44 = vpop.permute.xlu1 %6410 }
 0x2e2   : > { %v6413_v46 = vunpack.i.h.bf16 %v6411_v44  ;;  %v6412_v49 = vunpack.i.l.bf16 %v6411_v44 }
 0x2e4   : > { %v6140_v50 = vpack.c.bf16 %v6413_v46, %v6412_v49 }
 0x2e5   : > { %v1254_v51 = vpop.permute.xlu1 %1253 }
 0x2e6   : > { %1270 = vxpose.xlu1.b32.end [8/8] (short) (narrow) %v1254_v51, 32  ;;  %6141 = vmatprep.subr.bf16.mxu0 %v6140_v50 }
 0x2e7   : > { %6143 = vmatpush3.bf16.msra.mxu0 %v6140_v50 }
 0x304   : > { %1448 = vrot.lane.b32.xlu1 %v7232_v32, %s6944_s25 }
 0x305   : > { %6534 = vset.pattern.permute.xlu1 %v6941_v9 }
 0x307   : > { %1446 = vrot.lane.b32.xlu0 %v7229_v23, %s6944_s25 }
 0x308   : > { %1452 = vrot.lane.b32.xlu1 %v7255_v60, %s6944_s25  ;;  %6535 = vset.pattern.permute.xlu0 %v6941_v9 }
 0x30b   : > { %1450 = vrot.lane.b32.xlu0 %v7243_v45, %s6944_s25 }
 0x30c   : > { %1456 = vrot.lane.b32.xlu1 %v7267_v5, %s6944_s25 }
 0x30f   : > { %1454 = vrot.lane.b32.xlu0 %v7252_v54, %s6944_s25 }
 0x310   : > { %1460 = vrot.lane.b32.xlu1 %v7279_v10, %s6944_s25 }
 0x313   : > { %1458 = vrot.lane.b32.xlu0 %v7270_v7, %s6944_s25 }
 0x314   : > { %1043 = vrot.lane.b32.xlu1 %v919_v35, %s6942_s30  ;;  %v6554_v35 = vld [vmem:[%s7088_s12 + $0x40] ss:$24 sps:$4 sm:$0xff]  }
 0x317   : > { %1584 = vrot.lane.b32.xlu0 %v1445_v36, %s6942_s30  ;;  %v6555_v36 = vld [vmem:[%s7088_s12 + $0x70] ss:$24 sps:$4 sm:$0xff]  }
 0x342   : > { %v785_v39 = vpop.trf.xlu0 }
 0x343   : > { %5748 = vmatprep.mubr.msk.f32.mxu1 %vm439_vm1, %v785_v39  ;;  %v6556_v39 = vld [vmem:[%s7088_s12 + $0xa0] ss:$24 sps:$4 sm:$0xff]  }
 0x346   : > { %v786_v40 = vpop.trf.xlu0 }
 0x347   : > { %5749 = vmatmul.mubr.msk.f32.vlgmr.msra.gmra.mrb[0].mxu1 %vm439_vm1, %v786_v40 }
 0x34a   : > { %v1279_v41 = vpop.trf.xlu1  ;;  %v787_v43 = vpop.trf.xlu0 }
 0x34b   : > { %5751 = vmatprep.mubr.msk.f32.mxu1 %vm439_vm1, %v787_v43  ;;  %5802 = vmatprep.mubr.msk.f32.mxu0 %vm439_vm1, %v1279_v41  ;;  %v6557_v41 = vld [vmem:[%s7088_s12 + $0x10] ss:$24 sps:$4 sm:$0xff]  }
 0x34e   : > { %v1280_v44 = vpop.trf.xlu1  ;;  %v788_v46 = vpop.trf.xlu0 }
 0x34f   : > { %5752 = vmatmul.mubr.msk.f32.gmra.mrb[2].mxu1 %vm439_vm1, %v788_v46  ;;  %5803 = vmatmul.mubr.msk.f32.vlgmr.msra.gmra.mrb[16].mxu0 %vm439_vm1, %v1280_v44 }
 0x350   : > { %5762 = vmatprep.mubr.msk.f32.mxu1 %vm920_vm4, %v7229_v23 }
 0x352   : > { %v1281_v49 = vpop.trf.xlu1 }
 0x353   : > { %5805 = vmatprep.mubr.msk.f32.mxu0 %vm439_vm1, %v1281_v49 }
 0x356   : > { %v1282_v50 = vpop.trf.xlu1 }
 0x357   : > { %5806 = vmatmul.mubr.msk.f32.gmra.mrb[18].mxu0 %vm439_vm1, %v1282_v50 }
 0x376   : > { %v7367_v0 = vpop.permute.xlu1 %1448 }
 0x379   : > { %v1447_v51 = vpop.permute.xlu0 %1446 }
 0x37a   : > { %5816 = vmatprep.mubr.msk.f32.mxu0 %vm920_vm4, %v1447_v51  ;;  %v7373_v2 = vpop.permute.xlu1 %1452 }
 0x37d   : > { %v7351_v52 = vpop.permute.xlu0 %1450 }
 0x37e   : > { %v7377_v4 = vpop.permute.xlu1 %1456 }
 0x381   : > { %v7353_v53 = vpop.permute.xlu0 %1454 }
 0x382   : > { %v7379_v30 = vpop.permute.xlu1 %1460 }
 0x385   : > { %v7355_v29 = vpop.permute.xlu0 %1458 }
 0x386   : > { %v1044_v38 = vpop.permute.xlu1 %1043 }
 0x387   : > { %v1046_v6 = vmul.f32 %v1044_v38, %v7229_v23  ;;  %v1048_v11 = vmul.f32 %v1044_v38, %v7243_v45  ;;  %v1049_v48 = vmul.f32 %v1044_v38, %v7255_v60  ;;  %v1050_v47 = vmul.f32 %v1044_v38, %v7252_v54 }
 0x388   : > { %v1047_v14 = vmul.f32 %v1044_v38, %v7232_v32  ;;  %v1051_v17 = vmul.f32 %v1044_v38, %v7267_v5  ;;  %v1053_v19 = vmul.f32 %v1044_v38, %v7279_v10 }
 0x389   : > { %v1585_v55 = vpop.permute.xlu0 %1584  ;;  %v1054_v8 = vsel %vm920_vm4, %v1046_v6, 0.0  ;;  %v1060_v12 = vsel %vm920_vm4, %v1048_v11, 0.0  ;;  %v1063_v13 = vsel %vm920_vm4, %v1049_v48, 0.0  ;;  %v1066_v15 = vsel %vm920_vm4, %v1050_v47, 0.0  ;;  %v6558_v48 = vld [vmem:[%s7088_s12 + $0x8] ss:$24 sps:$4 sm:$0xff]  }
 0x38a   : > { %v1588_v56 = vmul.f32 %v1585_v55, %v7232_v32  ;;  %v1587_v59 = vmul.f32 %v1585_v55, %v7229_v23  ;;  %v1590_v61 = vmul.f32 %v1585_v55, %v7255_v60  ;;  %v1589_v62 = vmul.f32 %v1585_v55, %v7243_v45  ;;  %v6560_v47 = vld [vmem:[%s7088_s12 + $0x34] ss:$24 sps:$4 sm:$0xff]  }
 0x38b   : > { %v1592_v63 = vmul.f32 %v1585_v55, %v7267_v5  ;;  %v1591_v37 = vmul.f32 %v1585_v55, %v7252_v54  ;;  %v1593_v1 = vmul.f32 %v1585_v55, %v7270_v7  ;;  %v1594_v3 = vmul.f32 %v1585_v55, %v7279_v10 }
 0x38c   : > { %1605 = vrot.lane.b32.xlu1 %v1588_v56, %s6944_s25  ;;  %1603 = vrot.lane.b32.xlu0 %v1587_v59, %s6944_s25  ;;  %v1052_v23 = vmul.f32 %v1044_v38, %v7270_v7  ;;  %v1057_v16 = vsel %vm920_vm4, %v1047_v14, 0.0  ;;  %v1069_v58 = vsel %vm920_vm4, %v1051_v17, 0.0  ;;  %v1075_v57 = vsel %vm920_vm4, %v1053_v19, 0.0  ;;  %v6564_v14 = vld [vmem:[%s7088_s12 + $0x64] ss:$24 sps:$4 sm:$0xff]  }
 0x38d   : > { %v6569_v17 = vld [vmem:[%s7088_s12 + $0x98] ss:$24 sps:$4 sm:$0xff]  }
 0x38e   : > { %v1072_v18 = vsel %vm920_vm4, %v1052_v23, 0.0  ;;  %v6567_v23 = vld [vmem:[%s7088_s12 + $0x94] ss:$24 sps:$4 sm:$0xff]  }
 0x390   : > { %1609 = vrot.lane.b32.xlu1 %v1590_v61, %s6944_s25  ;;  %1607 = vrot.lane.b32.xlu0 %v1589_v62, %s6944_s25 }
 0x394   : > { %1613 = vrot.lane.b32.xlu1 %v1592_v63, %s6944_s25  ;;  %1611 = vrot.lane.b32.xlu0 %v1591_v37, %s6944_s25 }
 0x398   : > { %1615 = vrot.lane.b32.xlu1 %v1593_v1, %s6944_s25 }
 0x39c   : > { %1617 = vrot.lane.b32.xlu1 %v1594_v3, %s6944_s25 }
 0x3b3   : > { %1055 = vadd.xlane.f32.xlu0 %v1054_v8 }
 0x3b7   : > { %1061 = vadd.xlane.f32.xlu0 %v1060_v12 }
 0x3bb   : > { %1064 = vadd.xlane.f32.xlu0 %v1063_v13  ;;  %v6562_v13 = vld [vmem:[%s7088_s12 + $0x4] ss:$24 sps:$4 sm:$0xff]  }
 0x3bf   : > { %1067 = vadd.xlane.f32.xlu0 %v1066_v15  ;;  %v6563_v15 = vld [vmem:[%s7088_s12 + $0x38] ss:$24 sps:$4 sm:$0xff]  }
 0x3c0   : > { %1058 = vadd.xlane.f32.xlu1 %v1057_v16  ;;  %v6566_v16 = vld [vmem:[%s7088_s12 + $0x68] ss:$24 sps:$4 sm:$0xff]  }
 0x3c3   : > { %1073 = vadd.xlane.f32.xlu0 %v1072_v18 }
 0x3c4   : > { %1070 = vadd.xlane.f32.xlu1 %v1069_v58 }
 0x3c8   : > { %1076 = vadd.xlane.f32.xlu1 %v1075_v57 }
 0x3fe   : > { %v1606_v20 = vpop.permute.xlu1 %1605  ;;  %v1604_v21 = vpop.permute.xlu0 %1603 }
 0x3ff   : > { %v1630_v24 = vsel %vm920_vm4, %v1606_v20, 0.0  ;;  %v1627_v25 = vsel %vm920_vm4, %v1604_v21, 0.0 }
 0x400   : > { %1631 = vadd.xlane.f32.xlu1 %v1630_v24  ;;  %1628 = vadd.xlane.f32.xlu0 %v1627_v25 }
 0x402   : > { %v1608_v26 = vpop.permute.xlu0 %1607  ;;  %v1610_v33 = vpop.permute.xlu1 %1609 }
 0x403   : > { %v1633_v27 = vsel %vm920_vm4, %v1608_v26, 0.0  ;;  %v1636_v34 = vsel %vm920_vm4, %v1610_v33, 0.0 }
 0x404   : > { %1634 = vadd.xlane.f32.xlu0 %v1633_v27 }
 0x408   : > { %1637 = vadd.xlane.f32.xlu0 %v1636_v34 }
 0x411   : > { %1118 = vrot.lane.b32.xlu1 %v6554_v35, %s6942_s30 }
 0x415   : > { %1689 = vrot.lane.b32.xlu1 %v6555_v36, %s6942_s30 }
 0x419   : > { %1691 = vrot.lane.b32.xlu1 %v6556_v39, %s6942_s30 }
 0x41a   : > { %v5750_v40 = vpop.f32.mrb[0].mxu1 }
 0x41b   : > { %v879_v43 = vpop.f32.mrb[1].mxu1 }
 0x41c   : > { %v6120_v44 = vpack.c.bf16 %v5750_v40, %v879_v43 }
 0x41e   : > { %6121 = vmatprep.subr.bf16.mxu1 %v6120_v44  ;;  %1116 = vrot.lane.b32.xlu0 %v6557_v41, %s6942_s30 }
 0x41f   : > { %6123 = vmatpush3.bf16.msra.mxu1 %v6120_v44 }
 0x422   : > { %v5753_v46 = vpop.f32.mrb[2].mxu1  ;;  %v5804_v49 = vpop.f32.mrb[16].mxu0 }
 0x423   : > { %v889_v50 = vpop.f32.mrb[3].mxu1  ;;  %v1405_v51 = vpop.f32.mrb[17].mxu0 }
 0x424   : > { %v6124_v55 = vpack.c.bf16 %v5753_v46, %v889_v50  ;;  %v6144_v56 = vpack.c.bf16 %v5804_v49, %v1405_v51 }
 0x426   : > { %6125 = vmatprep.subr.bf16.mxu1 %v6124_v55  ;;  %6145 = vmatprep.subr.bf16.mxu0 %v6144_v56 }
 0x427   : > { %6127 = vmatpush3.bf16.msra.mxu1 %v6124_v55  ;;  %6147 = vmatpush3.bf16.msra.mxu0 %v6144_v56 }
 0x42a   : > { %5763 = vmatmul.mubr.msk.f32.vlgmr.msra.gmra.mrb[4].mxu1 %vm920_vm4, %v7232_v32  ;;  %v5807_v59 = vpop.f32.mrb[18].mxu0  ;;  %v1614_v32 = vpop.permute.xlu1 %1613 }
 0x42b   : > { %5765 = vmatprep.mubr.msk.f32.mxu1 %vm920_vm4, %v7243_v45  ;;  %v1415_v61 = vpop.f32.mrb[19].mxu0  ;;  %v1612_v45 = vpop.permute.xlu0 %1611 }
 0x42c   : > { %v6148_v62 = vpack.c.bf16 %v5807_v59, %v1415_v61 }
 0x42e   : > { %5766 = vmatmul.mubr.msk.f32.gmra.mrb[6].mxu1 %vm920_vm4, %v7255_v60  ;;  %6149 = vmatprep.subr.bf16.mxu0 %v6148_v62  ;;  %v1642_v60 = vsel %vm920_vm4, %v1614_v32, 0.0 }
 0x42f   : > { %5768 = vmatprep.mubr.msk.f32.mxu1 %vm920_vm4, %v7252_v54  ;;  %6151 = vmatpush3.bf16.msra.mxu0 %v6148_v62  ;;  %v1616_v54 = vpop.permute.xlu1 %1615 }
 0x432   : > { %5769 = vmatmul.mubr.msk.f32.gmra.mrb[8].mxu1 %vm920_vm4, %v7267_v5  ;;  %5817 = vmatmul.mubr.msk.f32.vlgmr.msra.gmra.mrb[20].mxu0 %vm920_vm4, %v7367_v0  ;;  %v1639_v5 = vsel %vm920_vm4, %v1612_v45, 0.0 }
 0x433   : > { %5771 = vmatprep.mubr.msk.f32.mxu1 %vm920_vm4, %v7270_v7  ;;  %5819 = vmatprep.mubr.msk.f32.mxu0 %vm920_vm4, %v7351_v52  ;;  %v1645_v7 = vsel %vm920_vm4, %v1616_v54, 0.0 }
 0x436   : > { %5772 = vmatmul.mubr.msk.f32.gmra.mrb[10].mxu1 %vm920_vm4, %v7279_v10  ;;  %5820 = vmatmul.mubr.msk.f32.gmra.mrb[22].mxu0 %vm920_vm4, %v7373_v2  ;;  %v1618_v10 = vpop.permute.xlu1 %1617 }
 0x437   : > { %5822 = vmatprep.mubr.msk.f32.mxu0 %vm920_vm4, %v7353_v53  ;;  %v1648_v52 = vsel %vm920_vm4, %v1618_v10, 0.0 }
 0x43a   : > { %5823 = vmatmul.mubr.msk.f32.gmra.mrb[24].mxu0 %vm920_vm4, %v7377_v4 }
 0x43b   : > { %5825 = vmatprep.mubr.msk.f32.mxu0 %vm920_vm4, %v7355_v29 }
 0x43d   : > { %1643 = vadd.xlane.f32.xlu1 %v1642_v60  ;;  %1640 = vadd.xlane.f32.xlu0 %v1639_v5 }
 0x43e   : > { %5826 = vmatmul.mubr.msk.f32.gmra.mrb[26].mxu0 %vm920_vm4, %v7379_v30 }
 0x440   : > { %v1056_v53 = vpop.xlane.xlu0 %1055 }
 0x441   : > { %1646 = vadd.xlane.f32.xlu0 %v1645_v7  ;;  %v1078_v58 = vadd.f32 1e-15, %v1056_v53 }
 0x444   : > { %v1062_v63 = vpop.xlane.xlu0 %1061 }
 0x445   : > { %1649 = vadd.xlane.f32.xlu0 %v1648_v52  ;;  %v1080_v57 = vadd.f32 1e-15, %v1062_v63 }
 0x448   : > { %v1065_v37 = vpop.xlane.xlu0 %1064 }
 0x449   : > { %v1081_v19 = vadd.f32 1e-15, %v1065_v37 }
 0x44c   : > { %v1068_v29 = vpop.xlane.xlu0 %1067 }
 0x44d   : > { %v1059_v0 = vpop.xlane.xlu1 %1058  ;;  %v1082_v21 = vadd.f32 1e-15, %v1068_v29 }
 0x44e   : > { %2078 = vrot.lane.b32.xlu1 %v6558_v48, %s6942_s30  ;;  %v1079_v18 = vadd.f32 1e-15, %v1059_v0 }
 0x450   : > { %v1074_v1 = vpop.xlane.xlu0 %1073  ;;  %6618 = vrcp.f32 %v1079_v18 }
 0x451   : > { %v1071_v2 = vpop.xlane.xlu1 %1070  ;;  %6620 = vrcp.f32 %v1078_v58  ;;  %v1084_v33 = vadd.f32 1e-15, %v1074_v1 }
 0x452   : > { %2080 = vrot.lane.b32.xlu1 %v6560_v47, %s6942_s30  ;;  %v1083_v24 = vadd.f32 1e-15, %v1071_v2  ;;  %6622 = vrcp.f32 %v1081_v19 }
 0x453   : > { %6624 = vrcp.f32 %v1080_v57 }
 0x454   : > { %6626 = vrcp.f32 %v1082_v21 }
 0x455   : > { %v1077_v4 = vpop.xlane.xlu1 %1076  ;;  %6628 = vrcp.f32 %v1083_v24 }
 0x456   : > { %2082 = vrot.lane.b32.xlu1 %v6563_v15, %s6942_s30  ;;  %v1085_v34 = vadd.f32 1e-15, %v1077_v4 }
 0x45a   : > { %2086 = vrot.lane.b32.xlu1 %v6566_v16, %s6942_s30  ;;  %v6619_v41 = vpop.eup %6618 }
 0x45b   : > { %2076 = vrot.lane.b32.xlu0 %v6562_v13, %s6942_s30  ;;  %v6621_v44 = vpop.eup %6620 }
 0x45c   : > { %v6623_v59 = vpop.eup %6622 }
 0x45d   : > { %v6625_v32 = vpop.eup %6624 }
 0x45e   : > { %2090 = vrot.lane.b32.xlu1 %v6569_v17, %s6942_s30  ;;  %v6627_v60 = vpop.eup %6626 }
 0x45f   : > { %2084 = vrot.lane.b32.xlu0 %v6564_v14, %s6942_s30  ;;  %v6629_v10 = vpop.eup %6628 }
 0x463   : > { %2088 = vrot.lane.b32.xlu0 %v6567_v23, %s6942_s30 }
 0x48d   : > { %v1629_v3 = vpop.xlane.xlu0 %1628  ;;  %v1632_v38 = vpop.xlane.xlu1 %1631 }
 0x48e   : > { %v1652_v26 = vadd.f32 1e-15, %v1632_v38  ;;  %v1651_v27 = vadd.f32 1e-15, %v1629_v3 }
 0x490   : > { %6630 = vrcp.f32 %v1652_v26 }
 0x491   : > { %v1635_v30 = vpop.xlane.xlu0 %1634  ;;  %v7441_v8 = vpop.permute.xlu1 %1118  ;;  %6632 = vrcp.f32 %v1651_v27 }
 0x492   : > { %v1653_v39 = vadd.f32 1e-15, %v1635_v30  ;;  %6634 = vrcp.f32 %v1084_v33 }
 0x493   : > { %6636 = vrcp.f32 %v1085_v34 }
 0x495   : > { %v1638_v6 = vpop.xlane.xlu0 %1637  ;;  %v7448_v12 = vpop.permute.xlu1 %1689 }
 0x496   : > { %v1654_v36 = vadd.f32 1e-15, %v1638_v6 }
 0x498   : > { %6638 = vrcp.f32 %v1654_v36 }
 0x499   : > { %v7443_v11 = vpop.permute.xlu0 %1116  ;;  %v7468_v25 = vpop.permute.xlu1 %1691  ;;  %6640 = vrcp.f32 %v1653_v39 }
 0x49a   : > { %5774 = vmatprep.subr.bf16.mxu1 %v7443_v11  ;;  %v6631_v53 = vpop.eup %6630 }
 0x49b   : > { %5775 = vmatpush3.bf16.msra.mxu1 %v7443_v11  ;;  %v6633_v0 = vpop.eup %6632 }
 0x49c   : > { %5776 = vmatprep.subr.bf16.mxu1 %v7441_v8  ;;  %v6635_v30 = vpop.eup %6634 }
 0x49d   : > { %v6637_v48 = vpop.eup %6636 }
 0x49f   : > { %5777 = vmatpush3.bf16.msra.mxu1 %v7441_v8 }
 0x4a0   : > { %5828 = vmatprep.subr.bf16.mxu1 %v7448_v12 }
 0x4a2   : > { %v6639_v13 = vpop.eup %6638 }
 0x4a3   : > { %v6641_v16 = vpop.eup %6640 }
 0x4ca   : > { %v1641_v20 = vpop.xlane.xlu0 %1640  ;;  %v1644_v40 = vpop.xlane.xlu1 %1643 }
 0x4cb   : > { %v1656_v50 = vadd.f32 1e-15, %v1644_v40  ;;  %v1655_v55 = vadd.f32 1e-15, %v1641_v20 }
 0x4cd   : > { %6642 = vrcp.f32 %v1656_v50 }
 0x4ce   : > { %v1647_v35 = vpop.xlane.xlu0 %1646  ;;  %6644 = vrcp.f32 %v1655_v55 }
 0x4cf   : > { %v1657_v52 = vadd.f32 1e-15, %v1647_v35 }
 0x4d2   : > { %v1650_v56 = vpop.xlane.xlu0 %1649 }
 0x4d3   : > { %v1658_v5 = vadd.f32 1e-15, %v1650_v56 }
 0x4d5   : > { %6646 = vrcp.f32 %v1658_v5 }
 0x4d6   : > { %6648 = vrcp.f32 %v1657_v52  ;;  %v2077_v55 = vpop.permute.xlu0 %2076 }
 0x4d7   : > { %v6643_v21 = vpop.eup %6642 }
 0x4d8   : > { %v6645_v33 = vpop.eup %6644 }
 0x4df   : > { %v6647_v39 = vpop.eup %6646 }
 0x4fd   : > { %v5764_v43 = vpop.f32.mrb[4].mxu1 }
 0x4fe   : > { %v1089_v46 = vmul.f32 %v6619_v41, %v5764_v43  ;;  %v1003_v49 = vpop.f32.mrb[5].mxu1  ;;  %v6649_v43 = vpop.eup %6648 }
 0x4ff   : > { %v1087_v51 = vmul.f32 %v6621_v44, %v1003_v49 }
 0x501   : > { %v1102_v61 = vpack.c.bf16 %v1089_v46, %v1087_v51  ;;  %v5767_v62 = vpop.f32.mrb[6].mxu1  ;;  %v2079_v51 = vpop.permute.xlu1 %2078 }
 0x502   : > { %v1093_v45 = vmul.f32 %v6623_v59, %v5767_v62  ;;  %v1013_v54 = vpop.f32.mrb[7].mxu1  ;;  %v2093_v56 = vsel %vm439_vm1, %v2077_v55, %v2079_v51 }
 0x503   : > { %v1091_v7 = vmul.f32 %v6625_v32, %v1013_v54  ;;  %5778 = vmatprep.mubr.msk.bf16.mxu1 %vm920_vm4, %v1102_v61  ;;  %v2085_v32 = vpop.permute.xlu0 %2084 }
 0x505   : > { %v1103_v63 = vpack.c.bf16 %v1093_v45, %v1091_v7  ;;  %v5770_v37 = vpop.f32.mrb[8].mxu1  ;;  %v5818_v29 = vpop.f32.mrb[20].mxu0 }
 0x506   : > { %v1097_v1 = vmul.f32 %v6629_v10, %v5770_v37  ;;  %v1662_v2 = vmul.f32 %v6631_v53, %v5818_v29  ;;  %v1023_v3 = vpop.f32.mrb[9].mxu1  ;;  %v1544_v4 = vpop.f32.mrb[21].mxu0 }
 0x507   : > { %v1095_v38 = vmul.f32 %v6627_v60, %v1023_v3  ;;  %v1660_v6 = vmul.f32 %v6633_v0, %v1544_v4  ;;  %5779 = vmatmul.mubr.msk.bf16.vlgmr.msra.gmra.mrb[12].mxu1 %vm920_vm4, %v1103_v63  ;;  %v2081_v59 = vpop.permute.xlu1 %2080  ;;  %v2089_v60 = vpop.permute.xlu0 %2088  ;;  %v6571_v3 = vld [vmem:[%s7078_s15 + $0x8] sm:$0xff]  }
 0x508   : > { %5829 = vmatpush3.bf16.msra.mxu1 %v7448_v12 }
 0x509   : > { %v1104_v47 = vpack.c.bf16 %v1097_v1, %v1095_v38  ;;  %v1675_v14 = vpack.c.bf16 %v1662_v2, %v1660_v6  ;;  %5830 = vmatprep.subr.bf16.mxu1 %v7468_v25  ;;  %v5773_v15 = vpop.f32.mrb[10].mxu1  ;;  %v5821_v23 = vpop.f32.mrb[22].mxu0  ;;  %v6570_v2 = vld [vmem:[%s7078_s15] sm:$0xff]  }
 0x50a   : > { %v1101_v17 = vmul.f32 %v6637_v48, %v5773_v15  ;;  %v1666_v18 = vmul.f32 %v6639_v13, %v5821_v23  ;;  %v1033_v58 = vpop.f32.mrb[11].mxu1  ;;  %v1554_v19 = vpop.f32.mrb[23].mxu0  ;;  %v6572_v15 = vld [vmem:[%s7078_s15 + $0x10] sm:$0xff]   ;;  %v6573_v23 = vld [vmem:[%s7078_s15 + $0x18] sm:$0xff]  }
 0x50b   : > { %v1099_v57 = vmul.f32 %v6635_v30, %v1033_v58  ;;  %v1664_v20 = vmul.f32 %v6641_v16, %v1554_v19  ;;  %5782 = vmatprep.mubr.msk.bf16.mxu1 %vm920_vm4, %v1104_v47  ;;  %v2083_v61 = vpop.permute.xlu1 %2082  ;;  %v6574_v16 = vld [vmem:[%s7078_s15 + $0x20] sm:$0xff]   ;;  %v7512_v58 = vld [vmem:[%s7088_s12 + $0x14] ss:$24 sps:$4 sm:$0xff]   ;;  %v6577_v19 = vld [vmem:[%s7078_s15 + $0x38] sm:$0xff]  }
 0x50c   : > { %5831 = vmatpush3.bf16.msra.mxu1 %v7468_v25  ;;  %v2094_v62 = vsel %vm439_vm1, %v2081_v59, %v2083_v61  ;;  %5840 = vmatprep.subr.bf16.mxu0 %v7512_v58 }
 0x50d   : > { %v1105_v24 = vpack.c.bf16 %v1101_v17, %v1099_v57  ;;  %v1676_v26 = vpack.c.bf16 %v1666_v18, %v1664_v20  ;;  %v5824_v27 = vpop.f32.mrb[24].mxu0  ;;  %5856 = vmatprep.subr.bf16.mxu1 %v2093_v56  ;;  %v6575_v17 = vld [vmem:[%s7078_s15 + $0x28] sm:$0xff]   ;;  %v6576_v18 = vld [vmem:[%s7078_s15 + $0x30] sm:$0xff]   ;;  %5841 = vmatpush3.bf16.msra.mxu0 %v7512_v58  ;;  %v7523_v20 = vld [vmem:[%s7088_s12 + $0x44] ss:$24 sps:$4 sm:$0xff]  }
 0x50e   : > { %v1670_v34 = vmul.f32 %v6643_v21, %v5824_v27  ;;  %v1564_v35 = vpop.f32.mrb[25].mxu0  ;;  %5842 = vmatprep.subr.bf16.mxu0 %v7523_v20  ;;  %v735_v27 = vld [vmem:[%s7093_s0 + $0x20] ss:$0 sm:$0xff] }
 0x50f   : > { %v1668_v36 = vmul.f32 %v6645_v33, %v1564_v35  ;;  %5783 = vmatmul.mubr.msk.bf16.gmra.mrb[16].mxu1 %vm920_vm4, %v1105_v24  ;;  %v2087_v45 = vpop.permute.xlu1 %2086  ;;  %v6580_v24 = vld [vmem:[%s7088_s12 + $0x74] ss:$24 sps:$4 sm:$0xff]   ;;  %v6581_v35 = vld [vmem:[%s7088_s12 + $0xa4] ss:$24 sps:$4 sm:$0xff]  }
 0x510   : > { %5832 = vmatprep.mubr.msk.bf16.mxu1 %vm920_vm4, %v1675_v14  ;;  %v2095_v54 = vsel %vm439_vm1, %v2085_v32, %v2087_v45 }
 0x511   : > { %v1677_v40 = vpack.c.bf16 %v1670_v34, %v1668_v36  ;;  %v5827_v41 = vpop.f32.mrb[26].mxu0  ;;  %5843 = vmatpush3.bf16.msra.mxu0 %v7523_v20 }
 0x512   : > { %v1674_v44 = vmul.f32 %v6647_v39, %v5827_v41  ;;  %v1574_v46 = vpop.f32.mrb[27].mxu0  ;;  %5844 = vmatprep.subr.bf16.mxu0 %v6580_v24 }
 0x513   : > { %v1672_v49 = vmul.f32 %v6649_v43, %v1574_v46  ;;  %v2091_v5 = vpop.permute.xlu1 %2090 }
 0x514   : > { %v2096_v7 = vsel %vm439_vm1, %v2089_v60, %v2091_v5 }
 0x515   : > { %v1678_v50 = vpack.c.bf16 %v1674_v44, %v1672_v49  ;;  %5845 = vmatpush3.bf16.msra.mxu0 %v6580_v24 }
 0x516   : > { %5846 = vmatprep.subr.bf16.mxu0 %v6581_v35 }
 0x517   : > { %5833 = vmatmul.mubr.msk.bf16.vlgmr.msra.gmra.mrb[20].mxu1 %vm920_vm4, %v1676_v26 }
 0x518   : > { %5836 = vmatprep.mubr.msk.bf16.mxu1 %vm920_vm4, %v1677_v40  ;;  %5857 = vmatpush3.bf16.msra.mxu1 %v2093_v56 }
 0x519   : > { %5858 = vmatprep.subr.bf16.mxu1 %v2094_v62  ;;  %5847 = vmatpush3.bf16.msra.mxu0 %v6581_v35 }
 0x51c   : > { %5859 = vmatpush3.bf16.msra.mxu1 %v2094_v62 }
 0x51d   : > { %5860 = vmatprep.subr.bf16.mxu1 %v2095_v54 }
 0x51f   : > { %5837 = vmatmul.mubr.msk.bf16.gmra.mrb[24].mxu1 %vm920_vm4, %v1678_v50 }
 0x520   : > { %5861 = vmatpush3.bf16.msra.mxu1 %v2095_v54  ;;  %5864 = vmatprep.mubr.msk.bf16.mxu1 %vm439_vm1, %v6570_v2 }
 0x521   : > { %5862 = vmatprep.subr.bf16.mxu1 %v2096_v7 }
 0x524   : > { %5863 = vmatpush3.bf16.msra.mxu1 %v2096_v7 }
 0x527   : > { %5865 = vmatmul.mubr.msk.bf16.vlgmr.msra.gmra.mrb[28].mxu1 %vm439_vm1, %v6571_v3 }
 0x528   : > { %5868 = vmatprep.mubr.msk.bf16.mxu1 %vm439_vm1, %v6572_v15 }
 0x52f   : > { %5869 = vmatmul.mubr.msk.bf16.gmra.mrb[32].mxu1 %vm439_vm1, %v6573_v23 }
 0x530   : > { %5872 = vmatprep.mubr.msk.bf16.mxu1 %vm439_vm1, %v6574_v16 }
 0x537   : > { %5873 = vmatmul.mubr.msk.bf16.gmra.mrb[36].mxu1 %vm439_vm1, %v6575_v17 }
 0x538   : > { %5876 = vmatprep.mubr.msk.bf16.mxu1 %vm439_vm1, %v6576_v18 }
 0x53f   : > { %5877 = vmatmul.mubr.msk.bf16.gmra.mrb[40].mxu1 %vm439_vm1, %v6577_v19 }
 0x5da   : > { %v5780_v10 = vpop.f32.mrb[12].mxu1 }
 0x5db   : > { %1211 = vrot.lane.b32.xlu0 %v5780_v10, %s6942_s30  ;;  %v1168_v52 = vpop.f32.mrb[13].mxu1 }
 0x5dc   : > { %v5781_v53 = vpop.f32.mrb[14].mxu1 }
 0x5dd   : > { %1213 = vrot.lane.b32.xlu1 %v5781_v53, %s6942_s30  ;;  %v1171_v63 = vpop.f32.mrb[15].mxu1 }
 0x5df   : > { %1207 = vrot.lane.b32.xlu0 %v1168_v52, %s6942_s30 }
 0x5e1   : > { %1209 = vrot.lane.b32.xlu1 %v1171_v63, %s6942_s30 }
 0x5e2   : > { %v5784_v37 = vpop.f32.mrb[16].mxu1 }
 0x5e3   : > { %v1184_v29 = vpop.f32.mrb[17].mxu1 }
 0x5e4   : > { %v5785_v0 = vpop.f32.mrb[18].mxu1 }
 0x5e5   : > { %v1187_v1 = vpop.f32.mrb[19].mxu1 }
 0x5ea   : > { %v5834_v4 = vpop.f32.mrb[20].mxu1 }
 0x5eb   : > { %v1741_v30 = vpop.f32.mrb[21].mxu1 }
 0x5ec   : > { %1780 = vrot.lane.b32.xlu0 %v1741_v30, %s6942_s30  ;;  %v5835_v38 = vpop.f32.mrb[22].mxu1 }
 0x5ed   : > { %v1744_v6 = vpop.f32.mrb[23].mxu1 }
 0x5ee   : > { %1782 = vrot.lane.b32.xlu1 %v1744_v6, %s6942_s30  ;;  %v7545_v6 = vsub.s32 2, %v7194_v22 }
 0x5f0   : > { %1784 = vrot.lane.b32.xlu0 %v5834_v4, %s6942_s30 }
 0x5f2   : > { %1786 = vrot.lane.b32.xlu1 %v5835_v38, %s6942_s30  ;;  %v5838_v48 = vpop.f32.mrb[24].mxu1 }
 0x5f3   : > { %v1757_v13 = vpop.f32.mrb[25].mxu1 }
 0x5f4   : > { %1215 = vrot.lane.b32.xlu0 %v1184_v29, %s6942_s30  ;;  %v5839_v47 = vpop.f32.mrb[26].mxu1 }
 0x5f5   : > { %v1760_v14 = vpop.f32.mrb[27].mxu1 }
 0x5f6   : > { %1217 = vrot.lane.b32.xlu1 %v1187_v1, %s6942_s30  ;;  %v2003_v1 = vld [vmem:[%s7093_s0 + $0x10] ss:$0 sm:$0xff] }
 0x5f8   : > { %1219 = vrot.lane.b32.xlu0 %v5784_v37, %s6942_s30 }
 0x5fa   : > { %1221 = vrot.lane.b32.xlu1 %v5785_v0, %s6942_s30  ;;  %v2002_v0 = vld [vmem:[%s7093_s0 + $0x8] ss:$0 sm:$0xff]  ;;  %v7542_v2 = vpop.f32.mrb[28].mxu1 }
 0x5fb   : > { %v2167_v3 = vpop.f32.mrb[29].mxu1 }
 0x5fc   : > { %1792 = vrot.lane.b32.xlu0 %v5838_v48, %s6942_s30  ;;  %v5867_v4 = vpop.f32.mrb[30].mxu1 }
 0x5fd   : > { %v2170_v30 = vpop.f32.mrb[31].mxu1 }
 0x5fe   : > { %1794 = vrot.lane.b32.xlu1 %v5839_v47, %s6942_s30 }
 0x600   : > { %1788 = vrot.lane.b32.xlu0 %v1757_v13, %s6942_s30 }
 0x602   : > { %1790 = vrot.lane.b32.xlu1 %v1760_v14, %s6942_s30  ;;  %v5870_v38 = vpop.f32.mrb[32].mxu1  ;;  %v6830_v14 = vld [vmem:[%s7192_s21] sm:$0xff] }
 0x603   : > { %v2183_v48 = vpop.f32.mrb[33].mxu1  ;;  %v1815_v15 = vrot.slane %v6830_v14, %v7545_v6  ;;  %v6838_v14 = vld [vmem:[%s7095_s16 + $0x38] sm:$0xff] }
 0x604   : > { %v5871_v13 = vpop.f32.mrb[34].mxu1 }
 0x605   : > { %v2186_v47 = vpop.f32.mrb[35].mxu1 }
 0x60a   : > { %v5874_v16 = vpop.f32.mrb[36].mxu1 }
 0x60b   : > { %v2199_v18 = vpop.f32.mrb[37].mxu1 }
 0x64d   : > { %v1212_v57 = vpop.permute.xlu0 %1211 }
 0x64e   : > { %v1233_v43 = vadd.f32 %v1212_v57, %v735_v27  ;;  %v5875_v57 = vpop.f32.mrb[38].mxu1 }
 0x64f   : > { %v1214_v21 = vpop.permute.xlu1 %1213  ;;  %v2202_v24 = vpop.f32.mrb[39].mxu1 }
 0x650   : > { %v1234_v49 = vadd.f32 %v1214_v21, %v735_v27 }
 0x651   : > { %v1208_v26 = vpop.permute.xlu0 %1207 }
 0x652   : > { %v1231_v34 = vadd.f32 %v1208_v26, %v735_v27 }
 0x653   : > { %v1210_v33 = vpop.permute.xlu1 %1209 }
 0x654   : > { %v1232_v39 = vadd.f32 %v1210_v33, %v735_v27 }
 0x65e   : > { %v1781_v36 = vpop.permute.xlu0 %1780 }
 0x65f   : > { %v1804_v40 = vadd.f32 %v1781_v36, %v1231_v34  ;;  %v6832_v34 = vld [vmem:[%s7095_s16 + $0x8] sm:$0xff] }
 0x660   : > { %v1783_v41 = vpop.permute.xlu1 %1782 }
 0x661   : > { %v1805_v44 = vadd.f32 %v1783_v41, %v1232_v39  ;;  %1824 = vrot.lane.b32.xlu0 %v1804_v40, %s6942_s30 }
 0x662   : > { %v1785_v46 = vpop.permute.xlu0 %1784 }
 0x663   : > { %v1806_v50 = vadd.f32 %v1785_v46, %v1233_v43  ;;  %1826 = vrot.lane.b32.xlu1 %v1805_v44, %s6942_s30  ;;  %v5878_v43 = vpop.f32.mrb[40].mxu1  ;;  %v6833_v44 = vld [vmem:[%s7095_s16 + $0x10] sm:$0xff] }
 0x664   : > { %v1787_v51 = vpop.permute.xlu1 %1786 }
 0x665   : > { %v1807_v55 = vadd.f32 %v1787_v51, %v1234_v49  ;;  %1828 = vrot.lane.b32.xlu0 %v1806_v50, %s6942_s30  ;;  %v6834_v49 = vld [vmem:[%s7095_s16 + $0x18] sm:$0xff]  ;;  %v2215_v51 = vpop.f32.mrb[41].mxu1 }
 0x666   : > { %v1216_v56 = vpop.permute.xlu0 %1215 }
 0x667   : > { %1830 = vrot.lane.b32.xlu1 %v1807_v55, %s6942_s30  ;;  %v1235_v54 = vadd.f32 %v1216_v56, %v735_v27  ;;  %v5879_v55 = vpop.f32.mrb[42].mxu1 }
 0x668   : > { %v1218_v59 = vpop.permute.xlu1 %1217 }
 0x669   : > { %v1236_v5 = vadd.f32 %v1218_v59, %v735_v27  ;;  %v2218_v59 = vpop.f32.mrb[43].mxu1 }
 0x66a   : > { %v1220_v61 = vpop.permute.xlu0 %1219 }
 0x66b   : > { %v1237_v52 = vadd.f32 %v1220_v61, %v735_v27 }
 0x66c   : > { %v1222_v62 = vpop.permute.xlu1 %1221 }
 0x66d   : > { %v1238_v63 = vadd.f32 %v1222_v62, %v735_v27  ;;  %v6831_v27 = vld [vmem:[%s7095_s16] sm:$0xff] }
 0x66e   : > { %v1793_v32 = vpop.permute.xlu0 %1792 }
 0x66f   : > { %v1810_v37 = vadd.f32 %v1793_v32, %v1237_v52 }
 0x670   : > { %v1795_v45 = vpop.permute.xlu1 %1794 }
 0x671   : > { %v1811_v29 = vadd.f32 %v1795_v45, %v1238_v63 }
 0x672   : > { %v1789_v60 = vpop.permute.xlu0 %1788 }
 0x673   : > { %v1808_v7 = vadd.f32 %v1789_v60, %v1235_v54  ;;  %v6835_v60 = vld [vmem:[%s7095_s16 + $0x20] sm:$0xff] }
 0x674   : > { %v1791_v10 = vpop.permute.xlu1 %1790 }
 0x675   : > { %v1809_v53 = vadd.f32 %v1791_v10, %v1236_v5  ;;  %1832 = vrot.lane.b32.xlu0 %v1808_v7, %s6942_s30  ;;  %v6836_v7 = vld [vmem:[%s7095_s16 + $0x28] sm:$0xff] }
 0x677   : > { %1834 = vrot.lane.b32.xlu1 %v1809_v53, %s6942_s30 }
 0x679   : > { %1836 = vrot.lane.b32.xlu0 %v1810_v37, %s6942_s30 }
 0x67b   : > { %1838 = vrot.lane.b32.xlu1 %v1811_v29, %s6942_s30 }
 0x67d   : > { %2103 = vrot.lane.b32.xlu0 %v2002_v0, %s6942_s30  ;;  %v6837_v0 = vld [vmem:[%s7095_s16 + $0x30] sm:$0xff] }
 0x67f   : > { %2105 = vrot.lane.b32.xlu1 %v2003_v1, %s6942_s30 }
 0x6d3   : > { %v1825_v23 = vpop.permute.xlu0 %1824 }
 0x6d4   : > { %v1848_v17 = vmul.f32 %v1825_v23, %v1815_v15 }
 0x6d5   : > { %v1827_v19 = vpop.permute.xlu1 %1826 }
 0x6d6   : > { %v1849_v21 = vmul.f32 %v1827_v19, %v1815_v15  ;;  %v7550_v33 = vadd.f32 %v6831_v27, %v1848_v17 }
 0x6d7   : > { %v1829_v26 = vpop.permute.xlu0 %1828 }
 0x6d8   : > { %v7553_v35 = vadd.f32 %v6832_v34, %v1849_v21  ;;  %v1850_v36 = vmul.f32 %v1829_v26, %v1815_v15 }
 0x6d9   : > { %v1831_v39 = vpop.permute.xlu1 %1830 }
 0x6da   : > { %v1872_v40 = vpack.c.bf16 %v7553_v35, %v7550_v33  ;;  %v1851_v41 = vmul.f32 %v1831_v39, %v1815_v15  ;;  %v7558_v46 = vadd.f32 %v6833_v44, %v1850_v36 }
 0x6dc   : > { %v7561_v50 = vadd.f32 %v6834_v49, %v1851_v41  ;;  %5848 = vmatprep.mubr.msk.bf16.mxu0 %vm439_vm1, %v1872_v40 }
 0x6de   : > { %v1873_v56 = vpack.c.bf16 %v7561_v50, %v7558_v46 }
 0x6e0   : > { %5849 = vmatmul.mubr.msk.bf16.vlgmr.msra.gmra.mrb[28].mxu0 %vm439_vm1, %v1873_v56 }
 0x6e7   : > { %v1833_v61 = vpop.permute.xlu0 %1832 }
 0x6e8   : > { %v1852_v62 = vmul.f32 %v1833_v61, %v1815_v15 }
 0x6e9   : > { %v1835_v32 = vpop.permute.xlu1 %1834 }
 0x6ea   : > { %v1853_v45 = vmul.f32 %v1835_v32, %v1815_v15  ;;  %v7568_v5 = vadd.f32 %v6835_v60, %v1852_v62 }
 0x6eb   : > { %v1837_v54 = vpop.permute.xlu0 %1836 }
 0x6ec   : > { %v7571_v10 = vadd.f32 %v6836_v7, %v1853_v45  ;;  %v1854_v52 = vmul.f32 %v1837_v54, %v1815_v15 }
 0x6ed   : > { %v1839_v53 = vpop.permute.xlu1 %1838 }
 0x6ee   : > { %v1874_v63 = vpack.c.bf16 %v7571_v10, %v7568_v5  ;;  %v1855_v37 = vmul.f32 %v1839_v53, %v1815_v15  ;;  %v7576_v1 = vadd.f32 %v6837_v0, %v1854_v52 }
 0x6ef   : > { %v2104_v29 = vpop.permute.xlu0 %2103 }
 0x6f0   : > { %v7579_v23 = vadd.f32 %v6838_v14, %v1855_v37  ;;  %5852 = vmatprep.mubr.msk.bf16.mxu0 %vm439_vm1, %v1874_v63 }
 0x6f1   : > { %v2106_v17 = vpop.permute.xlu1 %2105 }
 0x6f2   : > { %v1875_v19 = vpack.c.bf16 %v7579_v23, %v7576_v1  ;;  %v2107_v21 = vsel %vm439_vm1, %v2104_v29, %v2106_v17  ;;  %v1876_v17 = vld [vmem:[%s7093_s0 + $0x28] ss:$0 sm:$0xff] }
 0x6f3   : > { %v2179_v26 = vadd.f32 %v5867_v4, %v2107_v21  ;;  %v2171_v27 = vadd.f32 %v2170_v30, %v2107_v21  ;;  %v2168_v34 = vadd.f32 %v2167_v3, %v2107_v21  ;;  %v2192_v36 = vadd.f32 %v5870_v38, %v2107_v21 }
 0x6f4   : > { %5853 = vmatmul.mubr.msk.bf16.gmra.mrb[32].mxu0 %vm439_vm1, %v1875_v19  ;;  %v2176_v39 = vadd.f32 %v7542_v2, %v2107_v21  ;;  %v2184_v40 = vadd.f32 %v2183_v48, %v2107_v21  ;;  %v2195_v41 = vadd.f32 %v5871_v13, %v2107_v21  ;;  %v2187_v44 = vadd.f32 %v2186_v47, %v2107_v21 }
 0x6f5   : > { %v6152_v49 = vpack.c.bf16 %v2171_v27, %v2168_v34  ;;  %v2208_v56 = vadd.f32 %v5874_v16, %v2107_v21  ;;  %v2200_v61 = vadd.f32 %v2199_v18, %v2107_v21  ;;  %v2211_v4 = vadd.f32 %v5875_v57, %v2107_v21 }
 0x6f6   : > { %v6158_v30 = vpack.c.bf16 %v2179_v26, %v2176_v39  ;;  %v6164_v3 = vpack.c.bf16 %v2187_v44, %v2184_v40  ;;  %v6170_v38 = vpack.c.bf16 %v2195_v41, %v2192_v36  ;;  %v2203_v62 = vadd.f32 %v2202_v24, %v2107_v21 }
 0x6f7   : > { %6154 = vmatprep.subr.msk.bf16.mxu0 %vm7588_vm5, %v6152_v49  ;;  %v2224_v32 = vadd.f32 %v5878_v43, %v2107_v21  ;;  %v6182_v45 = vpack.c.bf16 %v2211_v4, %v2208_v56  ;;  %v2216_v54 = vadd.f32 %v2215_v51, %v2107_v21  ;;  %v2227_v60 = vadd.f32 %v5879_v55, %v2107_v21 }
 0x6f8   : > { %6157 = vmatpush3.bf16.xpose.msk.msra.mxu0 %vm7588_vm5, %v6152_v49  ;;  %v6176_v2 = vpack.c.bf16 %v2203_v62, %v2200_v61  ;;  %v2219_v48 = vadd.f32 %v2218_v59, %v2107_v21  ;;  %v7597_v13 = vpack.i.bf16 %v2171_v27, %v2168_v34  ;;  %v7599_v47 = vpack.i.bf16 %v2179_v26, %v2176_v39 }
 0x6f9   : > { %6160 = vmatprep.subr.msk.bf16.mxu0 %vm7588_vm5, %v6158_v30  ;;  %v6194_v16 = vpack.c.bf16 %v2227_v60, %v2224_v32  ;;  %v7607_v57 = vpack.i.bf16 %v2195_v41, %v2192_v36  ;;  %v7609_v24 = vpack.i.bf16 %v2187_v44, %v2184_v40  ;;  %v7611_v43 = vpack.i.bf16 %v2211_v4, %v2208_v56 }
 0x6fa   : > { %v6188_v18 = vpack.c.bf16 %v2219_v48, %v2216_v54  ;;  %6415 = vrot.lane.b32.xlu0 %v7597_v13, %s6942_s30  ;;  %6420 = vrot.lane.b32.xlu1 %v7599_v47, %s6942_s30  ;;  %v7613_v51 = vpack.i.bf16 %v2203_v62, %v2200_v61  ;;  %v7615_v55 = vpack.i.bf16 %v2219_v48, %v2216_v54 }
 0x6fb   : > { %v7617_v59 = vpack.i.bf16 %v2227_v60, %v2224_v32 }
 0x700   : > { %6163 = vmatpush3.bf16.xpose.msk.msra.mxu0 %vm7588_vm5, %v6158_v30 }
 0x701   : > { %6166 = vmatprep.subr.msk.bf16.mxu0 %vm7588_vm5, %v6164_v3 }
 0x708   : > { %6169 = vmatpush3.bf16.xpose.msk.msra.mxu0 %vm7588_vm5, %v6164_v3 }
 0x709   : > { %6172 = vmatprep.subr.msk.bf16.mxu0 %vm7588_vm5, %v6170_v38 }
 0x710   : > { %6175 = vmatpush3.bf16.xpose.msk.msra.mxu0 %vm7588_vm5, %v6170_v38  ;;  %v7682_v38 = vld [vmem:[%s2230_s19] ss:$0 sm:$0xff] }
 0x711   : > { %6178 = vmatprep.subr.msk.bf16.mxu0 %vm7588_vm5, %v6176_v2 }
 0x718   : > { %6181 = vmatpush3.bf16.xpose.msk.msra.mxu0 %vm7588_vm5, %v6176_v2 }
 0x719   : > { %6184 = vmatprep.subr.msk.bf16.mxu0 %vm7588_vm5, %v6182_v45 }
 0x720   : > { %6187 = vmatpush3.bf16.xpose.msk.msra.mxu0 %vm7588_vm5, %v6182_v45 }
 0x721   : > { %6190 = vmatprep.subr.msk.bf16.mxu0 %vm7588_vm5, %v6188_v18 }
 0x728   : > { %6193 = vmatpush3.bf16.xpose.msk.msra.mxu0 %vm7588_vm5, %v6188_v18 }
 0x729   : > { %6196 = vmatprep.subr.msk.bf16.mxu0 %vm7588_vm5, %v6194_v16 }
 0x730   : > { %6199 = vmatpush3.bf16.xpose.msk.msra.mxu0 %vm7588_vm5, %v6194_v16 }
 0x76c   : > { %v6416_v7 = vpop.permute.xlu0 %6415  ;;  %v6421_v52 = vpop.permute.xlu1 %6420 }
 0x76d   : > { %v6418_v53 = vunpack.i.h.bf16 %v6416_v7  ;;  %v6417_v63 = vunpack.i.l.bf16 %v6416_v7  ;;  %v6423_v37 = vunpack.i.h.bf16 %v6421_v52  ;;  %v6422_v29 = vunpack.i.l.bf16 %v6421_v52 }
 0x76f   : > { %v6200_v0 = vpack.c.bf16 %v6418_v53, %v6417_v63  ;;  %v6204_v14 = vpack.c.bf16 %v6423_v37, %v6422_v29 }
 0x771   : > { %6201 = vmatprep.subr.bf16.mxu1 %v6200_v0 }
 0x772   : > { %6203 = vmatpush3.bf16.msra.mxu1 %v6200_v0 }
 0x773   : > { %6205 = vmatprep.subr.bf16.mxu1 %v6204_v14 }
 0x776   : > { %6207 = vmatpush3.bf16.msra.mxu1 %v6204_v14 }
 0x7b3   : > { %v5850_v19 = vpop.f32.mrb[28].mxu0 }
 0x7b4   : > { %v1947_v21 = vpop.f32.mrb[29].mxu0  ;;  %v7652_v39 = vadd.f32 %v5850_v19, %v1876_v17 }
 0x7b5   : > { %v7646_v26 = vadd.f32 %v1947_v21, %v1876_v17  ;;  %v5851_v27 = vpop.f32.mrb[30].mxu0 }
 0x7b6   : > { %v1950_v34 = vpop.f32.mrb[31].mxu0  ;;  %v7658_v40 = vadd.f32 %v5851_v27, %v1876_v17 }
 0x7b7   : > { %v7648_v36 = vadd.f32 %v1950_v34, %v1876_v17  ;;  %5912 = vmatprep.mubr.msk.f32.mxu0 %vm920_vm4, %v7646_v26 }
 0x7b9   : > { %5913 = vmatmul.mubr.msk.f32.vlgmr.msra.gmra.mrb[36].mxu0 %vm920_vm4, %v7648_v36 }
 0x7ba   : > { %5915 = vmatprep.mubr.msk.f32.mxu0 %vm920_vm4, %v7652_v39 }
 0x7bd   : > { %5916 = vmatmul.mubr.msk.f32.gmra.mrb[38].mxu0 %vm920_vm4, %v7658_v40 }
 0x7c7   : > { %v5854_v41 = vpop.f32.mrb[32].mxu0 }
 0x7c8   : > { %v1963_v44 = vpop.f32.mrb[33].mxu0  ;;  %v7668_v30 = vadd.f32 %v5854_v41, %v1876_v17 }
 0x7c9   : > { %v7662_v49 = vadd.f32 %v1963_v44, %v1876_v17  ;;  %v5855_v56 = vpop.f32.mrb[34].mxu0 }
 0x7ca   : > { %v1966_v61 = vpop.f32.mrb[35].mxu0  ;;  %v7674_v3 = vadd.f32 %v5855_v56, %v1876_v17 }
 0x7cb   : > { %v7664_v4 = vadd.f32 %v1966_v61, %v1876_v17  ;;  %5918 = vmatprep.mubr.msk.f32.mxu0 %vm920_vm4, %v7662_v49 }
 0x7cd   : > { %5919 = vmatmul.mubr.msk.f32.gmra.mrb[40].mxu0 %vm920_vm4, %v7664_v4 }
 0x7ce   : > { %5921 = vmatprep.mubr.msk.f32.mxu0 %vm920_vm4, %v7668_v30 }
 0x7d1   : > { %5922 = vmatmul.mubr.msk.f32.gmra.mrb[42].mxu0 %vm920_vm4, %v7674_v3 }
 0x88c   : > { %v5914_v62 = vpop.f32.mrb[36].mxu0 }
 0x88d   : > { %v2411_v32 = vmul.f32 0.17677669, %v5914_v62  ;;  %v2371_v45 = vpop.f32.mrb[37].mxu0 }
 0x88e   : > { %v2410_v54 = vmul.f32 0.17677669, %v2371_v45 }
 0x88f   : > { %v2423_v60 = vadd.f32 %v7682_v38, %v2411_v32 }
 0x890   : > { %v2422_v2 = vadd.f32 %v7682_v38, %v2410_v54  ;;  %v5917_v48 = vpop.f32.mrb[38].mxu0 }
 0x891   : > { %v2413_v16 = vmul.f32 0.17677669, %v5917_v48  ;;  %2432 = vmax.xlane.f32.xlu1 %v2423_v60  ;;  %v2381_v18 = vpop.f32.mrb[39].mxu0 }
 0x892   : > { %2430 = vmax.xlane.f32.xlu0 %v2422_v2  ;;  %v2412_v52 = vmul.f32 0.17677669, %v2381_v18 }
 0x893   : > { %v2425_v7 = vadd.f32 %v7682_v38, %v2413_v16 }
 0x894   : > { %v2424_v53 = vadd.f32 %v7682_v38, %v2412_v52 }
 0x896   : > { %2436 = vmax.xlane.f32.xlu0 %v2425_v7 }
 0x89a   : > { %2434 = vmax.xlane.f32.xlu0 %v2424_v53 }
 0x8a0   : > { %v5920_v63 = vpop.f32.mrb[40].mxu0 }
 0x8a1   : > { %v2391_v37 = vpop.f32.mrb[41].mxu0  ;;  %v2415_v14 = vmul.f32 0.17677669, %v5920_v63 }
 0x8a2   : > { %6430 = vrot.lane.b32.xlu1 %v7607_v57, %s6942_s30  ;;  %v2414_v27 = vmul.f32 0.17677669, %v2391_v37 }
 0x8a3   : > { %v2427_v17 = vadd.f32 %v7682_v38, %v2415_v14 }
 0x8a4   : > { %v5923_v29 = vpop.f32.mrb[42].mxu0  ;;  %v2426_v34 = vadd.f32 %v7682_v38, %v2414_v27 }
 0x8a5   : > { %v2401_v0 = vpop.f32.mrb[43].mxu0  ;;  %v2417_v19 = vmul.f32 0.17677669, %v5923_v29 }
 0x8a6   : > { %v2416_v41 = vmul.f32 0.17677669, %v2401_v0 }
 0x8a7   : > { %v2429_v21 = vadd.f32 %v7682_v38, %v2417_v19 }
 0x8a8   : > { %v2428_v44 = vadd.f32 %v7682_v38, %v2416_v41 }
 0x8b0   : > { %6425 = vrot.lane.b32.xlu0 %v7609_v24, %s6942_s30 }
 0x8c6   : > { %2440 = vmax.xlane.f32.xlu1 %v2427_v17 }
 0x8ca   : > { %2444 = vmax.xlane.f32.xlu1 %v2429_v21 }
 0x8cf   : > { %2438 = vmax.xlane.f32.xlu0 %v2426_v34 }
 0x8d3   : > { %2442 = vmax.xlane.f32.xlu0 %v2428_v44 }
 0x8db   : > { %6440 = vrot.lane.b32.xlu1 %v7611_v43, %s6942_s30 }
 0x8e9   : > { %6435 = vrot.lane.b32.xlu0 %v7613_v51, %s6942_s30 }
 0x91e   : > { %v2433_v56 = vpop.xlane.xlu1 %2432 }
 0x91f   : > { %v2447_v61 = vsub.f32 %v2423_v60, %v2433_v56  ;;  %v2431_v62 = vpop.xlane.xlu0 %2430 }
 0x920   : > { %v2446_v32 = vsub.f32 %v2422_v2, %v2431_v62 }
 0x921   : > { %v2456_v45 = vmul.f32 1.442695, %v2447_v61 }
 0x922   : > { %v2454_v54 = vmul.f32 1.442695, %v2446_v32  ;;  %v6431_v63 = vpop.permute.xlu1 %6430 }
 0x923   : > { %6650 = vpow2.f32 %v2456_v45  ;;  %v2437_v48 = vpop.xlane.xlu0 %2436  ;;  %v6433_v0 = vunpack.i.h.bf16 %v6431_v63  ;;  %v6432_v19 = vunpack.i.l.bf16 %v6431_v63 }
 0x924   : > { %6652 = vpow2.f32 %v2454_v54  ;;  %v2449_v16 = vsub.f32 %v2425_v7, %v2437_v48 }
 0x925   : > { %v6212_v7 = vpack.c.bf16 %v6433_v0, %v6432_v19 }
 0x926   : > { %v2460_v18 = vmul.f32 1.442695, %v2449_v16 }
 0x927   : > { %v2435_v52 = vpop.xlane.xlu0 %2434 }
 0x928   : > { %6654 = vpow2.f32 %v2460_v18  ;;  %v2448_v37 = vsub.f32 %v2424_v53, %v2435_v52 }
 0x92a   : > { %v2458_v29 = vmul.f32 1.442695, %v2448_v37 }
 0x92b   : > { %v6426_v14 = vpop.permute.xlu0 %6425 }
 0x92c   : > { %6656 = vpow2.f32 %v2458_v29  ;;  %v6428_v27 = vunpack.i.h.bf16 %v6426_v14  ;;  %v6427_v60 = vunpack.i.l.bf16 %v6426_v14 }
 0x92d   : > { %v7700_v41 = vpop.eup %6650 }
 0x92e   : > { %v7702_v2 = vpop.eup %6652  ;;  %2472 = vadd.xlane.f32.xlu0 %v7700_v41  ;;  %v6208_v56 = vpack.c.bf16 %v6428_v27, %v6427_v60 }
 0x92f   : > { %2470 = vadd.xlane.f32.xlu1 %v7702_v2 }
 0x930   : > { %6209 = vmatprep.subr.bf16.mxu1 %v6208_v56 }
 0x931   : > { %6211 = vmatpush3.bf16.msra.mxu1 %v6208_v56 }
 0x932   : > { %v7706_v53 = vpop.eup %6654  ;;  %6213 = vmatprep.subr.bf16.mxu1 %v6212_v7 }
 0x933   : > { %2476 = vadd.xlane.f32.xlu1 %v7706_v53 }
 0x935   : > { %6215 = vmatpush3.bf16.msra.mxu1 %v6212_v7 }
 0x936   : > { %v7709_v61 = vpop.eup %6656 }
 0x937   : > { %2474 = vadd.xlane.f32.xlu1 %v7709_v61 }
 0x944   : > { %6445 = vrot.lane.b32.xlu0 %v7615_v55, %s6942_s30 }
 0x948   : > { %6450 = vrot.lane.b32.xlu1 %v7617_v59, %s6942_s30 }
 0x953   : > { %v2441_v62 = vpop.xlane.xlu1 %2440 }
 0x954   : > { %v2451_v32 = vsub.f32 %v2427_v17, %v2441_v62 }
 0x956   : > { %v2464_v54 = vmul.f32 1.442695, %v2451_v32 }
 0x957   : > { %v2445_v45 = vpop.xlane.xlu1 %2444 }
 0x958   : > { %6658 = vpow2.f32 %v2464_v54  ;;  %v2453_v52 = vsub.f32 %v2429_v21, %v2445_v45 }
 0x95a   : > { %v2468_v14 = vmul.f32 1.442695, %v2453_v52 }
 0x95b   : > { %v6441_v37 = vpop.permute.xlu1 %6440 }
 0x95c   : > { %v2439_v48 = vpop.xlane.xlu0 %2438  ;;  %v6443_v19 = vunpack.i.h.bf16 %v6441_v37  ;;  %v6442_v60 = vunpack.i.l.bf16 %v6441_v37 }
 0x95d   : > { %v2450_v16 = vsub.f32 %v2426_v34, %v2439_v48 }
 0x95e   : > { %v6220_v62 = vpack.c.bf16 %v6443_v19, %v6442_v60 }
 0x95f   : > { %v2462_v18 = vmul.f32 1.442695, %v2450_v16 }
 0x960   : > { %v2443_v63 = vpop.xlane.xlu0 %2442 }
 0x961   : > { %6660 = vpow2.f32 %v2462_v18  ;;  %v2452_v29 = vsub.f32 %v2428_v44, %v2443_v63 }
 0x962   : > { %v7716_v34 = vpop.eup %6658 }
 0x963   : > { %v2466_v0 = vmul.f32 1.442695, %v2452_v29 }
 0x964   : > { %v6436_v27 = vpop.permute.xlu0 %6435 }
 0x965   : > { %6662 = vpow2.f32 %v2466_v0  ;;  %v6438_v56 = vunpack.i.h.bf16 %v6436_v27  ;;  %v6437_v7 = vunpack.i.l.bf16 %v6436_v27 }
 0x966   : > { %6664 = vpow2.f32 %v2468_v14 }
 0x967   : > { %v6216_v17 = vpack.c.bf16 %v6438_v56, %v6437_v7 }
 0x969   : > { %6217 = vmatprep.subr.bf16.mxu1 %v6216_v17 }
 0x96a   : > { %6219 = vmatpush3.bf16.msra.mxu1 %v6216_v17 }
 0x96b   : > { %v7718_v21 = vpop.eup %6660  ;;  %6221 = vmatprep.subr.bf16.mxu1 %v6220_v62 }
 0x96c   : > { %2480 = vadd.xlane.f32.xlu1 %v7716_v34  ;;  %2478 = vadd.xlane.f32.xlu0 %v7718_v21 }
 0x96e   : > { %6223 = vmatpush3.bf16.msra.mxu1 %v6220_v62 }
 0x96f   : > { %v7722_v44 = vpop.eup %6662 }
 0x970   : > { %2482 = vadd.xlane.f32.xlu0 %v7722_v44  ;;  %v7725_v32 = vpop.eup %6664 }
 0x974   : > { %2484 = vadd.xlane.f32.xlu0 %v7725_v32 }
 0x97d   : > { %2661 = vrot.lane.b32.xlu1 %v7523_v20, %s6942_s30 }
 0x981   : > { %6455 = vrot.lane.b32.xlu1 %v7597_v13, %s6944_s25 }
 0x985   : > { %6460 = vrot.lane.b32.xlu1 %v7599_v47, %s6944_s25 }
 0x989   : > { %6470 = vrot.lane.b32.xlu1 %v7607_v57, %s6944_s25 }
 0x98a   : > { %2659 = vrot.lane.b32.xlu0 %v7512_v58, %s6942_s30 }
 0x98d   : > { %6480 = vrot.lane.b32.xlu1 %v7611_v43, %s6944_s25 }
 0x98e   : > { %6465 = vrot.lane.b32.xlu0 %v7609_v24, %s6944_s25 }
 0x991   : > { %6490 = vrot.lane.b32.xlu1 %v7617_v59, %s6944_s25 }
 0x992   : > { %6475 = vrot.lane.b32.xlu0 %v7613_v51, %s6944_s25 }
 0x995   : > { %2784 = vrot.lane.b32.xlu1 %v7648_v36, %s6944_s25 }
 0x996   : > { %6485 = vrot.lane.b32.xlu0 %v7615_v55, %s6944_s25 }
 0x999   : > { %2788 = vrot.lane.b32.xlu1 %v7658_v40, %s6944_s25 }
 0x99a   : > { %2782 = vrot.lane.b32.xlu0 %v7646_v26, %s6944_s25 }
 0x99d   : > { %2792 = vrot.lane.b32.xlu1 %v7664_v4, %s6944_s25 }
 0x99e   : > { %2786 = vrot.lane.b32.xlu0 %v7652_v39, %s6944_s25 }
 0x9a1   : > { %2796 = vrot.lane.b32.xlu1 %v7674_v3, %s6944_s25 }
 0x9a2   : > { %2790 = vrot.lane.b32.xlu0 %v7662_v49, %s6944_s25 }
 0x9a5   : > { %6500 = vrot.lane.b32.xlu1 %v7599_v47, %s6943_s23 }
 0x9a6   : > { %2794 = vrot.lane.b32.xlu0 %v7668_v30, %s6944_s25 }
 0x9aa   : > { %6495 = vrot.lane.b32.xlu0 %v7597_v13, %s6943_s23 }
 0x9bb   : > { %v2473_v58 = vpop.xlane.xlu0 %2472 }
 0x9bc   : > { %v2471_v20 = vpop.xlane.xlu1 %2470 }
 0x9bd   : > { %6666 = vrcp.f32 %v2471_v20 }
 0x9be   : > { %6668 = vrcp.f32 %v2473_v58 }
 0x9bf   : > { %v6446_v26 = vpop.permute.xlu0 %6445 }
 0x9c0   : > { %v6448_v36 = vunpack.i.h.bf16 %v6446_v26  ;;  %v6447_v39 = vunpack.i.l.bf16 %v6446_v26  ;;  %v2477_v40 = vpop.xlane.xlu1 %2476 }
 0x9c2   : > { %v6224_v4 = vpack.c.bf16 %v6448_v36, %v6447_v39 }
 0x9c4   : > { %v2475_v3 = vpop.xlane.xlu1 %2474  ;;  %6225 = vmatprep.subr.bf16.mxu1 %v6224_v4 }
 0x9c5   : > { %6670 = vrcp.f32 %v2475_v3  ;;  %6227 = vmatpush3.bf16.msra.mxu1 %v6224_v4 }
 0x9c6   : > { %6672 = vrcp.f32 %v2477_v40 }
 0x9c7   : > { %v6667_v47 = vpop.eup %6666 }
 0x9c8   : > { %v6451_v49 = vpop.permute.xlu1 %6450  ;;  %v2487_v30 = vmul.f32 %v6667_v47, %v7702_v2  ;;  %v6669_v48 = vpop.eup %6668 }
 0x9c9   : > { %v6453_v45 = vunpack.i.h.bf16 %v6451_v49  ;;  %v6452_v13 = vunpack.i.l.bf16 %v6451_v49  ;;  %v2489_v18 = vmul.f32 %v6669_v48, %v7700_v41 }
 0x9ca   : > { %5956 = vmatprep.mubr.f32.mxu1 %v2487_v30 }
 0x9cb   : > { %v6228_v54 = vpack.c.bf16 %v6453_v45, %v6452_v13 }
 0x9cd   : > { %6229 = vmatprep.subr.bf16.mxu1 %v6228_v54 }
 0x9ce   : > { %6231 = vmatpush3.bf16.msra.mxu1 %v6228_v54 }
 0x9cf   : > { %v6671_v16 = vpop.eup %6670 }
 0x9d0   : > { %v6673_v52 = vpop.eup %6672  ;;  %v2491_v63 = vmul.f32 %v6671_v16, %v7709_v61 }
 0x9d1   : > { %5957 = vmatmul.mubr.f32.vlgmr.msra.gmra.mrb[44].mxu1 %v2489_v18  ;;  %v2493_v37 = vmul.f32 %v6673_v52, %v7706_v53 }
 0x9d2   : > { %5959 = vmatprep.mubr.f32.mxu1 %v2491_v63 }
 0x9d5   : > { %5960 = vmatmul.mubr.f32.gmra.mrb[46].mxu1 %v2493_v37 }
 0x9f9   : > { %v2481_v29 = vpop.xlane.xlu1 %2480  ;;  %v2479_v2 = vpop.xlane.xlu0 %2478 }
 0x9fa   : > { %6674 = vrcp.f32 %v2481_v29 }
 0x9fb   : > { %6676 = vrcp.f32 %v2479_v2 }
 0x9fd   : > { %v2662_v0 = vpop.permute.xlu1 %2661  ;;  %v2483_v14 = vpop.xlane.xlu0 %2482 }
 0x9fe   : > { %6678 = vrcp.f32 %v2483_v14 }
 0xa01   : > { %v6456_v19 = vpop.permute.xlu1 %6455  ;;  %v2485_v27 = vpop.xlane.xlu0 %2484 }
 0xa02   : > { %6680 = vrcp.f32 %v2485_v27  ;;  %v6458_v17 = vunpack.i.h.bf16 %v6456_v19  ;;  %v6457_v62 = vunpack.i.l.bf16 %v6456_v19 }
 0xa04   : > { %v6675_v60 = vpop.eup %6674  ;;  %v6232_v39 = vpack.c.bf16 %v6458_v17, %v6457_v62 }
 0xa05   : > { %v6677_v41 = vpop.eup %6676  ;;  %v6461_v56 = vpop.permute.xlu1 %6460  ;;  %v2497_v61 = vmul.f32 %v6675_v60, %v7716_v34 }
 0xa06   : > { %v2660_v7 = vpop.permute.xlu0 %2659  ;;  %v2495_v53 = vmul.f32 %v6677_v41, %v7718_v21  ;;  %v6463_v60 = vunpack.i.h.bf16 %v6461_v56  ;;  %v6462_v41 = vunpack.i.l.bf16 %v6461_v56 }
 0xa07   : > { %5968 = vmatprep.subr.bf16.mxu1 %v2660_v7 }
 0xa08   : > { %5969 = vmatpush3.bf16.msra.mxu1 %v2660_v7  ;;  %v6679_v58 = vpop.eup %6678  ;;  %5962 = vmatprep.mubr.f32.mxu1 %v2495_v53  ;;  %v6238_v62 = vpack.c.bf16 %v6463_v60, %v6462_v41 }
 0xa09   : > { %5970 = vmatprep.subr.bf16.mxu1 %v2662_v0  ;;  %5963 = vmatmul.mubr.f32.gmra.mrb[48].mxu1 %v2497_v61  ;;  %v6471_v20 = vpop.permute.xlu1 %6470  ;;  %v2499_v36 = vmul.f32 %v6679_v58, %v7722_v44 }
 0xa0a   : > { %v6466_v26 = vpop.permute.xlu0 %6465  ;;  %v6473_v56 = vunpack.i.h.bf16 %v6471_v20 }
 0xa0b   : > { %5965 = vmatprep.mubr.f32.mxu1 %v2499_v36  ;;  %v6468_v53 = vunpack.i.h.bf16 %v6466_v26  ;;  %v6467_v58 = vunpack.i.l.bf16 %v6466_v26 }
 0xa0c   : > { %5971 = vmatpush3.bf16.msra.mxu1 %v2662_v0  ;;  %v6681_v40 = vpop.eup %6680 }
 0xa0d   : > { %6234 = vmatprep.subr.msk.bf16.mxu1 %vm7588_vm5, %v6232_v39  ;;  %v6481_v34 = vpop.permute.xlu1 %6480  ;;  %v2501_v21 = vmul.f32 %v6681_v40, %v7725_v32  ;;  %v6244_v36 = vpack.c.bf16 %v6468_v53, %v6467_v58  ;;  %v6472_v40 = vunpack.i.l.bf16 %v6471_v20 }
 0xa0e   : > { %v6476_v4 = vpop.permute.xlu0 %6475  ;;  %v6483_v26 = vunpack.i.h.bf16 %v6481_v34 }
 0xa0f   : > { %5966 = vmatmul.mubr.f32.gmra.mrb[50].mxu1 %v2501_v21  ;;  %v6250_v21 = vpack.c.bf16 %v6473_v56, %v6472_v40 }
 0xa11   : > { %v7778_v3 = vpop.permute.xlu1 %6490 }
 0xa12   : > { %v6486_v47 = vpop.permute.xlu0 %6485 }
 0xa13   : > { %v6488_v20 = vunpack.i.h.bf16 %v6486_v47 }
 0xa15   : > { %v7780_v49 = vpop.permute.xlu1 %2784 }
 0xa16   : > { %v7782_v30 = vpop.permute.xlu0 %2782 }
 0xa19   : > { %v7784_v44 = vpop.permute.xlu1 %2788 }
 0xa1a   : > { %v7786_v45 = vpop.permute.xlu0 %2786 }
 0xa1d   : > { %v7788_v13 = vpop.permute.xlu1 %2792 }
 0xa1e   : > { %v7790_v54 = vpop.permute.xlu0 %2790 }
 0xa21   : > { %v7792_v48 = vpop.permute.xlu1 %2796 }
 0xa22   : > { %v7794_v16 = vpop.permute.xlu0 %2794 }
 0xa25   : > { %v6501_v32 = vpop.permute.xlu1 %6500 }
 0xa26   : > { %v6496_v18 = vpop.permute.xlu0 %6495  ;;  %v6503_v52 = vunpack.i.h.bf16 %v6501_v32  ;;  %v6502_v63 = vunpack.i.l.bf16 %v6501_v32  ;;  %v6477_v32 = vunpack.i.l.bf16 %v6476_v4 }
 0xa27   : > { %v6498_v37 = vunpack.i.h.bf16 %v6496_v18  ;;  %v6497_v29 = vunpack.i.l.bf16 %v6496_v18 }
 0xa28   : > { %v6284_v0 = vpack.c.bf16 %v6503_v52, %v6502_v63  ;;  %v6482_v52 = vunpack.i.l.bf16 %v6481_v34  ;;  %v6492_v34 = vunpack.i.l.bf16 %v7778_v3 }
 0xa29   : > { %v6280_v2 = vpack.c.bf16 %v6498_v37, %v6497_v29  ;;  %v6487_v37 = vunpack.i.l.bf16 %v6486_v47 }
 0xa2a   : > { %v6262_v63 = vpack.c.bf16 %v6483_v26, %v6482_v52 }
 0xa2b   : > { %6281 = vmatprep.subr.bf16.mxu0 %v6280_v2  ;;  %v6268_v29 = vpack.c.bf16 %v6488_v20, %v6487_v37 }
 0xa2c   : > { %6283 = vmatpush3.bf16.msra.mxu0 %v6280_v2 }
 0xa2d   : > { %6285 = vmatprep.subr.bf16.mxu0 %v6284_v0 }
 0xa30   : > { %6287 = vmatpush3.bf16.msra.mxu0 %v6284_v0 }
 0xaa4   : > { %v5958_v14 = vpop.f32.mrb[44].mxu1 }
 0xaa5   : > { %v2616_v19 = vpop.f32.mrb[45].mxu1 }
 0xaa6   : > { %v2655_v27 = vpack.c.bf16 %v5958_v14, %v2616_v19 }
 0xaa8   : > { %v5961_v7 = vpop.f32.mrb[46].mxu1  ;;  %5972 = vmatprep.mubr.msk.bf16.mxu1 %vm920_vm4, %v2655_v27 }
 0xaa9   : > { %v2626_v61 = vpop.f32.mrb[47].mxu1 }
 0xaaa   : > { %v2656_v17 = vpack.c.bf16 %v5961_v7, %v2626_v61 }
 0xaac   : > { %5973 = vmatmul.mubr.msk.bf16.vlgmr.msra.gmra.mrb[52].mxu1 %vm920_vm4, %v2656_v17 }
 0xaad   : > { %6237 = vmatpush3.bf16.xpose.msk.msra.mxu1 %vm7588_vm5, %v6232_v39  ;;  %v6478_v39 = vunpack.i.h.bf16 %v6476_v4  ;;  %v6493_v4 = vunpack.i.h.bf16 %v7778_v3 }
 0xaae   : > { %6240 = vmatprep.subr.msk.bf16.mxu1 %vm7588_vm5, %v6238_v62 }
 0xaaf   : > { %v6256_v18 = vpack.c.bf16 %v6478_v39, %v6477_v32  ;;  %v6274_v2 = vpack.c.bf16 %v6493_v4, %v6492_v34 }
 0xab5   : > { %6243 = vmatpush3.bf16.xpose.msk.msra.mxu1 %vm7588_vm5, %v6238_v62 }
 0xab6   : > { %6246 = vmatprep.subr.msk.bf16.mxu1 %vm7588_vm5, %v6244_v36 }
 0xabd   : > { %6249 = vmatpush3.bf16.xpose.msk.msra.mxu1 %vm7588_vm5, %v6244_v36 }
 0xabe   : > { %6252 = vmatprep.subr.msk.bf16.mxu1 %vm7588_vm5, %v6250_v21 }
 0xac5   : > { %6255 = vmatpush3.bf16.xpose.msk.msra.mxu1 %vm7588_vm5, %v6250_v21 }
 0xac6   : > { %6258 = vmatprep.subr.msk.bf16.mxu1 %vm7588_vm5, %v6256_v18 }
 0xacd   : > { %6261 = vmatpush3.bf16.xpose.msk.msra.mxu1 %vm7588_vm5, %v6256_v18 }
 0xace   : > { %6264 = vmatprep.subr.msk.bf16.mxu1 %vm7588_vm5, %v6262_v63 }
 0xad5   : > { %6267 = vmatpush3.bf16.xpose.msk.msra.mxu1 %vm7588_vm5, %v6262_v63 }
 0xad6   : > { %6270 = vmatprep.subr.msk.bf16.mxu1 %vm7588_vm5, %v6268_v29 }
 0xadc   : > { %v5964_v0 = vpop.f32.mrb[48].mxu1 }
 0xadd   : > { %v2636_v14 = vpop.f32.mrb[49].mxu1  ;;  %6273 = vmatpush3.bf16.xpose.msk.msra.mxu1 %vm7588_vm5, %v6268_v29 }
 0xade   : > { %v2657_v19 = vpack.c.bf16 %v5964_v0, %v2636_v14  ;;  %6276 = vmatprep.subr.msk.bf16.mxu1 %vm7588_vm5, %v6274_v2 }
 0xae0   : > { %5976 = vmatprep.mubr.msk.bf16.mxu1 %vm920_vm4, %v2657_v19 }
 0xae2   : > { %v5967_v47 = vpop.f32.mrb[50].mxu1 }
 0xae3   : > { %v2646_v27 = vpop.f32.mrb[51].mxu1 }
 0xae4   : > { %v2658_v60 = vpack.c.bf16 %v5967_v47, %v2646_v27 }
 0xae5   : > { %6279 = vmatpush3.bf16.xpose.msk.msra.mxu1 %vm7588_vm5, %v6274_v2 }
 0xae6   : > { %5977 = vmatmul.mubr.msk.bf16.gmra.mrb[56].mxu1 %vm920_vm4, %v2658_v60 }
 0xae7   : > { %6012 = vmatprep.mubr.msk.f32.mxu1 %vm920_vm4, %v7782_v30 }
 0xaee   : > { %6013 = vmatmul.mubr.msk.f32.vlgmr.msra.gmra.mrb[60].mxu1 %vm920_vm4, %v7780_v49 }
 0xaef   : > { %6015 = vmatprep.mubr.msk.f32.mxu1 %vm920_vm4, %v7786_v45 }
 0xaf2   : > { %6016 = vmatmul.mubr.msk.f32.gmra.mrb[62].mxu1 %vm920_vm4, %v7784_v44 }
 0xaf3   : > { %6018 = vmatprep.mubr.msk.f32.mxu1 %vm920_vm4, %v7790_v54 }
 0xaf6   : > { %6019 = vmatmul.mubr.msk.f32.gmra.mrb[64].mxu1 %vm920_vm4, %v7788_v13 }
 0xaf7   : > { %6021 = vmatprep.mubr.msk.f32.mxu1 %vm920_vm4, %v7794_v16 }
 0xafa   : > { %6022 = vmatmul.mubr.msk.f32.gmra.mrb[66].mxu1 %vm920_vm4, %v7792_v48 }
 0xb7f   : > { %v7848_v15 = vpop.f32.mrb[52].mxu1 }
 0xb80   : > { %v7850_v3 = vpop.f32.mrb[53].mxu1 }
 0xb81   : > { %v7852_v49 = vpop.f32.mrb[54].mxu1 }
 0xb82   : > { %v7854_v30 = vpop.f32.mrb[55].mxu1 }
 0xbb9   : > { %v7856_v44 = vpop.f32.mrb[56].mxu1 }
 0xbba   : > { %v7858_v45 = vpop.f32.mrb[57].mxu1 }
 0xbbb   : > { %v7860_v54 = vpop.f32.mrb[58].mxu1 }
 0xbbc   : > { %v7862_v13 = vpop.f32.mrb[59].mxu1 }
 0xbc1   : > { %v6014_v16 = vpop.f32.mrb[60].mxu1 }
 0xbc2   : > { %v2984_v41 = vmul.f32 0.17677669, %v6014_v16  ;;  %v2944_v7 = vpop.f32.mrb[61].mxu1 }
 0xbc3   : > { %v2983_v48 = vmul.f32 0.17677669, %v2944_v7 }
 0xbc4   : > { %v2992_v61 = vadd.f32 %v7682_v38, %v2984_v41 }
 0xbc5   : > { %v2991_v17 = vadd.f32 %v7682_v38, %v2983_v48  ;;  %v6017_v62 = vpop.f32.mrb[62].mxu1 }
 0xbc6   : > { %v2986_v53 = vmul.f32 0.17677669, %v6017_v62  ;;  %3001 = vmax.xlane.f32.xlu1 %v2992_v61  ;;  %v2954_v58 = vpop.f32.mrb[63].mxu1 }
 0xbc7   : > { %2999 = vmax.xlane.f32.xlu0 %v2991_v17  ;;  %v2985_v56 = vmul.f32 0.17677669, %v2954_v58 }
 0xbc8   : > { %v2994_v36 = vadd.f32 %v7682_v38, %v2986_v53 }
 0xbc9   : > { %v6020_v40 = vpop.f32.mrb[64].mxu1  ;;  %v2993_v39 = vadd.f32 %v7682_v38, %v2985_v56 }
 0xbca   : > { %v2964_v21 = vpop.f32.mrb[65].mxu1  ;;  %v2988_v26 = vmul.f32 0.17677669, %v6020_v40 }
 0xbcb   : > { %3005 = vmax.xlane.f32.xlu0 %v2994_v36  ;;  %v2987_v37 = vmul.f32 0.17677669, %v2964_v21 }
 0xbcc   : > { %v2996_v52 = vadd.f32 %v7682_v38, %v2988_v26 }
 0xbcd   : > { %v6023_v32 = vpop.f32.mrb[66].mxu1  ;;  %v2995_v29 = vadd.f32 %v7682_v38, %v2987_v37 }
 0xbce   : > { %v2974_v18 = vpop.f32.mrb[67].mxu1  ;;  %v2990_v63 = vmul.f32 0.17677669, %v6023_v32 }
 0xbcf   : > { %3003 = vmax.xlane.f32.xlu0 %v2993_v39  ;;  %v2989_v4 = vmul.f32 0.17677669, %v2974_v18 }
 0xbd0   : > { %v2998_v20 = vadd.f32 %v7682_v38, %v2990_v63 }
 0xbd1   : > { %v2997_v34 = vadd.f32 %v7682_v38, %v2989_v4 }
 0xbd7   : > { %6510 = vrot.lane.b32.xlu1 %v7607_v57, %s6943_s23 }
 0xbe5   : > { %6505 = vrot.lane.b32.xlu0 %v7609_v24, %s6943_s23 }
 0xbfb   : > { %3009 = vmax.xlane.f32.xlu1 %v2996_v52 }
 0xbff   : > { %3013 = vmax.xlane.f32.xlu1 %v2998_v20 }
 0xc04   : > { %3007 = vmax.xlane.f32.xlu0 %v2995_v29 }
 0xc08   : > { %3011 = vmax.xlane.f32.xlu0 %v2997_v34 }
 0xc10   : > { %6520 = vrot.lane.b32.xlu1 %v7611_v43, %s6943_s23 }
 0xc1e   : > { %6515 = vrot.lane.b32.xlu0 %v7613_v51, %s6943_s23 }
 0xc53   : > { %v3002_v57 = vpop.xlane.xlu1 %3001 }
 0xc54   : > { %v3016_v24 = vsub.f32 %v2992_v61, %v3002_v57  ;;  %v3000_v2 = vpop.xlane.xlu0 %2999 }
 0xc55   : > { %v3015_v0 = vsub.f32 %v2991_v17, %v3000_v2 }
 0xc56   : > { %v3025_v14 = vmul.f32 1.442695, %v3016_v24 }
 0xc57   : > { %v3023_v19 = vmul.f32 1.442695, %v3015_v0  ;;  %v6511_v38 = vpop.permute.xlu1 %6510 }
 0xc58   : > { %6682 = vpow2.f32 %v3025_v14  ;;  %v3006_v47 = vpop.xlane.xlu0 %3005  ;;  %v6513_v43 = vunpack.i.h.bf16 %v6511_v38  ;;  %v6512_v62 = vunpack.i.l.bf16 %v6511_v38 }
 0xc59   : > { %6684 = vpow2.f32 %v3023_v19  ;;  %v3018_v27 = vsub.f32 %v2994_v36, %v3006_v47 }
 0xc5a   : > { %v6292_v36 = vpack.c.bf16 %v6513_v43, %v6512_v62  ;;  %v6840_v43 = vld [vmem:[%s7088_s12 + $0xa4] ss:$24 sps:$4 sm:$0xff]  }
 0xc5b   : > { %v3029_v60 = vmul.f32 1.442695, %v3018_v27 }
 0xc5c   : > { %v3004_v16 = vpop.xlane.xlu0 %3003 }
 0xc5d   : > { %6686 = vpow2.f32 %v3029_v60  ;;  %v3017_v41 = vsub.f32 %v2993_v39, %v3004_v16 }
 0xc5f   : > { %v3027_v7 = vmul.f32 1.442695, %v3017_v41 }
 0xc60   : > { %v6506_v48 = vpop.permute.xlu0 %6505 }
 0xc61   : > { %6688 = vpow2.f32 %v3027_v7  ;;  %v6508_v51 = vunpack.i.h.bf16 %v6506_v48  ;;  %v6507_v61 = vunpack.i.l.bf16 %v6506_v48  ;;  %v6839_v7 = vld [vmem:[%s7088_s12 + $0x74] ss:$24 sps:$4 sm:$0xff]  }
 0xc62   : > { %v7880_v53 = vpop.eup %6682 }
 0xc63   : > { %v6685_v17 = vpop.eup %6684  ;;  %v6288_v58 = vpack.c.bf16 %v6508_v51, %v6507_v61  ;;  %3041 = vadd.xlane.f32.xlu0 %v7880_v53 }
 0xc64   : > { %3039 = vadd.xlane.f32.xlu1 %v6685_v17 }
 0xc65   : > { %6289 = vmatprep.subr.bf16.mxu0 %v6288_v58 }
 0xc66   : > { %6291 = vmatpush3.bf16.msra.mxu0 %v6288_v58 }
 0xc67   : > { %v7883_v56 = vpop.eup %6686  ;;  %6293 = vmatprep.subr.bf16.mxu0 %v6292_v36 }
 0xc68   : > { %3045 = vadd.xlane.f32.xlu1 %v7883_v56 }
 0xc6a   : > { %6295 = vmatpush3.bf16.msra.mxu0 %v6292_v36 }
 0xc6b   : > { %v7886_v40 = vpop.eup %6688 }
 0xc6c   : > { %3043 = vadd.xlane.f32.xlu1 %v7886_v40 }
 0xc88   : > { %v3010_v21 = vpop.xlane.xlu1 %3009 }
 0xc89   : > { %v3020_v39 = vsub.f32 %v2996_v52, %v3010_v21 }
 0xc8b   : > { %v3033_v32 = vmul.f32 1.442695, %v3020_v39 }
 0xc8c   : > { %v3014_v18 = vpop.xlane.xlu1 %3013 }
 0xc8d   : > { %6690 = vpow2.f32 %v3033_v32  ;;  %v3022_v26 = vsub.f32 %v2998_v20, %v3014_v18 }
 0xc8f   : > { %v3037_v63 = vmul.f32 1.442695, %v3022_v26 }
 0xc90   : > { %v6521_v2 = vpop.permute.xlu1 %6520 }
 0xc91   : > { %6692 = vpow2.f32 %v3037_v63  ;;  %v3008_v37 = vpop.xlane.xlu0 %3007  ;;  %v6523_v47 = vunpack.i.h.bf16 %v6521_v2  ;;  %v6522_v27 = vunpack.i.l.bf16 %v6521_v2 }
 0xc92   : > { %v3019_v4 = vsub.f32 %v2995_v29, %v3008_v37 }
 0xc93   : > { %v6300_v38 = vpack.c.bf16 %v6523_v47, %v6522_v27 }
 0xc94   : > { %v3031_v57 = vmul.f32 1.442695, %v3019_v4 }
 0xc95   : > { %v3012_v24 = vpop.xlane.xlu0 %3011 }
 0xc96   : > { %6694 = vpow2.f32 %v3031_v57  ;;  %v3021_v0 = vsub.f32 %v2997_v34, %v3012_v24 }
 0xc97   : > { %v7889_v14 = vpop.eup %6690 }
 0xc98   : > { %v3035_v19 = vmul.f32 1.442695, %v3021_v0  ;;  %3049 = vadd.xlane.f32.xlu1 %v7889_v14 }
 0xc99   : > { %v6516_v52 = vpop.permute.xlu0 %6515 }
 0xc9a   : > { %6696 = vpow2.f32 %v3035_v19  ;;  %v6518_v60 = vunpack.i.h.bf16 %v6516_v52  ;;  %v6517_v20 = vunpack.i.l.bf16 %v6516_v52 }
 0xc9b   : > { %v7892_v16 = vpop.eup %6692 }
 0xc9c   : > { %v6296_v29 = vpack.c.bf16 %v6518_v60, %v6517_v20  ;;  %3053 = vadd.xlane.f32.xlu1 %v7892_v16 }
 0xc9e   : > { %6297 = vmatprep.subr.bf16.mxu0 %v6296_v29 }
 0xc9f   : > { %6299 = vmatpush3.bf16.msra.mxu0 %v6296_v29 }
 0xca0   : > { %v6695_v34 = vpop.eup %6694  ;;  %6301 = vmatprep.subr.bf16.mxu0 %v6300_v38 }
 0xca1   : > { %3047 = vadd.xlane.f32.xlu0 %v6695_v34 }
 0xca3   : > { %6303 = vmatpush3.bf16.msra.mxu0 %v6300_v38 }
 0xca4   : > { %v7895_v41 = vpop.eup %6696 }
 0xca5   : > { %3051 = vadd.xlane.f32.xlu1 %v7895_v41 }
 0xcb6   : > { %6530 = vrot.lane.b32.xlu1 %v7617_v59, %s6943_s23 }
 0xcb7   : > { %6525 = vrot.lane.b32.xlu0 %v7615_v55, %s6943_s23 }
 0xcba   : > { %2752 = vrot.lane.b32.xlu1 %v7854_v30, %s6942_s30 }
 0xcbb   : > { %3228 = vrot.lane.b32.xlu0 %v6839_v7, %s6942_s30 }
 0xcbf   : > { %3230 = vrot.lane.b32.xlu0 %v6840_v43, %s6942_s30 }
 0xcc3   : > { %2750 = vrot.lane.b32.xlu0 %v7850_v3, %s6942_s30 }
 0xcf0   : > { %v3042_v58 = vpop.xlane.xlu0 %3041 }
 0xcf1   : > { %v3040_v48 = vpop.xlane.xlu1 %3039 }
 0xcf2   : > { %6698 = vrcp.f32 %v3040_v48 }
 0xcf3   : > { %6700 = vrcp.f32 %v3042_v58 }
 0xcf5   : > { %v3046_v59 = vpop.xlane.xlu1 %3045 }
 0xcf9   : > { %v3044_v61 = vpop.xlane.xlu1 %3043 }
 0xcfa   : > { %6702 = vrcp.f32 %v3044_v61 }
 0xcfb   : > { %6704 = vrcp.f32 %v3046_v59 }
 0xcfc   : > { %v6699_v62 = vpop.eup %6698 }
 0xcfd   : > { %v3056_v51 = vmul.f32 %v6699_v62, %v6685_v17  ;;  %v6701_v4 = vpop.eup %6700 }
 0xcfe   : > { %v3058_v2 = vmul.f32 %v6701_v4, %v7880_v53 }
 0xcff   : > { %6056 = vmatprep.mubr.f32.mxu0 %v3056_v51 }
 0xd04   : > { %v6703_v24 = vpop.eup %6702 }
 0xd05   : > { %v6705_v0 = vpop.eup %6704  ;;  %v3060_v19 = vmul.f32 %v6703_v24, %v7886_v40 }
 0xd06   : > { %v3062_v27 = vmul.f32 %v6705_v0, %v7883_v56 }
 0xd25   : > { %v3050_v55 = vpop.xlane.xlu1 %3049 }
 0xd29   : > { %v3054_v36 = vpop.xlane.xlu1 %3053 }
 0xd2e   : > { %v3048_v30 = vpop.xlane.xlu0 %3047 }
 0xd2f   : > { %6706 = vrcp.f32 %v3048_v30 }
 0xd30   : > { %6708 = vrcp.f32 %v3050_v55 }
 0xd32   : > { %v3052_v21 = vpop.xlane.xlu1 %3051  ;;  %v6526_v39 = vpop.permute.xlu0 %6525 }
 0xd33   : > { %v6528_v32 = vunpack.i.h.bf16 %v6526_v39  ;;  %v6527_v18 = vunpack.i.l.bf16 %v6526_v39  ;;  %6710 = vrcp.f32 %v3052_v21 }
 0xd34   : > { %6712 = vrcp.f32 %v3054_v36 }
 0xd35   : > { %v6304_v3 = vpack.c.bf16 %v6528_v32, %v6527_v18 }
 0xd36   : > { %v6531_v26 = vpop.permute.xlu1 %6530  ;;  %v3229_v57 = vpop.permute.xlu0 %3228 }
 0xd37   : > { %v6533_v63 = vunpack.i.h.bf16 %v6531_v26  ;;  %v6532_v37 = vunpack.i.l.bf16 %v6531_v26  ;;  %6305 = vmatprep.subr.bf16.mxu0 %v6304_v3 }
 0xd38   : > { %6307 = vmatpush3.bf16.msra.mxu0 %v6304_v3 }
 0xd39   : > { %v6308_v17 = vpack.c.bf16 %v6533_v63, %v6532_v37  ;;  %v6707_v47 = vpop.eup %6706  ;;  %v6841_v37 = vld [vmem:[%s7093_s0 + $0x28] ss:$0 sm:$0xff] }
 0xd3a   : > { %v3231_v52 = vpop.permute.xlu0 %3230  ;;  %v6709_v60 = vpop.eup %6708  ;;  %v3064_v20 = vmul.f32 %v6707_v47, %v6695_v34 }
 0xd3b   : > { %6309 = vmatprep.subr.bf16.mxu0 %v6308_v17  ;;  %v3066_v53 = vmul.f32 %v6709_v60, %v7889_v14 }
 0xd3c   : > { %6311 = vmatpush3.bf16.msra.mxu0 %v6308_v17 }
 0xd3d   : > { %6068 = vmatprep.subr.bf16.mxu0 %v3229_v57  ;;  %v6711_v29 = vpop.eup %6710 }
 0xd3e   : > { %v6713_v38 = vpop.eup %6712  ;;  %v3068_v7 = vmul.f32 %v6711_v29, %v7895_v41 }
 0xd3f   : > { %6057 = vmatmul.mubr.f32.vlgmr.msra.gmra.mrb[44].mxu0 %v3058_v2  ;;  %v3070_v40 = vmul.f32 %v6713_v38, %v7892_v16 }
 0xd40   : > { %6059 = vmatprep.mubr.f32.mxu0 %v3060_v19  ;;  %6069 = vmatpush3.bf16.msra.mxu0 %v3229_v57 }
 0xd41   : > { %6070 = vmatprep.subr.bf16.mxu0 %v3231_v52 }
 0xd43   : > { %6060 = vmatmul.mubr.f32.gmra.mrb[46].mxu0 %v3062_v27 }
 0xd44   : > { %6062 = vmatprep.mubr.f32.mxu0 %v3064_v20  ;;  %6071 = vmatpush3.bf16.msra.mxu0 %v3231_v52 }
 0xd47   : > { %6063 = vmatmul.mubr.f32.gmra.mrb[48].mxu0 %v3066_v53 }
 0xd48   : > { %6065 = vmatprep.mubr.f32.mxu0 %v3068_v7 }
 0xd4b   : > { %6066 = vmatmul.mubr.f32.gmra.mrb[50].mxu0 %v3070_v40 }
 0xe12   : > { %v6058_v43 = vpop.f32.mrb[44].mxu0 }
 0xe13   : > { %v3185_v48 = vpop.f32.mrb[45].mxu0 }
 0xe14   : > { %v3224_v56 = vpack.c.bf16 %v6058_v43, %v3185_v48 }
 0xe16   : > { %v6061_v62 = vpop.f32.mrb[46].mxu0  ;;  %6072 = vmatprep.mubr.msk.bf16.mxu0 %vm920_vm4, %v3224_v56 }
 0xe17   : > { %v3195_v34 = vpop.f32.mrb[47].mxu0 }
 0xe18   : > { %v3225_v51 = vpack.c.bf16 %v6061_v62, %v3195_v34 }
 0xe1a   : > { %v6064_v59 = vpop.f32.mrb[48].mxu0  ;;  %6073 = vmatmul.mubr.msk.bf16.vlgmr.msra.gmra.mrb[52].mxu0 %vm920_vm4, %v3225_v51 }
 0xe1b   : > { %v3205_v14 = vpop.f32.mrb[49].mxu0 }
 0xe1c   : > { %v3226_v61 = vpack.c.bf16 %v6064_v59, %v3205_v14  ;;  %v6582_v14 = vld [vmem:[%s7088_s12 + $0x8] ss:$24 sps:$4 sm:$0xff]  }
 0xe1e   : > { %v6067_v55 = vpop.f32.mrb[50].mxu0  ;;  %6076 = vmatprep.mubr.msk.bf16.mxu0 %vm920_vm4, %v3226_v61 }
 0xe1f   : > { %v3215_v41 = vpop.f32.mrb[51].mxu0 }
 0xe20   : > { %v3227_v58 = vpack.c.bf16 %v6067_v55, %v3215_v41 }
 0xe22   : > { %6077 = vmatmul.mubr.msk.bf16.gmra.mrb[56].mxu0 %vm920_vm4, %v3227_v58 }
 0xe23   : > { %3664 = vmatprep.mubr.bf16.mxu0 %v6941_v9 }
 0xeed   : > { %v6074_v16 = vpop.f32.mrb[52].mxu0 }
 0xeee   : > { %v3280_v36 = vpop.f32.mrb[53].mxu0 }
 0xeef   : > { %3319 = vrot.lane.b32.xlu0 %v3280_v36, %s6942_s30  ;;  %v6075_v30 = vpop.f32.mrb[54].mxu0 }
 0xef0   : > { %v3283_v21 = vpop.f32.mrb[55].mxu0 }
 0xef1   : > { %3321 = vrot.lane.b32.xlu1 %v3283_v21, %s6942_s30 }
 0xef3   : > { %2754 = vrot.lane.b32.xlu0 %v7848_v15, %s6942_s30  ;;  %v2751_v15 = vpop.permute.xlu0 %2750 }
 0xef5   : > { %2756 = vrot.lane.b32.xlu1 %v7852_v49, %s6942_s30  ;;  %v6078_v39 = vpop.f32.mrb[56].mxu0  ;;  %v2753_v49 = vpop.permute.xlu1 %2752 }
 0xef6   : > { %v3296_v32 = vpop.f32.mrb[57].mxu0  ;;  %v2775_v19 = vadd.f32 %v6841_v37, %v2753_v49 }
 0xef7   : > { %3323 = vrot.lane.b32.xlu0 %v6074_v16, %s6942_s30  ;;  %v6079_v18 = vpop.f32.mrb[58].mxu0 }
 0xef8   : > { %v3299_v3 = vpop.f32.mrb[59].mxu0 }
 0xef9   : > { %3325 = vrot.lane.b32.xlu1 %v6075_v30, %s6942_s30 }
 0xefb   : > { %2758 = vrot.lane.b32.xlu0 %v7858_v45, %s6942_s30 }
 0xefd   : > { %2760 = vrot.lane.b32.xlu1 %v7862_v13, %s6942_s30 }
 0xeff   : > { %3327 = vrot.lane.b32.xlu0 %v3296_v32, %s6942_s30  ;;  %v6584_v32 = vld [vmem:[%s7088_s12 + $0x38] ss:$24 sps:$4 sm:$0xff]  }
 0xf01   : > { %3329 = vrot.lane.b32.xlu1 %v3299_v3, %s6942_s30  ;;  %v6587_v3 = vld [vmem:[%s7088_s12 + $0x6c] ss:$24 sps:$4 sm:$0xff]  }
 0xf03   : > { %2762 = vrot.lane.b32.xlu0 %v7856_v44, %s6942_s30  ;;  %v2774_v44 = vadd.f32 %v6841_v37, %v2751_v15 }
 0xf05   : > { %2764 = vrot.lane.b32.xlu1 %v7860_v54, %s6942_s30 }
 0xf07   : > { %3331 = vrot.lane.b32.xlu0 %v6078_v39, %s6942_s30 }
 0xf09   : > { %3333 = vrot.lane.b32.xlu1 %v6079_v18, %s6942_s30  ;;  %v6586_v18 = vld [vmem:[%s7088_s12 + $0xc] ss:$24 sps:$4 sm:$0xff]  }
 0xf61   : > { %v3320_v45 = vpop.permute.xlu0 %3319 }
 0xf62   : > { %v3343_v47 = vadd.f32 %v3320_v45, %v2774_v44 }
 0xf63   : > { %v3322_v26 = vpop.permute.xlu1 %3321 }
 0xf64   : > { %v3344_v27 = vadd.f32 %v3322_v26, %v2775_v19 }
 0xf65   : > { %v2755_v63 = vpop.permute.xlu0 %2754 }
 0xf66   : > { %v2776_v17 = vadd.f32 %v6841_v37, %v2755_v63 }
 0xf67   : > { %v2757_v13 = vpop.permute.xlu1 %2756 }
 0xf68   : > { %v2777_v57 = vadd.f32 %v6841_v37, %v2757_v13 }
 0xf69   : > { %v3324_v4 = vpop.permute.xlu0 %3323 }
 0xf6a   : > { %v3345_v24 = vadd.f32 %v3324_v4, %v2776_v17 }
 0xf6b   : > { %v3326_v2 = vpop.permute.xlu1 %3325 }
 0xf6c   : > { %v3346_v0 = vadd.f32 %v3326_v2, %v2777_v57  ;;  %3363 = vrot.lane.b32.xlu0 %v3345_v24, %s6942_s30  ;;  %v6589_v57 = vld [vmem:[%s7088_s12 + $0x3c] ss:$24 sps:$4 sm:$0xff]  }
 0xf6d   : > { %v2759_v54 = vpop.permute.xlu0 %2758 }
 0xf6e   : > { %3365 = vrot.lane.b32.xlu1 %v3346_v0, %s6942_s30  ;;  %v2778_v56 = vadd.f32 %v6841_v37, %v2759_v54 }
 0xf6f   : > { %v2761_v52 = vpop.permute.xlu1 %2760 }
 0xf70   : > { %3359 = vrot.lane.b32.xlu0 %v3343_v47, %s6942_s30  ;;  %v2779_v34 = vadd.f32 %v6841_v37, %v2761_v52 }
 0xf71   : > { %v3328_v60 = vpop.permute.xlu0 %3327 }
 0xf72   : > { %3361 = vrot.lane.b32.xlu1 %v3344_v27, %s6942_s30  ;;  %v3347_v51 = vadd.f32 %v3328_v60, %v2778_v56 }
 0xf73   : > { %v3330_v20 = vpop.permute.xlu1 %3329 }
 0xf74   : > { %v3348_v59 = vadd.f32 %v3330_v20, %v2779_v34 }
 0xf75   : > { %v2763_v29 = vpop.permute.xlu0 %2762 }
 0xf76   : > { %v2780_v38 = vadd.f32 %v6841_v37, %v2763_v29 }
 0xf77   : > { %v2765_v53 = vpop.permute.xlu1 %2764 }
 0xf78   : > { %v2781_v40 = vadd.f32 %v6841_v37, %v2765_v53 }
 0xf79   : > { %v3332_v7 = vpop.permute.xlu0 %3331 }
 0xf7a   : > { %v3349_v43 = vadd.f32 %v3332_v7, %v2780_v38 }
 0xf7b   : > { %v3334_v48 = vpop.permute.xlu1 %3333 }
 0xf7c   : > { %v3350_v62 = vadd.f32 %v3334_v48, %v2781_v40  ;;  %3371 = vrot.lane.b32.xlu0 %v3349_v43, %s6942_s30 }
 0xf7e   : > { %3373 = vrot.lane.b32.xlu1 %v3350_v62, %s6942_s30 }
 0xf80   : > { %3367 = vrot.lane.b32.xlu0 %v3347_v51, %s6942_s30 }
 0xf82   : > { %3369 = vrot.lane.b32.xlu1 %v3348_v59, %s6942_s30 }
 0xf86   : > { %3578 = vrot.lane.b32.xlu1 %v6582_v14, %s6942_s30 }
 0xfde   : > { %v3364_v61 = vpop.permute.xlu0 %3363 }
 0xfdf   : > { %v7953_v55 = vadd.f32 %v3364_v61, %v7558_v46 }
 0xfe0   : > { %v3366_v41 = vpop.permute.xlu1 %3365 }
 0xfe1   : > { %9973 = vst [vmem:[#allocation15_spill] sm:$0xff] %v7953_v55  ;;  %v3397_v58 = vsel %vm439_vm1, %v7953_v55, 0.0 }
 0xfe2   : > { %3398 = vadd.xlane.f32.xlu0 %v3397_v58  ;;  %v3360_v16 = vpop.permute.xlu0 %3359 }
 0xfe3   : > { %v7958_v36 = vadd.f32 %v3360_v16, %v7550_v33 }
 0xfe4   : > { %v3362_v30 = vpop.permute.xlu1 %3361 }
 0xfe5   : > { %9974 = vst [vmem:[#allocation16_spill] sm:$0xff] %v7958_v36  ;;  %v7961_v21 = vadd.f32 %v3362_v30, %v7553_v35  ;;  %v3391_v39 = vsel %vm439_vm1, %v7958_v36, 0.0  ;;  %v7974_v35 = vadd.f32 %v3366_v41, %v7561_v50 }
 0xfe6   : > { %3392 = vadd.xlane.f32.xlu0 %v3391_v39 }
 0xfe7   : > { %9975 = vst [vmem:[#allocation17_spill] sm:$0xff] %v7961_v21  ;;  %v3394_v46 = vsel %vm439_vm1, %v7961_v21, 0.0  ;;  %9976 = vst [vmem:[#allocation18_spill] sm:$0xff] %v7974_v35  ;;  %v3400_v45 = vsel %vm439_vm1, %v7974_v35, 0.0 }
 0xfe8   : > { %3395 = vadd.xlane.f32.xlu1 %v3394_v46 }
 0xfee   : > { %v3372_v33 = vpop.permute.xlu0 %3371 }
 0xfef   : > { %v7977_v49 = vadd.f32 %v3372_v33, %v7576_v1 }
 0xff0   : > { %v3374_v15 = vpop.permute.xlu1 %3373 }
 0xff1   : > { %9977 = vst [vmem:[#allocation19_spill] sm:$0xff] %v7977_v49  ;;  %v7982_v63 = vadd.f32 %v3374_v15, %v7579_v23  ;;  %v3409_v50 = vsel %vm439_vm1, %v7977_v49, 0.0 }
 0xff2   : > { %v3368_v26 = vpop.permute.xlu0 %3367 }
 0xff3   : > { %9978 = vst [vmem:[#allocation20_spill] sm:$0xff] %v7982_v63  ;;  %v7985_v37 = vadd.f32 %v3368_v26, %v7568_v5  ;;  %v3412_v17 = vsel %vm439_vm1, %v7982_v63, 0.0  ;;  %v6590_v5 = vld [vmem:[%s7088_s12 + $0x68] ss:$24 sps:$4 sm:$0xff]  }
 0xff4   : > { %v3370_v13 = vpop.permute.xlu1 %3369 }
 0xff5   : > { %9979 = vst [vmem:[#allocation21_spill] sm:$0xff] %v7985_v37  ;;  %v7990_v1 = vadd.f32 %v3370_v13, %v7571_v10  ;;  %v3403_v4 = vsel %vm439_vm1, %v7985_v37, 0.0 }
 0xff7   : > { %9980 = vst [vmem:[#allocation22_spill] sm:$0xff] %v7990_v1  ;;  %v3406_v23 = vsel %vm439_vm1, %v7990_v1, 0.0 }
 0xff8   : > { %v3579_v52 = vpop.permute.xlu1 %3578 }
 0xff9   : > { %3582 = vrot.lane.b32.xlu1 %v6584_v32, %s6942_s30 }
 0xffc   : > { %3580 = vrot.lane.b32.xlu0 %v6586_v18, %s6942_s30 }
 0xffd   : > { %3588 = vrot.lane.b32.xlu1 %v6587_v3, %s6942_s30 }
0x101b   : > { %3401 = vadd.xlane.f32.xlu0 %v3400_v45 }
0x101f   : > { %3410 = vadd.xlane.f32.xlu0 %v3409_v50 }
0x1021   : > { %3413 = vadd.xlane.f32.xlu1 %v3412_v17 }
0x1023   : > { %3404 = vadd.xlane.f32.xlu0 %v3403_v4 }
0x1025   : > { %3407 = vadd.xlane.f32.xlu1 %v3406_v23 }
0x1036   : > { %3586 = vrot.lane.b32.xlu1 %v6590_v5, %s6942_s30 }
0x1039   : > { %3584 = vrot.lane.b32.xlu0 %v6589_v57, %s6942_s30 }
0x106f   : > { %v3399_v10 = vpop.xlane.xlu0 %3398 }
0x1070   : > { %v3417_v24 = vmul.f32 0.015625, %v3399_v10 }
0x1072   : > { %v8003_v2 = vsub.f32 %v7953_v55, %v3417_v24 }
0x1073   : > { %v3393_v44 = vpop.xlane.xlu0 %3392 }
0x1074   : > { %v3415_v0 = vmul.f32 0.015625, %v3393_v44  ;;  %v3433_v54 = vmul.f32 %v8003_v2, %v8003_v2 }
0x1075   : > { %v3396_v38 = vpop.xlane.xlu1 %3395 }
0x1076   : > { %v8008_v19 = vsub.f32 %v7958_v36, %v3415_v0  ;;  %v3445_v47 = vsel %vm439_vm1, %v3433_v54, 0.0  ;;  %v3416_v40 = vmul.f32 0.015625, %v3396_v38  ;;  %v6593_v54 = vld [vmem:[%s7088_s12 + $0x98] ss:$24 sps:$4 sm:$0xff]  }
0x1077   : > { %v3581_v27 = vpop.permute.xlu0 %3580  ;;  %3446 = vadd.xlane.f32.xlu0 %v3445_v47  ;;  %v6591_v47 = vld [vmem:[%s7088_s12 + $0x9c] ss:$24 sps:$4 sm:$0xff]  }
0x1078   : > { %v3594_v60 = vsel %vm439_vm1, %v3579_v52, %v3581_v27  ;;  %v3595_v20 = vsel %vm439_vm1, %v3581_v27, %v7443_v11  ;;  %v3431_v29 = vmul.f32 %v8008_v19, %v8008_v19  ;;  %v8018_v56 = vsub.f32 %v7961_v21, %v3416_v40  ;;  %v5501_v52 = vld [vmem:[%s7093_s0 + $0x10] ss:$8 sm:$0x7]  ;;  %v3822_v40 = vld [vmem:[%s9812_s4 + $0x28] sm:$0xff] }
0x1079   : > { %3632 = vmatprep.subr.bf16.mxu0 %v3595_v20  ;;  %v3583_v7 = vpop.permute.xlu1 %3582  ;;  %v3545_v27 = vrot.slane %v5501_v52, %v7545_v6  ;;  %v3817_v20 = vld [vmem:[%s9812_s4] sm:$0xff]  ;;  %v3820_v38 = vld [vmem:[%s9812_s4 + $0x18] sm:$0xff] }
0x107a   : > { %3633 = vmatpush1.bf16.msra.mxu0 %v3594_v60  ;;  %v3439_v53 = vsel %vm439_vm1, %v3431_v29, 0.0  ;;  %v3432_v61 = vmul.f32 %v8018_v56, %v8018_v56  ;;  %v3537_v60 = vrot.slane %v5501_v52, %v7206_v42  ;;  %v3819_v29 = vld [vmem:[%s9812_s4 + $0x10] sm:$0xff] }
0x107b   : > { %3440 = vadd.xlane.f32.xlu0 %v3439_v53  ;;  %v3818_v53 = vld [vmem:[%s9812_s4 + $0x8] sm:$0xff] }
0x107c   : > { %v3442_v32 = vsel %vm439_vm1, %v3432_v61, 0.0 }
0x107d   : > { %v3589_v62 = vpop.permute.xlu1 %3588 }
0x10a8   : > { %v3402_v43 = vpop.xlane.xlu0 %3401 }
0x10a9   : > { %v3418_v48 = vmul.f32 0.015625, %v3402_v43  ;;  %v6945_v43 = vmov 1  }
0x10ab   : > { %v8021_v34 = vsub.f32 %v7974_v35, %v3418_v48  ;;  %v3824_v48 = vld [vmem:[%s9812_s4 + $0x38] sm:$0xff] }
0x10ac   : > { %v3411_v11 = vpop.xlane.xlu0 %3410 }
0x10ad   : > { %v3421_v51 = vmul.f32 0.015625, %v3411_v11  ;;  %v3434_v59 = vmul.f32 %v8021_v34, %v8021_v34 }
0x10ae   : > { %v3414_v14 = vpop.xlane.xlu1 %3413 }
0x10af   : > { %v8028_v41 = vsub.f32 %v7977_v49, %v3421_v51  ;;  %v3422_v58 = vmul.f32 0.015625, %v3414_v14  ;;  %v3448_v16 = vsel %vm439_vm1, %v3434_v59, 0.0 }
0x10b0   : > { %v3405_v30 = vpop.xlane.xlu0 %3404  ;;  %3449 = vadd.xlane.f32.xlu1 %v3448_v16 }
0x10b1   : > { %v3419_v39 = vmul.f32 0.015625, %v3405_v30  ;;  %v8033_v18 = vsub.f32 %v7982_v63, %v3422_v58  ;;  %v3437_v15 = vmul.f32 %v8028_v41, %v8028_v41 }
0x10b2   : > { %v3408_v46 = vpop.xlane.xlu1 %3407 }
0x10b3   : > { %v8036_v3 = vsub.f32 %v7985_v37, %v3419_v39  ;;  %v3420_v33 = vmul.f32 0.015625, %v3408_v46  ;;  %v3457_v5 = vsel %vm439_vm1, %v3437_v15, 0.0  ;;  %v3438_v57 = vmul.f32 %v8033_v18, %v8033_v18 }
0x10b4   : > { %v3585_v45 = vpop.permute.xlu0 %3584  ;;  %3443 = vadd.xlane.f32.xlu1 %v3442_v32 }
0x10b5   : > { %v8041_v26 = vsub.f32 %v7990_v1, %v3420_v33  ;;  %v3596_v13 = vsel %vm439_vm1, %v3583_v7, %v3585_v45  ;;  %v3597_v50 = vsel %vm439_vm1, %v3585_v45, %v7441_v8  ;;  %v3435_v17 = vmul.f32 %v8036_v3, %v8036_v3  ;;  %v3821_v7 = vld [vmem:[%s9812_s4 + $0x20] sm:$0xff]  ;;  %v3828_v1 = vld [vmem:[%s7093_s0 + $0x38] sm:$0x3] }
0x10b6   : > { %3634 = vmatprep.subr.bf16.mxu0 %v3597_v50  ;;  %v3587_v4 = vpop.permute.xlu1 %3586  ;;  %v3599_v8 = vsel %vm439_vm1, %v3589_v62, %v7448_v12  ;;  %v3460_v44 = vsel %vm439_vm1, %v3438_v57, 0.0  ;;  %v3541_v12 = vrot.slane %v5501_v52, %v7200_v31 }
0x10b7   : > { %3635 = vmatpush1.bf16.msra.mxu0 %v3596_v13  ;;  %v3451_v23 = vsel %vm439_vm1, %v3435_v17, 0.0  ;;  %v3436_v10 = vmul.f32 %v8041_v26, %v8041_v26  ;;  %v3598_v24 = vsel %vm439_vm1, %v3587_v4, %v3589_v62  ;;  %v3823_v62 = vld [vmem:[%s9812_s4 + $0x30] sm:$0xff] }
0x10b8   : > { %3452 = vadd.xlane.f32.xlu0 %v3451_v23  ;;  %3458 = vadd.xlane.f32.xlu1 %v3457_v5  ;;  %v8097_v5 = vsub.s32 4, %v7194_v22 }
0x10b9   : > { %3636 = vmatprep.subr.bf16.mxu0 %v3599_v8  ;;  %v3454_v0 = vsel %vm439_vm1, %v3436_v10, 0.0 }
0x10bb   : > { %3637 = vmatpush1.bf16.msra.mxu0 %v3598_v24 }
0x10bc   : > { %3461 = vadd.xlane.f32.xlu0 %v3460_v44  ;;  %3455 = vadd.xlane.f32.xlu1 %v3454_v0 }
0x10cd   : > { %3590 = vrot.lane.b32.xlu1 %v6593_v54, %s6942_s30 }
0x10d1   : > { %3614 = vrot.lane.b32.xlu1 %v3545_v27, %s6942_s30  ;;  %v3498_v27 = vrot.slane %v7197_v28, %v8097_v5 }
0x10d2   : > { %3592 = vrot.lane.b32.xlu0 %v6591_v47, %s6942_s30 }
0x10d5   : > { %3890 = vperm.xlu1 %6534, %v3817_v20  }
0x10d6   : > { %3612 = vrot.lane.b32.xlu0 %v3541_v12, %s6942_s30  ;;  %v8106_v12 = vsub.s32 3, %v7194_v22 }
0x10d9   : > { %3898 = vperm.xlu1 %6534, %v3819_v29  }
0x10da   : > { %3610 = vrot.lane.b32.xlu0 %v3537_v60, %s6942_s30 }
0x10dd   : > { %3902 = vperm.xlu1 %6534, %v3820_v38  }
0x10de   : > { %3894 = vperm.xlu0 %6535, %v3818_v53  }
0x10e1   : > { %3910 = vperm.xlu1 %6534, %v3822_v40  }
0x10e2   : > { %3906 = vperm.xlu0 %6535, %v3821_v7  }
0x10e5   : > { %6537 = vset.pattern.permute.xlu1 %v6945_v43 }
0x10e6   : > { %6536 = vset.pattern.permute.xlu0 %v6945_v43  ;;  %4135 = vperm.xlu1 %6537, %v3818_v53  }
0x10e7   : > { %4132 = vperm.xlu0 %6536, %v3817_v20  }
0x10ea   : > { %4138 = vperm.xlu1 %6537, %v3819_v29  }
0x10eb   : > { %4141 = vperm.xlu0 %6536, %v3820_v38   ;;  %v6842_v38 = vld [vmem:[%s7192_s21] sm:$0xff] }
0x10ee   : > { %4144 = vperm.xlu1 %6537, %v3821_v7   ;;  %v3510_v7 = vrot.slane %v6842_v38, %v8106_v12  ;;  %v3847_v38 = vld [vmem:[#allocation2 + $0x18] sm:$0xff] }
0x10ef   : > { %4147 = vperm.xlu0 %6536, %v3822_v40  }
0x10f2   : > { %6538 = vset.pattern.permute.xlu1 %v6941_v9 }
0x10f3   : > { %6539 = vset.pattern.permute.xlu0 %v6941_v9  ;;  %3914 = vperm.xlu1 %6538, %v3823_v62  }
0x10f4   : > { %3918 = vperm.xlu0 %6539, %v3824_v48  }
0x10f7   : > { %6540 = vset.pattern.permute.xlu1 %v6945_v43 }
0x10f8   : > { %6541 = vset.pattern.permute.xlu0 %v6945_v43  ;;  %4150 = vperm.xlu1 %6540, %v3823_v62  }
0x10fc   : > { %4153 = vperm.xlu1 %6540, %v3824_v48  }
0x1104   : > { %v3447_v11 = vpop.xlane.xlu0 %3446 }
0x1105   : > { %v3465_v16 = vmul.f32 0.015625, %v3447_v11 }
0x1107   : > { %v3473_v32 = vadd.f32 1e-06, %v3465_v16 }
0x1108   : > { %v3441_v51 = vpop.xlane.xlu0 %3440 }
0x1109   : > { %v3463_v59 = vmul.f32 0.015625, %v3441_v51 }
0x110b   : > { %v3471_v14 = vadd.f32 1e-06, %v3463_v59 }
0x110d   : > { %6714 = vrsqrt.f32 %v3471_v14 }
0x1117   : > { %v6715_v4 = vpop.eup %6714 }
0x1118   : > { %v3487_v8 = vmul.f32 %v6715_v4, %v8008_v19 }
0x111a   : > { %v3499_v20 = vmul.f32 %v3498_v27, %v3487_v8 }
0x111c   : > { %v3511_v62 = vadd.f32 %v3510_v7, %v3499_v20 }
0x113d   : > { %v3450_v61 = vpop.xlane.xlu1 %3449 }
0x113e   : > { %v3466_v58 = vmul.f32 0.015625, %v3450_v61 }
0x1140   : > { %v3474_v30 = vadd.f32 1e-06, %v3466_v58 }
0x1141   : > { %v3444_v39 = vpop.xlane.xlu1 %3443 }
0x1142   : > { %v3464_v46 = vmul.f32 0.015625, %v3444_v39  ;;  %6716 = vrsqrt.f32 %v3474_v30 }
0x1144   : > { %v3472_v33 = vadd.f32 1e-06, %v3464_v46 }
0x1145   : > { %v3453_v15 = vpop.xlane.xlu0 %3452  ;;  %v3459_v45 = vpop.xlane.xlu1 %3458 }
0x1146   : > { %6718 = vrsqrt.f32 %v3472_v33  ;;  %v3467_v13 = vmul.f32 0.015625, %v3453_v15  ;;  %v3469_v19 = vmul.f32 0.015625, %v3459_v45 }
0x1147   : > { %6720 = vrsqrt.f32 %v3473_v32 }
0x1148   : > { %v3475_v57 = vadd.f32 1e-06, %v3467_v13  ;;  %v3477_v43 = vadd.f32 1e-06, %v3469_v19 }
0x1149   : > { %v3462_v50 = vpop.xlane.xlu0 %3461  ;;  %v3456_v17 = vpop.xlane.xlu1 %3455 }
0x114a   : > { %v3468_v23 = vmul.f32 0.015625, %v3456_v17  ;;  %v3470_v0 = vmul.f32 0.015625, %v3462_v50 }
0x114c   : > { %v3476_v10 = vadd.f32 1e-06, %v3468_v23  ;;  %v6717_v52 = vpop.eup %6716 }
0x114d   : > { %v3593_v24 = vpop.permute.xlu0 %3592  ;;  %v3591_v44 = vpop.permute.xlu1 %3590  ;;  %v3490_v40 = vmul.f32 %v6717_v52, %v8021_v34 }
0x114e   : > { %v3601_v54 = vsel %vm439_vm1, %v3593_v24, %v7468_v25  ;;  %v3600_v47 = vsel %vm439_vm1, %v3591_v44, %v3593_v24  ;;  %6722 = vrsqrt.f32 %v3476_v10  ;;  %v3478_v25 = vadd.f32 1e-06, %v3470_v0  ;;  %v8127_v44 = vld [vmem:[%s7093_s0 + $0x8] sm:$0xfe]  ;;  %v8130_v0 = vld [vmem:[%s7093_s0] sm:$0xfe] }
0x114f   : > { %3638 = vmatprep.subr.bf16.mxu0 %v3601_v54  ;;  %6724 = vrsqrt.f32 %v3475_v57  ;;  %v3502_v59 = vmul.f32 %v3498_v27, %v3490_v40  ;;  %v8146_v19 = vrot.slane %v8127_v44, %v7545_v6  ;;  %v8150_v20 = vrot.slane %v8127_v44, %v8106_v12 }
0x1150   : > { %v6719_v60 = vpop.eup %6718  ;;  %3639 = vmatpush1.bf16.msra.mxu0 %v3600_v47  ;;  %6726 = vrsqrt.f32 %v3478_v25  ;;  %v3845_v47 = vld [vmem:[#allocation2 + $0x8] sm:$0x80] }
0x1151   : > { %v3488_v29 = vmul.f32 %v6719_v60, %v8018_v56  ;;  %v6721_v53 = vpop.eup %6720  ;;  %6728 = vrsqrt.f32 %v3477_v43  ;;  %v3514_v34 = vadd.f32 %v3510_v7, %v3502_v59  ;;  %v3613_v10 = vpop.permute.xlu0 %3612  ;;  %v3844_v60 = vld [vmem:[#allocation2] sm:$0x80]  ;;  %v8162_v43 = vrot.slane %v8130_v0, %v8106_v12 }
0x1152   : > { %v3489_v48 = vmul.f32 %v6721_v53, %v8003_v2  ;;  %v3615_v8 = vpop.permute.xlu1 %3614  ;;  %v5514_v53 = vld [vmem:[%s7093_s0 + $0x32] ss:$8 sm:$0x3] }
0x1153   : > { %v3500_v28 = vmul.f32 %v3498_v27, %v3488_v29  ;;  %v8178_v12 = vrot.slane %v5514_v53, %v7206_v42 }
0x1154   : > { %v3501_v56 = vmul.f32 %v3498_v27, %v3489_v48 }
0x1155   : > { %v3512_v11 = vadd.f32 %v3510_v7, %v3500_v28  ;;  %v8158_v28 = vrot.slane %v8130_v0, %v7545_v6  ;;  %9985 = vst [vmem:[#allocation27_spill] sm:$0xff] %v8178_v12 }
0x1156   : > { %v3513_v30 = vadd.f32 %v3510_v7, %v3501_v56  ;;  %v3891_v24 = vpop.permute.xlu1 %3890 }
0x1157   : > { %v3527_v51 = vpack.c.bf16 %v3512_v11, %v3511_v62  ;;  %v8152_v29 = vrot.slane %v3891_v24, 1  ;;  %v8166_v62 = vrot.slane %v5514_v53, %v7200_v31  ;;  %v3846_v11 = vld [vmem:[#allocation2 + $0x10] sm:$0xff] }
0x1158   : > { %v6723_v14 = vpop.eup %6722  ;;  %v3528_v2 = vpack.c.bf16 %v3514_v34, %v3513_v30  ;;  %v8187_v30 = vrot.slane %v8130_v0, %v8097_v5 }
0x1159   : > { %5510 = vmatmul.mubr.msk.bf16.vlgmr.msra.gmra.mrb[60].mxu0 %vm439_vm1, %v3527_v51  ;;  %v6725_v61 = vpop.eup %6724  ;;  %v3492_v58 = vmul.f32 %v6723_v14, %v8041_v26  ;;  %9982 = vst [vmem:[#allocation24_spill] sm:$0xff] %v8152_v29  ;;  %9983 = vst [vmem:[#allocation25_spill] sm:$0xff] %v8166_v62  ;;  %v4089_v51 = vld [vmem:[#allocation2 + $0x10] sm:$0xfe]  ;;  %v8171_v14 = vmul.f32 %v8146_v19, %v3847_v38 }
0x115a   : > { %3674 = vmatprep.mubr.bf16.mxu0 %v6941_v9  ;;  %v3491_v16 = vmul.f32 %v6725_v61, %v8036_v3  ;;  %v6727_v46 = vpop.eup %6726  ;;  %v8138_v52 = vpop.permute.xlu1 %3898  ;;  %9986 = vst [vmem:[#allocation28_spill] sm:$0xff] %v8187_v30 }
0x115b   : > { %v3504_v39 = vmul.f32 %v3498_v27, %v3492_v58  ;;  %v6729_v33 = vpop.eup %6728  ;;  %v3494_v15 = vmul.f32 %v6727_v46, %v8033_v18  ;;  %v3611_v18 = vpop.permute.xlu0 %3610  ;;  %v8181_v58 = vmul.f32 %v8158_v28, %v3846_v11 }
0x115c   : > { %v3503_v32 = vmul.f32 %v3498_v27, %v3491_v16  ;;  %v3493_v13 = vmul.f32 %v6729_v33, %v8028_v41  ;;  %v4113_v16 = vmul.f32 %v8162_v43, %v4089_v51  ;;  %v4287_v33 = vld [vmem:[#allocation2 + $0x10] sm:$0x80] }
0x115d   : > { %v3516_v45 = vadd.f32 %v3510_v7, %v3504_v39  ;;  %v3506_v3 = vmul.f32 %v3498_v27, %v3494_v15  ;;  %v9828_v39 = vrot.slane %v8171_v14, 1  ;;  %v4288_v15 = vld [vmem:[#allocation2 + $0x18] sm:$0x80] }
0x115e   : > { %v3515_v26 = vadd.f32 %v3510_v7, %v3503_v32  ;;  %v3505_v17 = vmul.f32 %v3498_v27, %v3493_v13  ;;  %v8142_v27 = vrot.slane %v8130_v0, %v7200_v31  ;;  %v8168_v59 = vpop.permute.xlu1 %3902  ;;  %v9829_v13 = vrot.slane %v8181_v58, 1 }
0x115f   : > { %v3518_v4 = vadd.f32 %v3510_v7, %v3506_v3  ;;  %v8124_v41 = vpop.permute.xlu0 %3894 }
0x1160   : > { %v3529_v50 = vpack.c.bf16 %v3516_v45, %v3515_v26  ;;  %v3517_v23 = vadd.f32 %v3510_v7, %v3505_v17  ;;  %v4090_v7 = vld [vmem:[#allocation2 + $0x18] sm:$0xfe]  ;;  %v3870_v48 = vmul.f32 %v8142_v27, %v3844_v60 }
0x1161   : > { %5511 = vmatmul.mubr.msk.bf16.gmra.mrb[64].mxu0 %vm439_vm1, %v3528_v2  ;;  %v4114_v6 = vmul.f32 %v8150_v20, %v4090_v7  ;;  %v8191_v2 = vrot.slane %v8127_v44, %v8097_v5  ;;  %v4299_v5 = vmul.f32 %v8187_v30, %v4287_v33  ;;  %v3922_v7 = vrot.slane %v8124_v41, 1 }
0x1162   : > { %3684 = vmatprep.mubr.bf16.mxu0 %v6941_v9  ;;  %v3530_v57 = vpack.c.bf16 %v3518_v4, %v3517_v23  ;;  %v3945_v34 = vmul.f32 %v8152_v29, %v3870_v48  ;;  %v8198_v45 = vpop.permute.xlu1 %3910  ;;  %v8226_v48 = vsel %vm439_vm1, %v3613_v10, %v3615_v8 }
0x1163   : > { %v8132_v54 = vpop.permute.xlu0 %3906  ;;  %9987 = vst [vmem:[#allocation29_spill] sm:$0xff] %v8191_v2  ;;  %v4300_v3 = vmul.f32 %v8191_v2, %v4288_v15  ;;  %v4317_v24 = vmul.f32 %v4299_v5, %v8152_v29 }
0x1164   : > { %v3963_v26 = vadd.f32 %v3945_v34, %v8178_v12 }
0x1166   : > { %v4071_v23 = vadd.f32 %v9829_v13, %v3963_v26  ;;  %v8215_v60 = vpop.permute.xlu1 %4135 }
0x1167   : > { %v4133_v40 = vpop.permute.xlu0 %4132 }
0x1168   : > { %v8175_v61 = vrot.slane %v4133_v40, 7 }
0x1169   : > { %5512 = vmatmul.mubr.msk.bf16.gmra.mrb[68].mxu0 %vm439_vm1, %v3529_v50 }
0x116a   : > { %3694 = vmatprep.mubr.bf16.mxu0 %v6941_v9  ;;  %v8136_v9 = vrot.slane %v8127_v44, %v7200_v31  ;;  %9984 = vst [vmem:[#allocation26_spill] sm:$0xff] %v8175_v61  ;;  %v8196_v32 = vmul.f32 %v8175_v61, %v4114_v6  ;;  %v8203_v50 = vmul.f32 %v8175_v61, %v4113_v16  ;;  %v8244_v8 = vpop.permute.xlu1 %4138 }
0x116b   : > { %v4159_v35 = vrot.slane %v8244_v8, 7 }
0x116c   : > { %9981 = vst [vmem:[#allocation23_spill] sm:$0xff] %v8136_v9  ;;  %v3871_v25 = vmul.f32 %v8136_v9, %v3845_v47  ;;  %9988 = vst [vmem:[#allocation30_spill] sm:$0xff] %v8196_v32  ;;  %v9827_v4 = vrot.slane %v8196_v32, 2  ;;  %v4318_v47 = vmul.f32 %v4300_v3, %v8152_v29  ;;  %v3873_v41 = vmul.f32 %v8136_v9, %v3847_v38 }
0x116d   : > { %9989 = vst [vmem:[#allocation31_spill] sm:$0xff] %v8203_v50  ;;  %v3926_v38 = vrot.slane %v8168_v59, 1 }
0x116e   : > { %v3946_v56 = vmul.f32 %v8152_v29, %v3871_v25  ;;  %v8220_v25 = vsel %vm439_vm1, %v3611_v18, %v3613_v10  ;;  %v3872_v18 = vmul.f32 %v8142_v27, %v3846_v11  ;;  %v8242_v10 = vsel %vm3920_vm6, %v8152_v29, %v3922_v7 }
0x116f   : > { %v3924_v11 = vrot.slane %v8138_v52, 1  ;;  %v3948_v52 = vmul.f32 %v8242_v10, %v3873_v41 }
0x1170   : > { %v3964_v46 = vadd.f32 %v3946_v56, %v8166_v62 }
0x1171   : > { %5513 = vmatmul.mubr.msk.bf16.gmra.mrb[72].mxu0 %vm439_vm1, %v3530_v57  ;;  %v9826_v57 = vrot.slane %v8203_v50, 2 }
0x1172   : > { %v4072_v17 = vadd.f32 %v9828_v39, %v3964_v46  ;;  %v3827_v39 = vld [vmem:[%s7093_s0 + $0x30] sm:$0x3]  ;;  %s5531_s0 = sshll.u32 %s6926_s9, 10  ;;  %s10320_s9 = sand.u32 1, %s6914_s28  }
0x1173   : > { %v4269_v40 = vadd.f32 %v9826_v57, %v4071_v23  ;;  %v8267_v57 = vsel %vm3920_vm6, %v3924_v11, %v3926_v38  ;;  %s9743_s24 = scalar_lea.hbm %s9816_s8, %s5531_s0  ;;  %s9756_s12 = scalar_lea.sflag [#allocation4], %s10320_s9 }
0x1174   : > { %v4270_v53 = vadd.f32 %v9827_v4, %v4072_v17 }
0x1175   : > { %v8228_v56 = vadd.f32 %v4317_v24, %v4269_v40  ;;  %v8258_v24 = vsub.s32 5, %v7194_v22  ;;  %v3947_v40 = vmul.f32 %v8242_v10, %v3872_v18 }
0x1176   : > { %v8230_v6 = vadd.f32 %v4318_v47, %v4270_v53 }
0x1177   : > { %9990 = vst [vmem:[#allocation32_spill] sm:$0xff] %v8228_v56  ;;  %9992 = vst [vmem:[#allocation34_spill] sm:$0xff] %v8258_v24  ;;  %v8275_v41 = vrot.slane %v8130_v0, %v8258_v24 }
0x1178   : > { %9991 = vst [vmem:[#allocation33_spill] sm:$0xff] %v8230_v6 }
0x1179   : > { %9993 = vst [vmem:[#allocation35_spill] sm:$0xff] %v8275_v41 }
0x122c   : > { %v3666_v51 = vpop.f32.mrb[60].mxu0 }
0x122d   : > { %v8233_v34 = vadd.f32 %v3666_v51, %v8220_v25  ;;  %v3668_v16 = vpop.f32.mrb[61].mxu0 }
0x122e   : > { %v8238_v46 = vadd.f32 %v3668_v16, %v8226_v48  ;;  %v3670_v33 = vpop.f32.mrb[62].mxu0  ;;  %v4479_v16 = vsub.s32 6, %v7194_v22 }
0x122f   : > { %v3705_v15 = vsub.f32 0.0, %v8233_v34  ;;  %v8248_v26 = vadd.f32 %v3670_v33, %v8220_v25  ;;  %v3672_v5 = vpop.f32.mrb[63].mxu0  ;;  %v4615_v33 = vsub.s32 7, %v7194_v22  ;;  %v8279_v22 = vrot.slane %v8127_v44, %v8258_v24 }
0x1230   : > { %v3706_v3 = vsub.f32 0.0, %v8238_v46  ;;  %v8254_v17 = vadd.f32 %v3672_v5, %v8226_v48  ;;  %v8296_v13 = vrot.slane %v8130_v0, %v4479_v16  ;;  %v8327_v24 = vrot.slane %v3828_v1, %v7206_v42 }
0x1231   : > { %v3721_v47 = vmul.f32 1.442695, %v3705_v15  ;;  %v3707_v53 = vsub.f32 0.0, %v8248_v26  ;;  %v8270_v15 = vsel %vm3920_vm6, %v3922_v7, %v3924_v11  ;;  %9994 = vst [vmem:[#allocation36_spill] sm:$0xff] %v8279_v22  ;;  %v8287_v11 = vadd.f32 %v3947_v40, %v8178_v12 }
0x1232   : > { %v3723_v51 = vmul.f32 1.442695, %v3706_v3  ;;  %v3708_v59 = vsub.f32 0.0, %v8254_v17  ;;  %v8281_v3 = vpop.permute.xlu1 %4144  ;;  %9995 = vst [vmem:[#allocation37_spill] sm:$0xff] %v8296_v13  ;;  %v8319_v37 = vrot.slane %v8127_v44, %v4615_v33  ;;  %9998 = vst [vmem:[#allocation40_spill] sm:$0xff] %v8327_v24 }
0x1233   : > { %6730 = vpow2.f32 %v3721_v47  ;;  %v3725_v5 = vmul.f32 1.442695, %v3707_v53  ;;  %v8290_v53 = vadd.f32 %v3948_v52, %v8166_v62  ;;  %v8307_v52 = vrot.slane %v8127_v44, %v4479_v16 }
0x1234   : > { %6732 = vpow2.f32 %v3723_v51  ;;  %v3727_v4 = vmul.f32 1.442695, %v3708_v59  ;;  %v3676_v18 = vpop.f32.mrb[64].mxu0  ;;  %9997 = vst [vmem:[#allocation39_spill] sm:$0xff] %v8319_v37  ;;  %v4157_v16 = vrot.slane %v8215_v60, 7  ;;  %v8335_v60 = vrot.slane %v3828_v1, %v7200_v31  ;;  %v6594_v1 = vld [vmem:[%s7083_s22] sm:$0xff]  }
0x1235   : > { %6734 = vpow2.f32 %v3725_v5  ;;  %v8284_v47 = vadd.f32 %v3676_v18, %v8220_v25  ;;  %v3678_v7 = vpop.f32.mrb[65].mxu0  ;;  %v8299_v5 = vrot.slane %v8130_v0, %v4615_v33  ;;  %9996 = vst [vmem:[#allocation38_spill] sm:$0xff] %v8307_v52  ;;  %6080 = vmatprep.subr.bf16.mxu1 %v6594_v1 }
0x1236   : > { %6736 = vpow2.f32 %v3727_v4  ;;  %v8293_v51 = vadd.f32 %v3678_v7, %v8226_v48  ;;  %v3680_v59 = vpop.f32.mrb[66].mxu0  ;;  %v8310_v4 = vrot.slane %v3827_v39, %v7206_v42  ;;  %v8312_v7 = vpop.permute.xlu0 %4141  ;;  %10000 = vst [vmem:[#allocation42_spill] sm:$0xff] %v8335_v60  ;;  %v10001_v42 = vrot.slane %v8198_v45, 1  ;;  %6081 = vmatpush3.bf16.msra.mxu1 %v6594_v1 }
0x1237   : > { %v3709_v18 = vsub.f32 0.0, %v8284_v47  ;;  %v8303_v23 = vadd.f32 %v3680_v59, %v8220_v25  ;;  %v3682_v40 = vpop.f32.mrb[67].mxu0  ;;  %v3928_v59 = vrot.slane %v8132_v54, 1  ;;  %v8332_v54 = vrot.slane %v3827_v39, %v7200_v31 }
0x1238   : > { %v3710_v63 = vsub.f32 0.0, %v8293_v51  ;;  %v8316_v0 = vadd.f32 %v3682_v40, %v8226_v48  ;;  %v8329_v40 = vpop.permute.xlu1 %3914  ;;  %v8349_v31 = vsel %vm4155_vm7, %v4157_v16, %v4159_v35 }
0x1239   : > { %v3729_v49 = vmul.f32 1.442695, %v3709_v18  ;;  %v3711_v21 = vsub.f32 0.0, %v8303_v23  ;;  %9999 = vst [vmem:[#allocation41_spill] sm:$0xff] %v8332_v54  ;;  %v8338_v33 = vsel %vm3920_vm6, %v3926_v38, %v3928_v59  ;;  %v8343_v18 = vsel %vm3920_vm6, %v3928_v59, %v10001_v42  ;;  %10004 = vst [vmem:[#allocation45_spill] sm:$0xff] %v8349_v31  ;;  %v6595_v38 = vld [vmem:[%s7083_s22 + $0x8] sm:$0xff]  }
0x123a   : > { %v3731_v36 = vmul.f32 1.442695, %v3710_v63  ;;  %v3712_v55 = vsub.f32 0.0, %v8316_v0  ;;  %10002 = vst [vmem:[#allocation43_spill] sm:$0xff] %v8343_v18  ;;  %6082 = vmatprep.subr.bf16.mxu1 %v6595_v38 }
0x123b   : > { %6738 = vpow2.f32 %v3729_v49  ;;  %v3733_v44 = vmul.f32 1.442695, %v3711_v21  ;;  %6083 = vmatpush3.bf16.msra.mxu1 %v6595_v38 }
0x123c   : > { %6740 = vpow2.f32 %v3731_v36  ;;  %v3735_v63 = vmul.f32 1.442695, %v3712_v55  ;;  %v3686_v8 = vpop.f32.mrb[68].mxu0  ;;  %v8353_v55 = vsel %vm4155_vm7, %v8175_v61, %v4157_v16  ;;  %v8355_v36 = vpop.permute.xlu0 %4147 }
0x123d   : > { %v6731_v49 = vpop.eup %6730  ;;  %6742 = vpow2.f32 %v3733_v44  ;;  %v8346_v21 = vadd.f32 %v3686_v8, %v8220_v25  ;;  %v3688_v39 = vpop.f32.mrb[69].mxu0  ;;  %10005 = vst [vmem:[#allocation46_spill] sm:$0xff] %v8353_v55 }
0x123e   : > { %v6733_v29 = vpop.eup %6732  ;;  %v3753_v59 = vadd.f32 1.0, %v6731_v49  ;;  %6744 = vpow2.f32 %v3735_v63  ;;  %v8360_v44 = vadd.f32 %v3688_v39, %v8226_v48  ;;  %v3690_v8 = vpop.f32.mrb[70].mxu0  ;;  %v4161_v49 = vrot.slane %v8312_v7, 7 }
0x123f   : > { %10003 = vst [vmem:[#allocation44_spill] sm:$0xff] %v8346_v21  ;;  %v8363_v6 = vpop.permute.xlu1 %4150  ;;  %v6735_v56 = vpop.eup %6734  ;;  %v3754_v50 = vadd.f32 1.0, %v6733_v29  ;;  %v3713_v16 = vsub.f32 0.0, %v8346_v21  ;;  %v8367_v32 = vadd.f32 %v3690_v8, %v8220_v25  ;;  %v6596_v8 = vld [vmem:[%s7083_s22 + $0x10] sm:$0xff]  }
0x1240   : > { %10006 = vst [vmem:[#allocation47_spill] sm:$0xff] %v8360_v44  ;;  %v3692_v61 = vpop.f32.mrb[71].mxu0  ;;  %v6737_v63 = vpop.eup %6736  ;;  %6746 = vrcp.f32 %v3753_v59  ;;  %v3755_v39 = vadd.f32 1.0, %v6735_v56  ;;  %v3714_v55 = vsub.f32 0.0, %v8360_v44  ;;  %v10009_v59 = vrot.slane %v8329_v40, 1  ;;  %6084 = vmatprep.subr.bf16.mxu1 %v6596_v8 }
0x1241   : > { %10007 = vst [vmem:[#allocation48_spill] sm:$0xff] %v8367_v32  ;;  %v8372_v42 = vadd.f32 %v3692_v61, %v8226_v48  ;;  %6748 = vrcp.f32 %v3754_v50  ;;  %v3756_v29 = vadd.f32 1.0, %v6737_v63  ;;  %v3737_v31 = vmul.f32 1.442695, %v3713_v16  ;;  %v3919_v61 = vpop.permute.xlu0 %3918  ;;  %6085 = vmatpush3.bf16.msra.mxu1 %v6596_v8 }
0x1242   : > { %v3715_v60 = vsub.f32 0.0, %v8367_v32  ;;  %6750 = vrcp.f32 %v3755_v39  ;;  %v3739_v21 = vmul.f32 1.442695, %v3714_v55  ;;  %v10010_v56 = vrot.slane %v8198_v45, 1  ;;  %v4476_v55 = vld [vmem:[#allocation2 + $0xa8] sm:$0x1] }
0x1243   : > { %10008 = vst [vmem:[#allocation49_spill] sm:$0xff] %v8372_v42  ;;  %v3716_v7 = vsub.f32 0.0, %v8372_v42  ;;  %v4154_v1 = vpop.permute.xlu1 %4153  ;;  %6752 = vrcp.f32 %v3756_v29  ;;  %v4163_v16 = vrot.slane %v8281_v3, 7  ;;  %v8386_v63 = vsel %vm4155_vm7, %v4159_v35, %v4161_v49  ;;  %v6597_v35 = vld [vmem:[%s7083_s22 + $0x18] sm:$0xff]  }
0x1244   : > { %v8382_v44 = vsel %vm3920_vm6, %v10010_v56, %v10009_v59  ;;  %v3741_v50 = vmul.f32 1.442695, %v3715_v60  ;;  %10012 = vst [vmem:[#allocation51_spill] sm:$0xff] %v8386_v63  ;;  %6754 = vpow2.f32 %v3737_v31  ;;  %v3696_v42 = vpop.f32.mrb[72].mxu0  ;;  %v4165_v32 = vrot.slane %v8355_v36, 7  ;;  %6086 = vmatprep.subr.bf16.mxu1 %v6597_v35 }
0x1245   : > { %10011 = vst [vmem:[#allocation50_spill] sm:$0xff] %v8382_v44  ;;  %v3743_v39 = vmul.f32 1.442695, %v3716_v7  ;;  %v4167_v45 = vrot.slane %v8363_v6, 7  ;;  %v6739_v59 = vpop.eup %6738  ;;  %6756 = vpow2.f32 %v3739_v21  ;;  %v8391_v29 = vadd.f32 %v3696_v42, %v8220_v25  ;;  %v3698_v60 = vpop.f32.mrb[73].mxu0  ;;  %6087 = vmatpush3.bf16.msra.mxu1 %v6597_v35 }
0x1246   : > { %v8393_v3 = vrot.slane %v3919_v61, 1  ;;  %v8395_v56 = vrot.slane %v4154_v1, 7  ;;  %v6741_v31 = vpop.eup %6740  ;;  %v3757_v7 = vadd.f32 1.0, %v6739_v59  ;;  %6758 = vpow2.f32 %v3741_v50  ;;  %v3700_v6 = vpop.f32.mrb[74].mxu0 }
0x1247   : > { %10013 = vst [vmem:[#allocation52_spill] sm:$0xff] %v8391_v29  ;;  %v8399_v36 = vadd.f32 %v3698_v60, %v8226_v48  ;;  %v4502_v38 = vmul.f32 %v8307_v52, %v4476_v55  ;;  %v6743_v21 = vpop.eup %6742  ;;  %v3758_v63 = vadd.f32 1.0, %v6741_v31  ;;  %6760 = vpow2.f32 %v3743_v39  ;;  %v3702_v1 = vpop.f32.mrb[75].mxu0 }
0x1248   : > { %10014 = vst [vmem:[#allocation53_spill] sm:$0xff] %v8393_v3  ;;  %10015 = vst [vmem:[#allocation54_spill] sm:$0xff] %v8395_v56  ;;  %v3717_v42 = vsub.f32 0.0, %v8391_v29  ;;  %v8404_v61 = vadd.f32 %v3700_v6, %v8220_v25  ;;  %v6745_v44 = vpop.eup %6744  ;;  %6762 = vrcp.f32 %v3757_v7  ;;  %v3759_v59 = vadd.f32 1.0, %v6743_v21  ;;  %v6598_v25 = vld [vmem:[%s7083_s22 + $0x20] sm:$0xff]  }
0x1249   : > { %10016 = vst [vmem:[#allocation55_spill] sm:$0xff] %v8399_v36  ;;  %v3718_v50 = vsub.f32 0.0, %v8399_v36  ;;  %v8408_v60 = vadd.f32 %v3702_v1, %v8226_v48  ;;  %6764 = vrcp.f32 %v3758_v63  ;;  %v3760_v55 = vadd.f32 1.0, %v6745_v44  ;;  %6088 = vmatprep.subr.bf16.mxu1 %v6598_v25 }
0x124a   : > { %10017 = vst [vmem:[#allocation56_spill] sm:$0xff] %v8404_v61  ;;  %v8411_v31 = vsel %vm4155_vm7, %v4161_v49, %v4163_v16  ;;  %v8414_v39 = vsel %vm4155_vm7, %v4163_v16, %v4165_v32  ;;  %v6747_v6 = vpop.eup %6746  ;;  %6766 = vrcp.f32 %v3759_v59  ;;  %v8418_v7 = vsel %vm4155_vm7, %v4165_v32, %v4167_v45  ;;  %6089 = vmatpush3.bf16.msra.mxu1 %v6598_v25 }
0x124b   : > { %10018 = vst [vmem:[#allocation57_spill] sm:$0xff] %v8408_v60  ;;  %10019 = vst [vmem:[#allocation58_spill] sm:$0xff] %v8411_v31  ;;  %v10022_v48 = vrot.slane %v8329_v40, 1  ;;  %v8428_v44 = vsel %vm4155_vm7, %v4167_v45, %v8395_v56  ;;  %v6749_v49 = vpop.eup %6748  ;;  %v8431_v16 = vmul.f32 %v6747_v6, %v8233_v34  ;;  %6768 = vrcp.f32 %v3760_v55 }
0x124c   : > { %10020 = vst [vmem:[#allocation59_spill] sm:$0xff] %v8414_v39  ;;  %10021 = vst [vmem:[#allocation60_spill] sm:$0xff] %v8418_v7  ;;  %v3745_v63 = vmul.f32 1.442695, %v3717_v42  ;;  %v8434_v32 = vmul.f32 %v4502_v38, %v8395_v56  ;;  %v6751_v21 = vpop.eup %6750  ;;  %v8437_v40 = vmul.f32 %v6749_v49, %v8238_v46  ;;  %v8439_v1 = vmul.f32 1.442695, %v3718_v50 }
0x124d   : > { %v8424_v8 = vsel %vm3920_vm6, %v10022_v48, %v8393_v3  ;;  %10024 = vst [vmem:[#allocation62_spill] sm:$0xff] %v8428_v44  ;;  %v3719_v59 = vsub.f32 0.0, %v8404_v61  ;;  %v3720_v45 = vsub.f32 0.0, %v8408_v60  ;;  %v6753_v48 = vpop.eup %6752  ;;  %3801 = vst [vmem:[#allocation2 + $0x20] sm:$0xff] %v8431_v16  ;;  %v8445_v34 = vmul.f32 %v6751_v21, %v8248_v26  ;;  %v6599_v50 = vld [vmem:[%s7083_s22 + $0x28] sm:$0xff]   ;;  %v6600_v61 = vld [vmem:[%s7083_s22 + $0x30] sm:$0xff]  }
0x124e   : > { %10023 = vst [vmem:[#allocation61_spill] sm:$0xff] %v8424_v8  ;;  %10025 = vst [vmem:[#allocation63_spill] sm:$0xff] %v8434_v32  ;;  %v3874_v38 = vmul.f32 %v8142_v27, %v8431_v16  ;;  %v3993_v46 = vmul.f32 %v8158_v28, %v8431_v16  ;;  %v8453_v42 = vmul.f32 %v8162_v43, %v8431_v16  ;;  %v8456_v55 = vpop.eup %6754  ;;  %6770 = vpow2.f32 %v3745_v63 }
0x124f   : > { %10026 = vst [vmem:[#allocation64_spill] sm:$0xff] %v8439_v1  ;;  %10027 = vst [vmem:[#allocation65_spill] sm:$0xff] %v8445_v34  ;;  %v8460_v35 = vmul.f32 %v6753_v48, %v8254_v17  ;;  %v3875_v26 = vmul.f32 %v8136_v9, %v8437_v40  ;;  %v3994_v6 = vmul.f32 %v8146_v19, %v8437_v40  ;;  %v8470_v21 = vpop.eup %6756  ;;  %v8494_v60 = vmul.f32 1.442695, %v3719_v59 }
0x1250   : > { %10028 = vst [vmem:[#allocation66_spill] sm:$0xff] %v8453_v42  ;;  %3802 = vst [vmem:[#allocation2 + $0x28] sm:$0xff] %v8437_v40  ;;  %v8468_v49 = vmul.f32 %v8150_v20, %v8437_v40  ;;  %v3876_v32 = vmul.f32 %v8142_v27, %v8445_v34  ;;  %v8477_v17 = vmul.f32 %v8158_v28, %v8445_v34  ;;  %v4025_v56 = vrot.slane %v3993_v46, 1  ;;  %v8480_v44 = vpop.eup %6758 }
0x1251   : > { %3803 = vst [vmem:[#allocation2 + $0x30] sm:$0xff] %v8445_v34  ;;  %v3949_v48 = vmul.f32 %v8270_v15, %v3874_v38  ;;  %3804 = vst [vmem:[#allocation2 + $0x38] sm:$0xff] %v8460_v35  ;;  %v3877_v42 = vmul.f32 %v8136_v9, %v8460_v35  ;;  %v8487_v8 = vmul.f32 %v8146_v19, %v8460_v35  ;;  %v4027_v7 = vrot.slane %v3994_v6, 1  ;;  %v8490_v39 = vpop.eup %6760 }
0x1252   : > { %v3950_v3 = vmul.f32 %v8270_v15, %v3875_v26  ;;  %v3951_v46 = vmul.f32 %v8267_v57, %v3876_v32  ;;  %10029 = vst [vmem:[#allocation67_spill] sm:$0xff] %v8494_v60  ;;  %6090 = vmatprep.subr.bf16.mxu1 %v6599_v50  ;;  %v6763_v36 = vpop.eup %6762  ;;  %v10030_v26 = vrot.slane %v8181_v58, 1  ;;  %v8502_v6 = vmul.f32 1.442695, %v3720_v45 }
0x1253   : > { %v6765_v1 = vpop.eup %6764  ;;  %v3952_v38 = vmul.f32 %v8267_v57, %v3877_v42  ;;  %v8506_v63 = vmul.f32 %v6763_v36, %v8284_v47  ;;  %v3967_v32 = vadd.f32 %v3949_v48, %v8178_v12  ;;  %v10031_v59 = vrot.slane %v8171_v14, 1  ;;  %6091 = vmatpush3.bf16.msra.mxu1 %v6599_v50 }
0x1254   : > { %v3968_v29 = vadd.f32 %v3950_v3, %v8166_v62  ;;  %v4026_v25 = vsel %vm3920_vm6, %v10030_v26, %v4025_v56  ;;  %v6767_v60 = vpop.eup %6766  ;;  %v8513_v3 = vadd.f32 %v3951_v46, %v8178_v12  ;;  %v8516_v58 = vmul.f32 %v6765_v1, %v8293_v51  ;;  %6092 = vmatprep.subr.bf16.mxu1 %v6600_v61 }
0x1255   : > { %v4028_v31 = vsel %vm3920_vm6, %v10031_v59, %v4027_v7  ;;  %v10032_v45 = vrot.slane %v8477_v17, 1  ;;  %v10033_v47 = vrot.slane %v8487_v8, 1  ;;  %v6769_v48 = vpop.eup %6768  ;;  %3805 = vst [vmem:[#allocation2 + $0x40] sm:$0xff] %v8506_v63  ;;  %v8526_v14 = vmul.f32 %v6767_v60, %v8303_v23 }
0x1256   : > { %v8529_v46 = vadd.f32 %v4026_v25, %v8287_v11  ;;  %v4301_v1 = vmul.f32 %v8187_v30, %v8431_v16  ;;  %3806 = vst [vmem:[#allocation2 + $0x48] sm:$0xff] %v8516_v58  ;;  %v4303_v23 = vmul.f32 %v8187_v30, %v8445_v34  ;;  %v4304_v11 = vmul.f32 %v8191_v2, %v8460_v35 }
0x1257   : > { %v4030_v42 = vsel %vm3920_vm6, %v4025_v56, %v10032_v45  ;;  %v4032_v36 = vsel %vm3920_vm6, %v4027_v7, %v10033_v47  ;;  %v8537_v56 = vmul.f32 %v6769_v48, %v8316_v0  ;;  %v4302_v7 = vmul.f32 %v8191_v2, %v8437_v40  ;;  %6093 = vmatpush3.bf16.msra.mxu1 %v6600_v61 }
0x1258   : > { %10034 = vst [vmem:[#allocation68_spill] sm:$0xff] %v8529_v46  ;;  %v8531_v51 = vadd.f32 %v4032_v36, %v3968_v29  ;;  %v8546_v29 = vadd.f32 %v3952_v38, %v8166_v62  ;;  %v8550_v60 = vmul.f32 %v8275_v41, %v8431_v16  ;;  %v8554_v0 = vmul.f32 %v8279_v22, %v8437_v40  ;;  %v8588_v47 = vpop.eup %6770 }
0x1259   : > { %v8558_v50 = vmul.f32 %v8275_v41, %v8445_v34  ;;  %v8561_v26 = vadd.f32 %v4028_v31, %v8290_v53  ;;  %v8563_v25 = vadd.f32 %v4030_v42, %v3967_v32  ;;  %v8566_v38 = vmul.f32 %v4301_v1, %v8242_v10 }
0x125a   : > { %10035 = vst [vmem:[#allocation69_spill] sm:$0xff] %v8531_v51  ;;  %10036 = vst [vmem:[#allocation70_spill] sm:$0xff] %v8550_v60  ;;  %v8570_v16 = vmul.f32 %v8279_v22, %v8460_v35  ;;  %v8573_v40 = vmul.f32 %v4302_v7, %v8242_v10  ;;  %v8576_v59 = vmul.f32 %v4303_v23, %v8270_v15  ;;  %v9867_v31 = vrot.slane %v8554_v0, 1  ;;  %v10062_v51 = vld [vmem:[#allocation45_spill] sm:$0xff] }
0x125b   : > { %10037 = vst [vmem:[#allocation71_spill] sm:$0xff] %v8554_v0  ;;  %10038 = vst [vmem:[#allocation72_spill] sm:$0xff] %v8558_v50  ;;  %v8579_v45 = vmul.f32 %v4304_v11, %v8270_v15  ;;  %v4623_v42 = vmul.f32 %v8299_v5, %v8445_v34  ;;  %v4624_v61 = vmul.f32 %v8319_v37, %v8460_v35  ;;  %v10066_v50 = vld [vmem:[#allocation47_spill] sm:$0xff] }
0x125c   : > { %10039 = vst [vmem:[#allocation73_spill] sm:$0xff] %v8561_v26  ;;  %10040 = vst [vmem:[#allocation74_spill] sm:$0xff] %v8563_v25  ;;  %v9868_v32 = vrot.slane %v8570_v16, 1  ;;  %v8593_v48 = vmul.f32 %v8296_v13, %v8445_v34  ;;  %v8597_v1 = vmul.f32 %v8307_v52, %v8460_v35  ;;  %v4625_v7 = vmul.f32 %v8299_v5, %v8506_v63 }
0x125d   : > { %10041 = vst [vmem:[#allocation75_spill] sm:$0xff] %v8566_v38  ;;  %10042 = vst [vmem:[#allocation76_spill] sm:$0xff] %v8570_v16  ;;  %v4626_v11 = vmul.f32 %v8319_v37, %v8516_v58  ;;  %v8612_v53 = vmul.f32 %v8327_v24, %v8460_v35  ;;  %v8616_v36 = vmul.f32 %v8310_v4, %v8506_v63  ;;  %v3763_v38 = vadd.f32 1.0, %v8480_v44 }
0x125e   : > { %10043 = vst [vmem:[#allocation77_spill] sm:$0xff] %v8573_v40  ;;  %10044 = vst [vmem:[#allocation78_spill] sm:$0xff] %v8576_v59  ;;  %v8606_v23 = vsel %vm3920_vm6, %v9867_v31, %v9868_v32  ;;  %v8622_v59 = vmul.f32 %v4624_v61, %v8242_v10  ;;  %v8626_v31 = vmul.f32 %v8327_v24, %v8516_v58  ;;  %v3761_v32 = vadd.f32 1.0, %v8456_v55 }
0x125f   : > { %10045 = vst [vmem:[#allocation79_spill] sm:$0xff] %v8579_v45  ;;  %10046 = vst [vmem:[#allocation80_spill] sm:$0xff] %v8593_v48  ;;  %v3880_v61 = vmul.f32 %v8142_v27, %v8526_v14  ;;  %v3881_v55 = vmul.f32 %v8136_v9, %v8537_v56  ;;  %v8649_v44 = vmul.f32 %v8146_v19, %v8516_v58 }
0x1260   : > { %10047 = vst [vmem:[#allocation81_spill] sm:$0xff] %v8597_v1  ;;  %10048 = vst [vmem:[#allocation82_spill] sm:$0xff] %v8606_v23  ;;  %v8619_v1 = vmul.f32 %v4623_v42, %v8242_v10  ;;  %v8630_v23 = vmul.f32 %v4625_v7, %v8270_v15  ;;  %v3878_v42 = vmul.f32 %v8142_v27, %v8506_v63  ;;  %6772 = vrcp.f32 %v3761_v32 }
0x1261   : > { %10049 = vst [vmem:[#allocation83_spill] sm:$0xff] %v8612_v53  ;;  %10050 = vst [vmem:[#allocation84_spill] sm:$0xff] %v8616_v36  ;;  %v3762_v53 = vadd.f32 1.0, %v8470_v21  ;;  %v3879_v10 = vmul.f32 %v8136_v9, %v8516_v58  ;;  %v8645_v21 = vmul.f32 %v8158_v28, %v8506_v63  ;;  %v8652_v32 = vmul.f32 %v4626_v11, %v8270_v15 }
0x1262   : > { %10051 = vst [vmem:[#allocation85_spill] sm:$0xff] %v8619_v1  ;;  %10052 = vst [vmem:[#allocation86_spill] sm:$0xff] %v8622_v59  ;;  %v3953_v7 = vmul.f32 %v8338_v33, %v3878_v42  ;;  %v3956_v42 = vmul.f32 %v8343_v18, %v3881_v55  ;;  %v8660_v59 = vmul.f32 %v8158_v28, %v8526_v14 }
0x1263   : > { %10053 = vst [vmem:[#allocation87_spill] sm:$0xff] %v8626_v31  ;;  %10054 = vst [vmem:[#allocation88_spill] sm:$0xff] %v8630_v23  ;;  %6774 = vrcp.f32 %v3762_v53  ;;  %v3954_v23 = vmul.f32 %v8338_v33, %v3879_v10  ;;  %v3955_v53 = vmul.f32 %v8343_v18, %v3880_v61  ;;  %v8664_v48 = vmul.f32 %v8146_v19, %v8537_v56 }
0x1264   : > { %10055 = vst [vmem:[#allocation89_spill] sm:$0xff] %v8652_v32  ;;  %6776 = vrcp.f32 %v3763_v38  ;;  %v3971_v15 = vadd.f32 %v3953_v7, %v8178_v12  ;;  %v9874_v38 = vrot.slane %v8645_v21, 1  ;;  %v9875_v61 = vrot.slane %v8660_v59, 1 }
0x1265   : > { %v3972_v11 = vadd.f32 %v3954_v23, %v8166_v62  ;;  %v4307_v1 = vmul.f32 %v8187_v30, %v8526_v14  ;;  %v4308_v36 = vmul.f32 %v8191_v2, %v8537_v56  ;;  %v8679_v7 = vmul.f32 %v8275_v41, %v8526_v14 }
0x1266   : > { %v8683_v23 = vmul.f32 %v8279_v22, %v8537_v56  ;;  %v3764_v10 = vadd.f32 1.0, %v8490_v39  ;;  %v8687_v55 = vadd.f32 %v3955_v53, %v8178_v12  ;;  %v4038_v45 = vsel %vm3920_vm6, %v9874_v38, %v9875_v61 }
0x1267   : > { %v10057_v32 = vrot.slane %v8664_v48, 1  ;;  %v10058_v31 = vrot.slane %v8649_v44, 1  ;;  %v4117_v0 = vmul.f32 %v8162_v43, %v8445_v34  ;;  %v8702_v39 = vadd.f32 %v3956_v42, %v8166_v62 }
0x1268   : > { %10056 = vst [vmem:[#allocation90_spill] sm:$0xff] %v8683_v23  ;;  %v8704_v53 = vadd.f32 %v4038_v45, %v3971_v15  ;;  %v8709_v46 = vmul.f32 %v4307_v1, %v8338_v33  ;;  %6778 = vrcp.f32 %v3764_v10  ;;  %v4118_v38 = vmul.f32 %v8150_v20, %v8460_v35  ;;  %v10061_v10 = vld [vmem:[#allocation42_spill] sm:$0xff] }
0x1269   : > { %v4040_v40 = vsel %vm3920_vm6, %v10058_v31, %v10057_v32  ;;  %v4489_v31 = vmul.f32 %v8296_v13, %v8506_v63  ;;  %v4490_v32 = vmul.f32 %v8307_v52, %v8516_v58  ;;  %v8718_v42 = vmul.f32 %v4308_v36, %v8338_v33  ;;  %v10064_v36 = vld [vmem:[#allocation46_spill] sm:$0xff] }
0x126a   : > { %v8706_v25 = vadd.f32 %v4040_v40, %v3972_v11  ;;  %v6773_v61 = vpop.eup %6772  ;;  %v4813_v1 = vmul.f32 %v8332_v54, %v8526_v14  ;;  %v10060_v11 = vld [vmem:[#allocation44_spill] sm:$0xff]  ;;  %v4814_v34 = vmul.f32 %v10061_v10, %v8537_v56  ;;  %v8730_v26 = vmul.f32 %v10062_v51, %v4117_v0 }
0x126b   : > { %10059 = vst [vmem:[#allocation91_spill] sm:$0xff] %v8718_v42  ;;  %v8725_v35 = vmul.f32 %v6773_v61, %v10060_v11  ;;  %v8734_v60 = vmul.f32 %v10064_v36, %v8468_v49  ;;  %v8740_v54 = vmul.f32 %v10062_v51, %v4118_v38  ;;  %v8743_v61 = vmul.f32 %v4489_v31, %v10062_v51  ;;  %v10070_v10 = vld [vmem:[#allocation48_spill] sm:$0xff] }
0x126c   : > { %10063 = vst [vmem:[#allocation44_spill] sm:$0xff] %v8730_v26  ;;  %v8746_v11 = vmul.f32 %v4490_v32, %v10062_v51  ;;  %v8775_v36 = vmul.f32 %v4813_v1, %v10062_v51  ;;  %v8778_v16 = vmul.f32 %v4814_v34, %v10062_v51 }
0x126d   : > { %v6775_v15 = vpop.eup %6774  ;;  %10065 = vst [vmem:[#allocation45_spill] sm:$0xff] %v8734_v60  ;;  %10067 = vst [vmem:[#allocation47_spill] sm:$0xff] %v8740_v54  ;;  %v4309_v49 = vmul.f32 %v8187_v30, %v8725_v35  ;;  %v8755_v60 = vmul.f32 %v8275_v41, %v8725_v35  ;;  %v3882_v1 = vmul.f32 %v8142_v27, %v8725_v35 }
0x126e   : > { %v6777_v40 = vpop.eup %6776  ;;  %v8737_v45 = vmul.f32 %v6775_v15, %v10066_v50  ;;  %10068 = vst [vmem:[#allocation92_spill] sm:$0xff] %v8743_v61  ;;  %10069 = vst [vmem:[#allocation93_spill] sm:$0xff] %v8746_v11  ;;  %v4629_v50 = vmul.f32 %v8299_v5, %v8725_v35  ;;  %v10089_v11 = vrot.slane %v8664_v48, 1 }
0x126f   : > { %v8749_v0 = vmul.f32 %v6777_v40, %v10070_v10  ;;  %v8769_v40 = vmul.f32 %v8310_v4, %v8725_v35  ;;  %10072 = vst [vmem:[#allocation94_spill] sm:$0xff] %v8775_v36  ;;  %10073 = vst [vmem:[#allocation95_spill] sm:$0xff] %v8778_v16  ;;  %v8781_v13 = vmul.f32 %v4309_v49, %v8343_v18  ;;  %v10084_v16 = vld [vmem:[#allocation26_spill] sm:$0xff]  ;;  %v10086_v36 = vrot.slane %v8660_v59, 1 }
0x1270   : > { %v4310_v38 = vmul.f32 %v8191_v2, %v8737_v45  ;;  %v8763_v31 = vmul.f32 %v8279_v22, %v8737_v45  ;;  %v4630_v32 = vmul.f32 %v8319_v37, %v8737_v45  ;;  %v8785_v42 = vmul.f32 %v4629_v50, %v8338_v33  ;;  %v10082_v37 = vld [vmem:[#allocation64_spill] sm:$0xff] }
0x1271   : > { %10071 = vst [vmem:[#allocation48_spill] sm:$0xff] %v8769_v40  ;;  %v4631_v15 = vmul.f32 %v8299_v5, %v8749_v0  ;;  %10074 = vst [vmem:[#allocation96_spill] sm:$0xff] %v8781_v13  ;;  %v8789_v23 = vmul.f32 %v8327_v24, %v8737_v45  ;;  %v8800_v51 = vmul.f32 %v8310_v4, %v8749_v0  ;;  %6780 = vpow2.f32 %v10082_v37  ;;  %v10087_v40 = vld [vmem:[#allocation50_spill] sm:$0xff] }
0x1272   : > { %10075 = vst [vmem:[#allocation97_spill] sm:$0xff] %v8785_v42  ;;  %v8792_v10 = vmul.f32 %v4310_v38, %v8343_v18  ;;  %v8796_v34 = vmul.f32 %v4630_v32, %v8338_v33  ;;  %v4462_v38 = vld [vmem:[#allocation2 + $0x28] sm:$0xfe]  ;;  %v4001_v32 = vmul.f32 %v8158_v28, %v8725_v35  ;;  %v10083_v33 = vld [vmem:[#allocation67_spill] sm:$0xff]  ;;  %v8830_v37 = vmul.f32 %v8158_v28, %v8749_v0 }
0x1273   : > { %10076 = vst [vmem:[#allocation98_spill] sm:$0xff] %v8789_v23  ;;  %10079 = vst [vmem:[#allocation101_spill] sm:$0xff] %v8800_v51  ;;  %v8803_v49 = vmul.f32 %v4631_v15, %v8343_v18  ;;  %v10081_v15 = vld [vmem:[#allocation49_spill] sm:$0xff]  ;;  %v4486_v13 = vmul.f32 %v8307_v52, %v4462_v38  ;;  %v8844_v51 = vmul.f32 %v8275_v41, %v8749_v0  ;;  %v6601_v18 = vld [vmem:[%s7083_s22 + $0x38] sm:$0xff]   ;;  %s5221_s22 = sshll.u32 %s7095_s16, 4  ;;  %s9745_s22 = int_to_ptr.vmem [resolvable:$true] %s5221_s22 }
0x1274   : > { %10077 = vst [vmem:[#allocation99_spill] sm:$0xff] %v8792_v10  ;;  %10078 = vst [vmem:[#allocation100_spill] sm:$0xff] %v8796_v34  ;;  %v6779_v10 = vpop.eup %6778  ;;  %v3765_v34 = vadd.f32 1.0, %v8588_v47  ;;  %v3883_v47 = vmul.f32 %v8136_v9, %v8737_v45  ;;  %v4041_v38 = vrot.slane %v4001_v32, 1  ;;  %v8857_v42 = vmul.f32 %v8142_v27, %v8749_v0  ;;  %6094 = vmatprep.subr.bf16.mxu1 %v6601_v18  ;;  %s6844_s13 = scalar_lea.vmem %s9745_s22, 1024  ;;  %p6851_p5 = scmp.lt.s32.totalorder %s9745_s22, %s6849_s27 }
0x1275   : > { %10080 = vst [vmem:[#allocation102_spill] sm:$0xff] %v8803_v49  ;;  %v8814_v49 = vmul.f32 %v6779_v10, %v10081_v15  ;;  %v4002_v10 = vmul.f32 %v8146_v19, %v8737_v45  ;;  %6095 = vmatpush3.bf16.msra.mxu1 %v6601_v18  ;;  %v4120_v18 = vmul.f32 %v8150_v20, %v8516_v58  ;;  %p6845_p1 = scmp.ne.s32.totalorder %s9745_s22, %s6844_s13  ;;  %p6852_p6 = scmp.lt.s32.totalorder %s6850_s29, %s6844_s13 }
0x1276   : > { %6782 = vrcp.f32 %v3765_v34  ;;  %v4042_v32 = vsel %vm3920_vm6, %v10086_v36, %v4041_v38  ;;  %10088 = vst [vmem:[#allocation64_spill] sm:$0xff] %v8857_v42  ;;  %v10093_v42 = vrot.slane %v8477_v17, 1 }
0x1277   : > { %6784 = vpow2.f32 %v10083_v33  ;;  %v8835_v34 = vmul.f32 %v8146_v19, %v8814_v49  ;;  %v4311_v33 = vmul.f32 %v8187_v30, %v8749_v0  ;;  %v4043_v15 = vrot.slane %v4002_v10, 1  ;;  %p6846_p2 = pnand %p6845_p1, %p7043_p3  ;;  %p6853_p7 = por %p6852_p6, %p6851_p5 }
0x1278   : > { %6786 = vpow2.f32 %v8502_v6  ;;  %v4312_v50 = vmul.f32 %v8191_v2, %v8814_v49  ;;  %v8847_v6 = vmul.f32 %v4486_v13, %v10084_v16  ;;  %v3957_v10 = vmul.f32 %v10087_v40, %v3882_v1 }
0x1279   : > { %v9905_v23 = vrot.slane %v8835_v34, 1  ;;  %v4044_v61 = vsel %vm3920_vm6, %v10089_v11, %v4043_v15  ;;  %v10090_v13 = vrot.slane %v8830_v37, 1  ;;  %v8866_v59 = vadd.f32 %v4042_v32, %v8687_v55  ;;  %p6847_p4 = pneg %p6846_p2 }
0x127a   : > { %10085 = vst [vmem:[#allocation49_spill] sm:$0xff] %v8847_v6  ;;  %v8870_v36 = vmul.f32 %v8136_v9, %v8814_v49  ;;  %v8876_v48 = vadd.f32 %v4044_v61, %v8702_v39  ;;  %v3958_v11 = vmul.f32 %v10087_v40, %v3883_v47  ;;  %v3975_v32 = vadd.f32 %v3957_v10, %v8178_v12  ;;  %v10111_v9 = vld [vmem:[#allocation76_spill] sm:$0xff] }
0x127b   : > { %v4046_v16 = vsel %vm3920_vm6, %v4041_v38, %v10090_v13  ;;  %v4048_v1 = vsel %vm3920_vm6, %v4043_v15, %v9905_v23  ;;  %v8881_v38 = vmul.f32 %v8279_v22, %v8814_v49  ;;  %v10092_v13 = vrot.slane %v8645_v21, 1  ;;  %v6781_v55 = vpop.eup %6780  ;;  %p6854_p8 = pnand %p6853_p7, %p6847_p4 }
0x127c   : > { %10091 = vst [vmem:[#allocation67_spill] sm:$0xff] %v8870_v36  ;;  %v3976_v39 = vadd.f32 %v3958_v11, %v8166_v62  ;;  %v10094_v61 = vrot.slane %v8649_v44, 1  ;;  %v10095_v47 = vrot.slane %v8487_v8, 1  ;;  %v4119_v10 = vmul.f32 %v8162_v43, %v8506_v63 }
0x127d   : > { %v4034_v15 = vsel %vm3920_vm6, %v10093_v42, %v10092_v13  ;;  %v8899_v21 = vadd.f32 %v4046_v16, %v3975_v32  ;;  %v4121_v44 = vmul.f32 %v8162_v43, %v8526_v14  ;;  %v3766_v8 = vadd.f32 1.0, %v6781_v55  ;;  %v10096_v13 = vld [vmem:[#allocation51_spill] sm:$0xff]  ;;  %v10097_v16 = vld [vmem:[#allocation52_spill] sm:$0xff] }
0x127e   : > { %v4036_v23 = vsel %vm3920_vm6, %v10095_v47, %v10094_v61  ;;  %v4077_v6 = vadd.f32 %v4034_v15, %v8513_v3  ;;  %v8906_v11 = vadd.f32 %v4048_v1, %v3976_v39  ;;  %v4122_v3 = vmul.f32 %v8150_v20, %v8537_v56 }
0x127f   : > { %v4078_v17 = vadd.f32 %v4036_v23, %v8546_v29  ;;  %v4186_v15 = vmul.f32 %v10096_v13, %v4119_v10  ;;  %v4187_v29 = vmul.f32 %v10096_v13, %v4120_v18  ;;  %v10098_v23 = vld [vmem:[#allocation58_spill] sm:$0xff]  ;;  %v4305_v12 = vmul.f32 %v8187_v30, %v8506_v63 }
0x1280   : > { %v6783_v42 = vpop.eup %6782  ;;  %v8916_v47 = vmul.f32 %v10098_v23, %v4121_v44  ;;  %6788 = vrcp.f32 %v3766_v8  ;;  %v8921_v39 = vmul.f32 %v10098_v23, %v4122_v3  ;;  %v8930_v44 = vmul.f32 %v4311_v33, %v10087_v40  ;;  %v10107_v18 = vld [vmem:[#allocation90_spill] sm:$0xff] }
0x1281   : > { %v6785_v61 = vpop.eup %6784  ;;  %v8912_v32 = vmul.f32 %v6783_v42, %v10097_v16  ;;  %v4227_v62 = vrot.slane %v4186_v15, 2  ;;  %v10100_v8 = vrot.slane %v8730_v26, 2  ;;  %v4229_v3 = vrot.slane %v4187_v29, 2 }
0x1282   : > { %v6787_v55 = vpop.eup %6786  ;;  %v3767_v1 = vadd.f32 1.0, %v6785_v61  ;;  %v9913_v15 = vrot.slane %v8916_v47, 2  ;;  %v10103_v33 = vrot.slane %v8740_v54, 2 }
0x1283   : > { %3813 = vst [vmem:[#allocation2 + $0x80] sm:$0xff] %v8912_v32  ;;  %v3768_v10 = vadd.f32 1.0, %v6787_v55  ;;  %v8926_v42 = vmul.f32 %v8158_v28, %v8912_v32  ;;  %v4228_v61 = vsel %vm4216_vm8, %v10100_v8, %v4227_v62  ;;  %v4633_v16 = vmul.f32 %v8299_v5, %v8912_v32 }
0x1284   : > { %6790 = vrcp.f32 %v3767_v1  ;;  %v8940_v28 = vmul.f32 %v8310_v4, %v8912_v32  ;;  %v8943_v55 = vmul.f32 %v4312_v50, %v10087_v40  ;;  %v4230_v1 = vsel %vm4216_vm8, %v10103_v33, %v4229_v3 }
0x1285   : > { %10099 = vst [vmem:[#allocation50_spill] sm:$0xff] %v8926_v42  ;;  %6792 = vrcp.f32 %v3768_v10  ;;  %v4232_v29 = vsel %vm4216_vm8, %v4227_v62, %v9913_v15  ;;  %v9912_v10 = vrot.slane %v8921_v39, 2  ;;  %v4275_v8 = vadd.f32 %v4228_v61, %v4077_v6 }
0x1286   : > { %10101 = vst [vmem:[#allocation51_spill] sm:$0xff] %v8940_v28  ;;  %10102 = vst [vmem:[#allocation52_spill] sm:$0xff] %v8943_v55  ;;  %v4276_v26 = vadd.f32 %v4230_v1, %v4078_v17  ;;  %v4277_v36 = vadd.f32 %v4232_v29, %v8704_v53  ;;  %v4306_v50 = vmul.f32 %v8191_v2, %v8516_v58  ;;  %v10104_v1 = vrot.slane %v8755_v60, 1 }
0x1287   : > { %v4234_v54 = vsel %vm4216_vm8, %v4229_v3, %v9912_v10  ;;  %v4323_v33 = vmul.f32 %v4305_v12, %v8267_v57  ;;  %v8962_v62 = vmul.f32 %v8275_v41, %v8506_v63  ;;  %v4368_v6 = vmul.f32 %v8279_v22, %v8516_v58 }
0x1288   : > { %v4278_v17 = vadd.f32 %v4234_v54, %v8706_v25  ;;  %v4324_v53 = vmul.f32 %v4306_v50, %v8267_v57  ;;  %v4343_v61 = vadd.f32 %v8709_v46, %v4277_v36  ;;  %v10105_v29 = vrot.slane %v8679_v7, 1  ;;  %v10109_v50 = vld [vmem:[#allocation91_spill] sm:$0xff]  ;;  %v10110_v36 = vld [vmem:[#allocation37_spill] sm:$0xff] }
0x1289   : > { %v4341_v12 = vadd.f32 %v4323_v33, %v4275_v8  ;;  %v9919_v10 = vrot.slane %v8962_v62, 1  ;;  %v4403_v63 = vrot.slane %v4368_v6, 1  ;;  %v10106_v15 = vrot.slane %v8763_v31, 1 }
0x128a   : > { %v4410_v3 = vsel %vm3920_vm6, %v10105_v29, %v10104_v1  ;;  %v10108_v58 = vrot.slane %v10107_v18, 1  ;;  %v4342_v25 = vadd.f32 %v4324_v53, %v4276_v26  ;;  %v4344_v2 = vadd.f32 %v10109_v50, %v4278_v17  ;;  %v6789_v55 = vpop.eup %6788  ;;  %v10115_v53 = vld [vmem:[#allocation55_spill] sm:$0xff] }
0x128b   : > { %v4451_v46 = vadd.f32 %v4410_v3, %v4343_v61  ;;  %v4491_v30 = vmul.f32 %v10110_v36, %v8526_v14  ;;  %v10112_v1 = vrot.slane %v10111_v9, 1  ;;  %v10113_v33 = vmov %v10105_v29 }
0x128c   : > { %v4412_v54 = vsel %vm3920_vm6, %v10108_v58, %v10106_v15  ;;  %v4406_v6 = vsel %vm3920_vm6, %v9919_v10, %v10113_v33  ;;  %v10114_v26 = vmov %v10108_v58  ;;  %v4492_v17 = vmul.f32 %v8307_v52, %v8537_v56  ;;  %v10116_v33 = vld [vmem:[#allocation56_spill] sm:$0xff] }
0x128d   : > { %v8986_v8 = vsel %vm3920_vm6, %v10112_v1, %v4403_v63  ;;  %v4408_v15 = vsel %vm3920_vm6, %v4403_v63, %v10114_v26  ;;  %v8999_v61 = vmul.f32 %v6789_v55, %v10115_v53  ;;  %v4449_v9 = vadd.f32 %v4406_v6, %v4341_v12  ;;  %v10117_v12 = vld [vmem:[#allocation39_spill] sm:$0xff] }
0x128e   : > { %v4450_v29 = vadd.f32 %v4408_v15, %v4342_v25  ;;  %v4452_v3 = vadd.f32 %v4412_v54, %v4344_v2  ;;  %v6791_v58 = vpop.eup %6790  ;;  %v4493_v7 = vmul.f32 %v10110_v36, %v8725_v35  ;;  %v4494_v50 = vmul.f32 %v8307_v52, %v8737_v45 }
0x128f   : > { %v4509_v18 = vmul.f32 %v4491_v30, %v10096_v13  ;;  %v4510_v63 = vmul.f32 %v4492_v17, %v10096_v13  ;;  %v6793_v1 = vpop.eup %6792  ;;  %3814 = vst [vmem:[#allocation2 + $0x88] sm:$0xff] %v8999_v61  ;;  %v9009_v55 = vmul.f32 %v6791_v58, %v10116_v33  ;;  %v9013_v2 = vmul.f32 %v8146_v19, %v8999_v61  ;;  %v10119_v30 = vld [vmem:[#allocation57_spill] sm:$0xff] }
0x1290   : > { %v4634_v54 = vmul.f32 %v10117_v12, %v8999_v61  ;;  %v9019_v25 = vmul.f32 %v8327_v24, %v8999_v61  ;;  %v9022_v6 = vmul.f32 %v6793_v1, %v10119_v30  ;;  %v9025_v26 = vmul.f32 %v4493_v7, %v10098_v23 }
0x1291   : > { %v9028_v15 = vmul.f32 %v4494_v50, %v10098_v23  ;;  %v4549_v17 = vrot.slane %v4509_v18, 2  ;;  %3815 = vst [vmem:[#allocation2 + $0x90] sm:$0xff] %v9009_v55  ;;  %v9034_v58 = vmul.f32 %v4633_v16, %v10087_v40  ;;  %v4551_v33 = vrot.slane %v4510_v63, 2  ;;  %v10124_v18 = vld [vmem:[#allocation92_spill] sm:$0xff] }
0x1292   : > { %10118 = vst [vmem:[#allocation58_spill] sm:$0xff] %v9019_v25  ;;  %3816 = vst [vmem:[#allocation2 + $0x98] sm:$0xff] %v9022_v6  ;;  %v10121_v1 = vrot.slane %v8926_v42, 1  ;;  %v10122_v7 = vrot.slane %v8830_v37, 1  ;;  %v10125_v30 = vrot.slane %v10124_v18, 2  ;;  %v4553_v19 = vrot.slane %v9025_v26, 2 }
0x1293   : > { %10120 = vst [vmem:[#allocation90_spill] sm:$0xff] %v9034_v58  ;;  %v4555_v53 = vrot.slane %v9028_v15, 2  ;;  %v9051_v63 = vmul.f32 %v4634_v54, %v10087_v40  ;;  %v10127_v58 = vld [vmem:[#allocation93_spill] sm:$0xff]  ;;  %v9064_v26 = vmul.f32 %v8299_v5, %v8526_v14  ;;  %v10129_v15 = vrot.slane %v9013_v2, 1 }
0x1294   : > { %v9042_v50 = vsel %vm3920_vm6, %v10122_v7, %v10121_v1  ;;  %v4550_v10 = vsel %vm4216_vm8, %v10125_v30, %v4549_v17  ;;  %v10128_v42 = vrot.slane %v10127_v58, 2  ;;  %v4554_v1 = vsel %vm4216_vm8, %v4549_v17, %v4553_v19  ;;  %v10132_v17 = vld [vmem:[#allocation41_spill] sm:$0xff] }
0x1295   : > { %10123 = vst [vmem:[#allocation91_spill] sm:$0xff] %v9042_v50  ;;  %10126 = vst [vmem:[#allocation76_spill] sm:$0xff] %v9051_v63  ;;  %v9056_v28 = vadd.f32 %v4550_v10, %v4449_v9  ;;  %v4556_v7 = vsel %vm4216_vm8, %v4551_v33, %v4555_v53  ;;  %v10130_v40 = vrot.slane %v8835_v34, 1  ;;  %v4628_v9 = vmul.f32 %v10117_v12, %v8537_v56 }
0x1296   : > { %v4552_v37 = vsel %vm4216_vm8, %v10128_v42, %v4551_v33  ;;  %v4599_v42 = vadd.f32 %v4554_v1, %v4451_v46  ;;  %v4600_v10 = vadd.f32 %v4556_v7, %v4452_v3  ;;  %v4815_v33 = vmul.f32 %v10132_v17, %v8725_v35  ;;  %v10136_v46 = vld [vmem:[#allocation100_spill] sm:$0xff] }
0x1297   : > { %v9060_v30 = vadd.f32 %v4552_v37, %v4450_v29  ;;  %v9071_v54 = vsel %vm3920_vm6, %v10130_v40, %v10129_v15  ;;  %v9077_v29 = vmul.f32 %v8310_v4, %v8526_v14  ;;  %v10133_v37 = vld [vmem:[#allocation42_spill] sm:$0xff]  ;;  %v4817_v34 = vmul.f32 %v10132_v17, %v8749_v0  ;;  %v10134_v15 = vld [vmem:[#allocation97_spill] sm:$0xff] }
0x1298   : > { %10131 = vst [vmem:[#allocation55_spill] sm:$0xff] %v9071_v54  ;;  %v4816_v16 = vmul.f32 %v10133_v37, %v8737_v45  ;;  %v9086_v40 = vadd.f32 %v10134_v15, %v4599_v42  ;;  %v9089_v3 = vadd.f32 %v10136_v46, %v4600_v10  ;;  %v9093_v1 = vmul.f32 %v8327_v24, %v8537_v56  ;;  %v10144_v54 = vld [vmem:[#allocation59_spill] sm:$0xff] }
0x1299   : > { %v4818_v14 = vmul.f32 %v10133_v37, %v8814_v49  ;;  %v9098_v7 = vmul.f32 %v4815_v33, %v10096_v13  ;;  %v4835_v50 = vmul.f32 %v4817_v34, %v10098_v23  ;;  %v4123_v42 = vmul.f32 %v8162_v43, %v8725_v35 }
0x129a   : > { %10135 = vst [vmem:[#allocation56_spill] sm:$0xff] %v9086_v40  ;;  %10137 = vst [vmem:[#allocation39_spill] sm:$0xff] %v9089_v3  ;;  %v9101_v63 = vmul.f32 %v4816_v16, %v10096_v13  ;;  %v4124_v56 = vmul.f32 %v8150_v20, %v8737_v45  ;;  %v10140_v15 = vrot.slane %v8844_v51, 1  ;;  %v10141_v46 = vrot.slane %v8755_v60, 1 }
0x129b   : > { %10138 = vst [vmem:[#allocation57_spill] sm:$0xff] %v9098_v7  ;;  %v9107_v10 = vmul.f32 %v4818_v14, %v10098_v23  ;;  %v10142_v13 = vrot.slane %v8881_v38, 1  ;;  %v10143_v16 = vrot.slane %v8763_v31, 1  ;;  %v9923_v35 = vrot.slane %v9098_v7, 2 }
0x129c   : > { %10139 = vst [vmem:[#allocation92_spill] sm:$0xff] %v9101_v63  ;;  %v4414_v33 = vsel %vm3920_vm6, %v10141_v46, %v10140_v15  ;;  %v9924_v23 = vrot.slane %v9101_v63, 2  ;;  %v4877_v14 = vrot.slane %v4835_v50, 2  ;;  %v9124_v3 = vmul.f32 %v10144_v54, %v4123_v42 }
0x129d   : > { %v4416_v34 = vsel %vm3920_vm6, %v10143_v16, %v10142_v13  ;;  %v4879_v45 = vrot.slane %v9107_v10, 2  ;;  %v9128_v60 = vmul.f32 %v10144_v54, %v4124_v56  ;;  %v4495_v15 = vmul.f32 %v10110_v36, %v8749_v0 }
0x129e   : > { %v4496_v31 = vmul.f32 %v8307_v52, %v8814_v49  ;;  %v9135_v46 = vmul.f32 %v4628_v9, %v8267_v57  ;;  %v9141_v50 = vsel %vm4216_vm8, %v9923_v35, %v4877_v14  ;;  %v4235_v42 = vrot.slane %v9124_v3, 2 }
0x129f   : > { %10145 = vst [vmem:[#allocation93_spill] sm:$0xff] %v9141_v50  ;;  %v9147_v10 = vsel %vm4216_vm8, %v9924_v23, %v4879_v45  ;;  %v4237_v56 = vrot.slane %v9128_v60, 2  ;;  %v9151_v16 = vmul.f32 %v4495_v15, %v10144_v54  ;;  %v10147_v35 = vrot.slane %v8916_v47, 2 }
0x12a0   : > { %10146 = vst [vmem:[#allocation41_spill] sm:$0xff] %v9147_v10  ;;  %v9154_v9 = vmul.f32 %v4496_v31, %v10144_v54  ;;  %v9162_v3 = vmul.f32 %v8327_v24, %v8814_v49  ;;  %v4819_v23 = vmul.f32 %v10132_v17, %v8912_v32  ;;  %v10148_v60 = vrot.slane %v8921_v39, 2  ;;  %v10150_v39 = vld [vmem:[#allocation96_spill] sm:$0xff] }
0x12a1   : > { %v4236_v50 = vsel %vm4216_vm8, %v10147_v35, %v4235_v42  ;;  %v4557_v10 = vrot.slane %v9151_v16, 2  ;;  %v4632_v35 = vmul.f32 %v10117_v12, %v8814_v49  ;;  %v4820_v24 = vmul.f32 %v10133_v37, %v8999_v61  ;;  %v10151_v16 = vld [vmem:[#allocation99_spill] sm:$0xff] }
0x12a2   : > { %v4238_v15 = vsel %vm4216_vm8, %v10148_v60, %v4237_v56  ;;  %v4279_v31 = vadd.f32 %v4236_v50, %v8866_v59  ;;  %v4559_v13 = vrot.slane %v9154_v9, 2  ;;  %v9178_v40 = vmul.f32 %v4819_v23, %v10144_v54 }
0x12a3   : > { %v4280_v47 = vadd.f32 %v4238_v15, %v8876_v48  ;;  %v4558_v60 = vsel %vm4216_vm8, %v4553_v19, %v4557_v10  ;;  %v4125_v50 = vmul.f32 %v8162_v43, %v8749_v0  ;;  %v9187_v9 = vmul.f32 %v4820_v24, %v10144_v54 }
0x12a4   : > { %10149 = vst [vmem:[#allocation42_spill] sm:$0xff] %v9178_v40  ;;  %v4345_v63 = vadd.f32 %v10150_v39, %v4279_v31  ;;  %v4560_v59 = vsel %vm4216_vm8, %v4555_v53, %v4559_v13  ;;  %v9932_v15 = vrot.slane %v9178_v40, 2  ;;  %v4126_v23 = vmul.f32 %v8150_v20, %v8814_v49 }
0x12a5   : > { %v4346_v48 = vadd.f32 %v10151_v16, %v4280_v47  ;;  %10152 = vst [vmem:[#allocation97_spill] sm:$0xff] %v9187_v9  ;;  %v9933_v31 = vrot.slane %v9162_v3, 1  ;;  %v9195_v19 = vmul.f32 %v8275_v41, %v8912_v32  ;;  %v9199_v0 = vmul.f32 %v8279_v22, %v8999_v61  ;;  %v10155_v47 = vld [vmem:[#allocation43_spill] sm:$0xff] }
0x12a6   : > { %v4453_v7 = vadd.f32 %v4414_v33, %v4345_v63  ;;  %v4650_v24 = vmul.f32 %v4632_v35, %v10155_v47  ;;  %v4497_v54 = vmul.f32 %v10110_v36, %v8912_v32  ;;  %v4498_v49 = vmul.f32 %v8307_v52, %v8999_v61  ;;  %v10159_v52 = vld [vmem:[#allocation102_spill] sm:$0xff] }
0x12a7   : > { %10153 = vst [vmem:[#allocation100_spill] sm:$0xff] %v9195_v19  ;;  %10154 = vst [vmem:[#allocation59_spill] sm:$0xff] %v9199_v0  ;;  %v4454_v53 = vadd.f32 %v4416_v34, %v4346_v48  ;;  %v10156_v33 = vrot.slane %v9019_v25, 1  ;;  %v9934_v16 = vrot.slane %v9187_v9, 2  ;;  %v4821_v34 = vmul.f32 %v10132_v17, %v9009_v55  ;;  %v3860_v25 = vld [vmem:[#allocation2 + $0x80] sm:$0x7f] }
0x12a8   : > { %v4601_v63 = vadd.f32 %v4558_v60, %v4453_v7  ;;  %v9217_v35 = vsel %vm4216_vm8, %v4877_v14, %v9932_v15  ;;  %v9936_v47 = vrot.slane %v9195_v19, 1  ;;  %v10157_v7 = vld [vmem:[#allocation60_spill] sm:$0xff]  ;;  %v4822_v55 = vmul.f32 %v10133_v37, %v9022_v6  ;;  %v10171_v9 = vld [vmem:[#allocation67_spill] sm:$0xff]  ;;  %v10210_v19 = vld [vmem:[#allocation77_spill] sm:$0xff] }
0x12a9   : > { %v4738_v39 = vsel %vm3920_vm6, %v9933_v31, %v10156_v33  ;;  %v4602_v48 = vadd.f32 %v4560_v59, %v4454_v53  ;;  %v9221_v60 = vmul.f32 %v10157_v7, %v4125_v50  ;;  %v9937_v33 = vrot.slane %v9199_v0, 1  ;;  %v3861_v31 = vld [vmem:[#allocation2 + $0x88] sm:$0x7f] }
0x12aa   : > { %v9224_v22 = vadd.f32 %v10159_v52, %v4601_v63  ;;  %v9230_v59 = vmul.f32 %v10157_v7, %v4126_v23  ;;  %v9234_v15 = vmul.f32 %v4497_v54, %v10157_v7  ;;  %v9237_v50 = vmul.f32 %v4498_v49, %v10157_v7 }
0x12ab   : > { %10158 = vst [vmem:[#allocation96_spill] sm:$0xff] %v9221_v60  ;;  %v4668_v53 = vadd.f32 %v4650_v24, %v4602_v48  ;;  %v9935_v14 = vrot.slane %v9221_v60, 2  ;;  %v4884_v52 = vsel %vm4216_vm8, %v4879_v45, %v9934_v16  ;;  %v9244_v6 = vmul.f32 %v4821_v34, %v10157_v7  ;;  %v4289_v34 = vld [vmem:[#allocation2 + $0x90] sm:$0x7f]  ;;  %v10211_v60 = vld [vmem:[#allocation79_spill] sm:$0xff] }
0x12ac   : > { %10160 = vst [vmem:[#allocation99_spill] sm:$0xff] %v9234_v15  ;;  %10161 = vst [vmem:[#allocation43_spill] sm:$0xff] %v9237_v50  ;;  %v9938_v63 = vrot.slane %v9230_v59, 2  ;;  %v3886_v23 = vmul.f32 %v8142_v27, %v3860_v25  ;;  %v9939_v48 = vrot.slane %v9234_v15, 2  ;;  %v9940_v49 = vrot.slane %v9237_v50, 2 }
0x12ad   : > { %10162 = vst [vmem:[#allocation60_spill] sm:$0xff] %v9244_v6  ;;  %v4776_v24 = vadd.f32 %v4738_v39, %v4668_v53  ;;  %v4240_v54 = vsel %vm4216_vm8, %v4235_v42, %v9935_v14  ;;  %v10163_v45 = vrot.slane %v8844_v51, 1  ;;  %v10164_v27 = vrot.slane %v8881_v38, 1 }
0x12ae   : > { %v4242_v42 = vsel %vm4216_vm8, %v4237_v56, %v9938_v63  ;;  %v4281_v39 = vadd.f32 %v4240_v54, %v8899_v21  ;;  %v9270_v51 = vmul.f32 %v4822_v55, %v10157_v7  ;;  %v4564_v21 = vsel %vm4216_vm8, %v4559_v13, %v9940_v49  ;;  %v10166_v56 = vld [vmem:[#allocation23_spill] sm:$0xff]  ;;  %v10168_v55 = vld [vmem:[#allocation53_spill] sm:$0xff] }
0x12af   : > { %v4418_v16 = vsel %vm3920_vm6, %v10163_v45, %v9936_v47  ;;  %v4420_v25 = vsel %vm3920_vm6, %v10164_v27, %v9937_v33  ;;  %v9266_v53 = vadd.f32 %v4884_v52, %v4776_v24  ;;  %v4282_v14 = vadd.f32 %v4242_v42, %v8906_v11  ;;  %v4290_v47 = vld [vmem:[#allocation2 + $0x98] sm:$0x7f]  ;;  %v10167_v24 = vld [vmem:[#allocation52_spill] sm:$0xff]  ;;  %v4103_v33 = vld [vmem:[#allocation2 + $0x90] sm:$0x1] }
0x12b0   : > { %10165 = vst [vmem:[#allocation102_spill] sm:$0xff] %v9270_v51  ;;  %v4347_v38 = vadd.f32 %v8930_v44, %v4281_v39  ;;  %v4562_v27 = vsel %vm4216_vm8, %v4557_v10, %v9939_v48  ;;  %v3887_v52 = vmul.f32 %v10166_v56, %v3861_v31  ;;  %v3961_v54 = vmul.f32 %v10168_v55, %v3886_v23  ;;  %v10169_v42 = vld [vmem:[#allocation28_spill] sm:$0xff]  ;;  %v4104_v44 = vld [vmem:[#allocation2 + $0x98] sm:$0x1]  ;;  %v10170_v10 = vld [vmem:[#allocation29_spill] sm:$0xff] }
0x12b1   : > { %v4938_v11 = vsub.f32 0.0, %v9266_v53  ;;  %v4348_v7 = vadd.f32 %v10167_v24, %v4282_v14  ;;  %v4315_v45 = vmul.f32 %v10169_v42, %v4289_v34  ;;  %v4316_v48 = vmul.f32 %v10170_v10, %v4290_v47  ;;  %v10172_v14 = vld [vmem:[#allocation61_spill] sm:$0xff] }
0x12b2   : > { %v4455_v39 = vadd.f32 %v4418_v16, %v4347_v38  ;;  %v3962_v63 = vmul.f32 %v10168_v55, %v3887_v52  ;;  %v4128_v13 = vmul.f32 %v8150_v20, %v8999_v61  ;;  %v9292_v24 = vmul.f32 %v10172_v14, %v10171_v9  ;;  %v10174_v34 = vld [vmem:[#allocation25_spill] sm:$0xff]  ;;  %v10176_v52 = vld [vmem:[#allocation27_spill] sm:$0xff] }
0x12b3   : > { %v4952_v49 = vmul.f32 1.442695, %v4938_v11  ;;  %v4456_v31 = vadd.f32 %v4420_v25, %v4348_v7  ;;  %v4129_v16 = vmul.f32 %v8162_v43, %v4103_v33  ;;  %v4130_v38 = vmul.f32 %v8150_v20, %v4104_v44  ;;  %v10178_v25 = vld [vmem:[#allocation66_spill] sm:$0xff]  ;;  %v10183_v33 = vld [vmem:[#allocation45_spill] sm:$0xff] }
0x12b4   : > { %v9294_v23 = vadd.f32 %v4562_v27, %v4455_v39  ;;  %v3980_v40 = vadd.f32 %v3962_v63, %v10174_v34  ;;  %v9302_v11 = vadd.f32 %v3961_v54, %v10176_v52  ;;  %v10179_v7 = vld [vmem:[#allocation46_spill] sm:$0xff]  ;;  %v9307_v9 = vmul.f32 %v4315_v45, %v10168_v55 }
0x12b5   : > { %6794 = vpow2.f32 %v4952_v49  ;;  %v9299_v47 = vadd.f32 %v4564_v21, %v4456_v31  ;;  %v4182_v56 = vmul.f32 %v10179_v7, %v10178_v25  ;;  %v9310_v27 = vmul.f32 %v4316_v48, %v10168_v55  ;;  %v10182_v63 = vld [vmem:[#allocation62_spill] sm:$0xff]  ;;  %v10189_v55 = vld [vmem:[#allocation47_spill] sm:$0xff] }
0x12b6   : > { %10173 = vst [vmem:[#allocation23_spill] sm:$0xff] %v9294_v23  ;;  %10177 = vst [vmem:[#allocation28_spill] sm:$0xff] %v9302_v11  ;;  %v9313_v39 = vmul.f32 %v10182_v63, %v4128_v13  ;;  %v4221_v20 = vrot.slane %v10183_v33, 2  ;;  %v10184_v49 = vrot.slane %v9013_v2, 1  ;;  %v10186_v54 = vld [vmem:[#allocation54_spill] sm:$0xff]  ;;  %v10190_v13 = vrot.slane %v10189_v55, 2 }
0x12b7   : > { %10175 = vst [vmem:[#allocation52_spill] sm:$0xff] %v9299_v47  ;;  %10180 = vst [vmem:[#allocation29_spill] sm:$0xff] %v9307_v9  ;;  %v9321_v44 = vmul.f32 %v10186_v54, %v4129_v16  ;;  %v9324_v31 = vmul.f32 %v10186_v54, %v4130_v38  ;;  %v4219_v45 = vrot.slane %v4182_v56, 2  ;;  %v10187_v25 = vld [vmem:[#allocation30_spill] sm:$0xff]  ;;  %v10191_v33 = vld [vmem:[#allocation72_spill] sm:$0xff]  ;;  %v10195_v16 = vrot.slane %v8962_v62, 1 }
0x12b8   : > { %10181 = vst [vmem:[#allocation67_spill] sm:$0xff] %v9310_v27  ;;  %v9318_v21 = vadd.f32 %v10184_v49, %v3980_v40  ;;  %v10188_v9 = vrot.slane %v10187_v25, 2  ;;  %v4226_v27 = vsel %vm4216_vm8, %v4221_v20, %v10190_v13  ;;  %v10192_v11 = vrot.slane %v10191_v33, 1  ;;  %v10193_v2 = vld [vmem:[#allocation70_spill] sm:$0xff]  ;;  %v4461_v54 = vld [vmem:[#allocation2 + $0x20] sm:$0xfe] }
0x12b9   : > { %v10194_v40 = vrot.slane %v10193_v2, 1  ;;  %v10197_v25 = vld [vmem:[#allocation31_spill] sm:$0xff]  ;;  %v10199_v55 = vld [vmem:[#allocation44_spill] sm:$0xff]  ;;  %v10201_v13 = vld [vmem:[#allocation73_spill] sm:$0xff] }
0x12ba   : > { %10185 = vst [vmem:[#allocation61_spill] sm:$0xff] %v9318_v21  ;;  %v4222_v48 = vsel %vm4216_vm8, %v10188_v9, %v4221_v20  ;;  %v10196_v38 = vmov %v10192_v11  ;;  %v10198_v21 = vrot.slane %v10197_v25, 2  ;;  %v10200_v51 = vrot.slane %v10199_v55, 2  ;;  %v10202_v47 = vld [vmem:[#allocation69_spill] sm:$0xff]  ;;  %v10204_v62 = vld [vmem:[#allocation74_spill] sm:$0xff]  ;;  %v10205_v33 = vld [vmem:[#allocation32_spill] sm:$0xff] }
0x12bb   : > { %v4398_v49 = vsel %vm3920_vm6, %v10194_v40, %v10192_v11  ;;  %v4402_v56 = vsel %vm3920_vm6, %v10196_v38, %v10195_v16  ;;  %v4272_v6 = vadd.f32 %v4222_v48, %v10201_v13  ;;  %v4274_v50 = vadd.f32 %v4226_v27, %v10202_v47  ;;  %v10203_v11 = vld [vmem:[#allocation68_spill] sm:$0xff]  ;;  %v10207_v23 = vld [vmem:[#allocation33_spill] sm:$0xff]  ;;  %v10208_v25 = vld [vmem:[#allocation71_spill] sm:$0xff] }
0x12bc   : > { %v4220_v9 = vsel %vm4216_vm8, %v10198_v21, %v4219_v45  ;;  %v4224_v20 = vsel %vm4216_vm8, %v4219_v45, %v10200_v51  ;;  %v10206_v16 = vrot.slane %v10193_v2, 1  ;;  %v10209_v0 = vrot.slane %v10208_v25, 1  ;;  %v10212_v47 = vld [vmem:[#allocation80_spill] sm:$0xff]  ;;  %v10213_v48 = vld [vmem:[#allocation75_spill] sm:$0xff]  ;;  %v10215_v2 = vld [vmem:[#allocation81_spill] sm:$0xff] }
0x12bd   : > { %v4271_v40 = vadd.f32 %v4220_v9, %v10203_v11  ;;  %v4273_v15 = vadd.f32 %v4224_v20, %v10204_v62  ;;  %v4338_v55 = vadd.f32 %v10210_v19, %v4272_v6  ;;  %v4340_v51 = vadd.f32 %v10211_v60, %v4274_v50  ;;  %v10214_v20 = vld [vmem:[#allocation78_spill] sm:$0xff]  ;;  %v10216_v62 = vld [vmem:[#allocation49_spill] sm:$0xff] }
0x12be   : > { %v4443_v38 = vadd.f32 %v10206_v16, %v10205_v33  ;;  %v4444_v21 = vadd.f32 %v10209_v0, %v10207_v23  ;;  %v4485_v45 = vmul.f32 %v10110_v36, %v4461_v54  ;;  %v4505_v27 = vmul.f32 %v10212_v47, %v10179_v7  ;;  %v4609_v16 = vld [vmem:[#allocation2 + $0x20] sm:$0x80]  ;;  %v4610_v0 = vld [vmem:[#allocation2 + $0x28] sm:$0x80]  ;;  %v10217_v23 = vld [vmem:[#allocation82_spill] sm:$0xff] }
0x12bf   : > { %v4337_v9 = vadd.f32 %v10213_v48, %v4271_v40  ;;  %v4339_v13 = vadd.f32 %v10214_v20, %v4273_v15  ;;  %v4506_v11 = vmul.f32 %v10215_v2, %v10179_v7  ;;  %v4540_v33 = vrot.slane %v10216_v62, 2  ;;  %v10218_v50 = vld [vmem:[#allocation26_spill] sm:$0xff]  ;;  %v6795_v48 = vpop.eup %6794 }
0x12c0   : > { %v4446_v19 = vadd.f32 %v10217_v23, %v4338_v55  ;;  %v4448_v60 = vadd.f32 %v8986_v8, %v4340_v51  ;;  %v4503_v6 = vmul.f32 %v4485_v45, %v10218_v50  ;;  %v4541_v54 = vrot.slane %v4505_v27, 2 }
0x12c1   : > { %v4445_v25 = vadd.f32 %v4398_v49, %v4337_v9  ;;  %v4447_v47 = vadd.f32 %v4402_v56, %v4339_v13  ;;  %v4543_v36 = vrot.slane %v4506_v11, 2  ;;  %v4592_v40 = vadd.f32 %v4540_v33, %v4444_v21  ;;  %v10221_v13 = vld [vmem:[#allocation24_spill] sm:$0xff] }
0x12c2   : > { %v4539_v15 = vrot.slane %v4503_v6, 2  ;;  %v10219_v20 = vrot.slane %v10124_v18, 2  ;;  %v4621_v62 = vmul.f32 %v8299_v5, %v4609_v16  ;;  %v4622_v41 = vmul.f32 %v10117_v12, %v4610_v0 }
0x12c3   : > { %v4965_v55 = vadd.f32 1.0, %v6795_v48  ;;  %v4544_v8 = vsel %vm4216_vm8, %v4540_v33, %v4543_v36  ;;  %v10220_v51 = vrot.slane %v10127_v58, 2  ;;  %v4645_v0 = vmul.f32 %v9064_v26, %v8267_v57  ;;  %v10222_v33 = vld [vmem:[#allocation86_spill] sm:$0xff]  ;;  %v10223_v58 = vld [vmem:[#allocation88_spill] sm:$0xff] }
0x12c4   : > { %v4546_v2 = vsel %vm4216_vm8, %v4541_v54, %v10219_v20  ;;  %v4542_v21 = vsel %vm4216_vm8, %v4539_v15, %v4541_v54  ;;  %v4591_v45 = vadd.f32 %v4539_v15, %v4443_v38  ;;  %v4594_v27 = vadd.f32 %v4544_v8, %v4446_v19  ;;  %v10225_v38 = vld [vmem:[#allocation85_spill] sm:$0xff]  ;;  %v10227_v20 = vld [vmem:[#allocation83_spill] sm:$0xff] }
0x12c5   : > { %v4548_v49 = vsel %vm4216_vm8, %v4543_v36, %v10220_v51  ;;  %v4595_v56 = vadd.f32 %v4546_v2, %v4447_v47  ;;  %6796 = vrcp.f32 %v4965_v55  ;;  %v4593_v18 = vadd.f32 %v4542_v21, %v4445_v25  ;;  %v10224_v36 = vld [vmem:[#allocation89_spill] sm:$0xff]  ;;  %v10229_v2 = vld [vmem:[#allocation84_spill] sm:$0xff]  ;;  %v10232_v51 = vld [vmem:[#allocation87_spill] sm:$0xff] }
0x12c6   : > { %v4596_v9 = vadd.f32 %v4548_v49, %v4448_v60  ;;  %v4639_v11 = vmul.f32 %v4621_v62, %v10221_v13  ;;  %v4640_v16 = vmul.f32 %v4622_v41, %v10221_v13  ;;  %v4660_v23 = vadd.f32 %v10222_v33, %v4594_v27  ;;  %v10226_v15 = vld [vmem:[#allocation65_spill] sm:$0xff] }
0x12c7   : > { %v4661_v6 = vadd.f32 %v10223_v58, %v4595_v56  ;;  %v4659_v19 = vadd.f32 %v10225_v38, %v4593_v18  ;;  %v4664_v60 = vadd.f32 %v9135_v46, %v9060_v30  ;;  %v4663_v25 = vadd.f32 %v4645_v0, %v9056_v28  ;;  %v4783_v8 = vld [vmem:[#allocation2 + $0x30] sm:$0xfe]  ;;  %v10234_v46 = vld [vmem:[#allocation48_spill] sm:$0xff] }
0x12c8   : > { %v4662_v47 = vadd.f32 %v10224_v36, %v4596_v9  ;;  %v4657_v48 = vadd.f32 %v4639_v11, %v4591_v45  ;;  %v4658_v54 = vadd.f32 %v4640_v16, %v4592_v40  ;;  %v4685_v41 = vmul.f32 %v8310_v4, %v10226_v15  ;;  %v10237_v45 = vld [vmem:[#allocation98_spill] sm:$0xff]  ;;  %v4785_v16 = vld [vmem:[#allocation2 + $0x40] sm:$0xff]  ;;  %v4786_v15 = vld [vmem:[#allocation2 + $0x48] sm:$0xff] }
0x12c9   : > { %v4718_v57 = vrot.slane %v10227_v20, 1  ;;  %v10228_v26 = vrot.slane %v9077_v29, 1  ;;  %v10230_v62 = vrot.slane %v10229_v2, 1  ;;  %v10231_v40 = vrot.slane %v9093_v1, 1  ;;  %v4784_v11 = vld [vmem:[#allocation2 + $0x38] sm:$0xfe] }
0x12ca   : > { %v10233_v49 = vrot.slane %v10232_v51, 1  ;;  %v10235_v28 = vrot.slane %v10234_v46, 1  ;;  %v10238_v27 = vrot.slane %v10237_v45, 1  ;;  %v4717_v0 = vrot.slane %v4685_v41, 1 }
0x12cb   : > { %v4724_v55 = vsel %vm3920_vm6, %v10230_v62, %v10228_v26  ;;  %v10236_v56 = vmov %v10228_v26  ;;  %v10239_v9 = vmov %v10231_v40  ;;  %v4766_v36 = vadd.f32 %v4718_v57, %v4658_v54 }
0x12cc   : > { %v4726_v30 = vsel %vm3920_vm6, %v10233_v49, %v10231_v40  ;;  %v4728_v21 = vsel %vm3920_vm6, %v10236_v56, %v10235_v28  ;;  %v4730_v18 = vsel %vm3920_vm6, %v10239_v9, %v10238_v27  ;;  %v4769_v13 = vadd.f32 %v4724_v55, %v4661_v6 }
0x12cd   : > { %v10240_v33 = vmov %v10233_v49  ;;  %v4770_v38 = vadd.f32 %v4726_v30, %v4662_v47  ;;  %v4771_v20 = vadd.f32 %v4728_v21, %v4663_v25  ;;  %v4772_v26 = vadd.f32 %v4730_v18, %v4664_v60  ;;  %v10244_v25 = vld [vmem:[#allocation94_spill] sm:$0xff]  ;;  %v10246_v49 = vld [vmem:[#allocation92_spill] sm:$0xff] }
0x12ce   : > { %v4722_v58 = vsel %vm3920_vm6, %v4718_v57, %v10240_v33  ;;  %v4809_v62 = vmul.f32 %v10132_v17, %v4783_v8  ;;  %v10241_v1 = vrot.slane %v10229_v2, 1  ;;  %v4765_v6 = vadd.f32 %v4717_v0, %v4657_v48  ;;  %v10250_v33 = vld [vmem:[#allocation101_spill] sm:$0xff] }
0x12cf   : > { %v4768_v29 = vadd.f32 %v4722_v58, %v4660_v23  ;;  %v4810_v55 = vmul.f32 %v10133_v37, %v4784_v11  ;;  %v4811_v41 = vmul.f32 %v10132_v17, %v4785_v16  ;;  %v4812_v54 = vmul.f32 %v10133_v37, %v4786_v15  ;;  %v10242_v23 = vld [vmem:[#allocation57_spill] sm:$0xff]  ;;  %v6797_v27 = vpop.eup %6796 }
0x12d0   : > { %v4720_v40 = vsel %vm3920_vm6, %v4717_v0, %v10241_v1  ;;  %v9428_v47 = vmul.f32 %v4809_v62, %v10218_v50  ;;  %v10243_v60 = vrot.slane %v10242_v23, 2  ;;  %v10245_v57 = vrot.slane %v10244_v25, 2  ;;  %v10256_v23 = vld [vmem:[#allocation56_spill] sm:$0xff]  ;;  %v10258_v25 = vld [vmem:[#allocation51_spill] sm:$0xff] }
0x12d1   : > { %v9424_v51 = vadd.f32 %v4720_v40, %v4659_v19  ;;  %v4828_v8 = vmul.f32 %v4810_v55, %v10218_v50  ;;  %v9437_v48 = vmul.f32 %v4811_v41, %v10179_v7  ;;  %v10247_v30 = vrot.slane %v10246_v49, 2  ;;  %v10248_v19 = vld [vmem:[#allocation95_spill] sm:$0xff] }
0x12d2   : > { %v4874_v2 = vsel %vm4216_vm8, %v10245_v57, %v10243_v60  ;;  %v10249_v28 = vrot.slane %v10248_v19, 2  ;;  %v4245_v9 = vrot.slane %v9313_v39, 2  ;;  %v4830_v18 = vmul.f32 %v4812_v54, %v10179_v7 }
0x12d3   : > { %v9444_v21 = vadd.f32 %v4874_v2, %v4771_v20  ;;  %v4863_v11 = vrot.slane %v9428_v47, 2  ;;  %v4864_v50 = vrot.slane %v4828_v8, 2  ;;  %v4865_v0 = vrot.slane %v9437_v48, 2 }
0x12d4   : > { %v4876_v56 = vsel %vm4216_vm8, %v10249_v28, %v10247_v30  ;;  %v10251_v58 = vrot.slane %v10250_v33, 1  ;;  %v10252_v15 = vrot.slane %v10234_v46, 1  ;;  %v10253_v20 = vrot.slane %v9162_v3, 1 }
0x12d5   : > { %v9449_v16 = vadd.f32 %v4876_v56, %v4772_v26  ;;  %v10254_v1 = vrot.slane %v10237_v45, 1  ;;  %v4247_v7 = vrot.slane %v9321_v44, 2  ;;  %v4249_v26 = vrot.slane %v9324_v31, 2 }
0x12d6   : > { %v4732_v62 = vsel %vm3920_vm6, %v10252_v15, %v10251_v58  ;;  %v4867_v55 = vrot.slane %v4830_v18, 2  ;;  %v10255_v54 = vmov %v10245_v57  ;;  %v9472_v3 = vadd.f32 %v4863_v11, %v4765_v6 }
0x12d7   : > { %v4734_v40 = vsel %vm3920_vm6, %v10254_v1, %v10253_v20  ;;  %v4936_v41 = vsub.f32 0.0, %v9449_v16  ;;  %v4870_v46 = vsel %vm4216_vm8, %v4865_v0, %v10255_v54  ;;  %v9474_v45 = vadd.f32 %v4864_v50, %v4766_v36  ;;  %v10264_v54 = vld [vmem:[#allocation64_spill] sm:$0xff] }
0x12d8   : > { %v4773_v60 = vadd.f32 %v4732_v62, %v10256_v23  ;;  %v4868_v57 = vsel %vm4216_vm8, %v4864_v50, %v4867_v55  ;;  %v10257_v2 = vmov %v10249_v28  ;;  %v9481_v49 = vadd.f32 %v4870_v46, %v4769_v13  ;;  %v10261_v50 = vld [vmem:[#allocation39_spill] sm:$0xff]  ;;  %v10262_v62 = vld [vmem:[#allocation93_spill] sm:$0xff] }
0x12d9   : > { %v4872_v8 = vsel %vm4216_vm8, %v4867_v55, %v10257_v2  ;;  %v10259_v30 = vrot.slane %v10258_v25, 1  ;;  %v10260_v28 = vmov %v10251_v58  ;;  %v9488_v6 = vadd.f32 %v4868_v57, %v4768_v29  ;;  %v10265_v2 = vld [vmem:[#allocation55_spill] sm:$0xff] }
0x12da   : > { %v9490_v36 = vadd.f32 %v4872_v8, %v4770_v38  ;;  %v4933_v18 = vsub.f32 0.0, %v9474_v45  ;;  %v4948_v58 = vmul.f32 1.442695, %v4936_v41  ;;  %v4774_v15 = vadd.f32 %v4734_v40, %v10261_v50  ;;  %v10263_v38 = vld [vmem:[#allocation41_spill] sm:$0xff] }
0x12db   : > { %v4736_v56 = vsel %vm3920_vm6, %v10260_v28, %v10259_v30  ;;  %v9496_v13 = vadd.f32 %v10262_v62, %v4773_v60  ;;  %v4983_v20 = vmul.f32 %v6797_v27, %v9266_v53  ;;  %v4934_v33 = vsub.f32 0.0, %v9488_v6  ;;  %v4353_v8 = vld [vmem:[#allocation2 + $0x90] sm:$0xff]  ;;  %v4354_v28 = vld [vmem:[#allocation2 + $0x98] sm:$0xff]  ;;  %v10268_v62 = vld [vmem:[#allocation35_spill] sm:$0xff] }
0x12dc   : > { %v4775_v19 = vadd.f32 %v4736_v56, %v9224_v22  ;;  %v4935_v1 = vsub.f32 0.0, %v9490_v36  ;;  %v4942_v29 = vmul.f32 1.442695, %v4933_v18  ;;  %6798 = vpow2.f32 %v4948_v58 }
0x12dd   : > { %v9502_v55 = vadd.f32 %v10263_v38, %v4774_v15  ;;  %v3959_v40 = vmul.f32 %v10172_v14, %v10264_v54  ;;  %v3978_v22 = vadd.f32 %v9292_v24, %v10174_v34  ;;  %v4944_v46 = vmul.f32 1.442695, %v4934_v33  ;;  %v10272_v38 = vld [vmem:[#allocation96_spill] sm:$0xff] }
0x12de   : > { %v4925_v41 = vadd.f32 %v9217_v35, %v4775_v19  ;;  %6800 = vpow2.f32 %v4942_v29  ;;  %v4946_v53 = vmul.f32 1.442695, %v4935_v1  ;;  %v4127_v27 = vmul.f32 %v8162_v43, %v8912_v32  ;;  %v10271_v1 = vld [vmem:[#allocation38_spill] sm:$0xff] }
0x12df   : > { %v4937_v23 = vsub.f32 0.0, %v9502_v55  ;;  %v3977_v57 = vadd.f32 %v3959_v40, %v10176_v52  ;;  %v4086_v35 = vadd.f32 %v10265_v2, %v3978_v22  ;;  %6802 = vpow2.f32 %v4944_v46  ;;  %v10267_v52 = vld [vmem:[#allocation91_spill] sm:$0xff]  ;;  %v10274_v2 = vld [vmem:[#allocation100_spill] sm:$0xff] }
0x12e0   : > { %v9512_v60 = vmul.f32 %v4983_v20, %v4925_v41  ;;  %v9517_v30 = vmul.f32 %v10182_v63, %v4127_v27  ;;  %v10266_v24 = vrot.slane %v9230_v59, 2  ;;  %v4313_v43 = vmul.f32 %v10169_v42, %v8912_v32  ;;  %v10269_v20 = vld [vmem:[#allocation36_spill] sm:$0xff]  ;;  %v10270_v32 = vld [vmem:[#allocation37_spill] sm:$0xff] }
0x12e1   : > { %6804 = vpow2.f32 %v4946_v53  ;;  %v4950_v56 = vmul.f32 1.442695, %v4937_v23  ;;  %v4085_v18 = vadd.f32 %v10267_v52, %v3977_v57  ;;  %v4314_v15 = vmul.f32 %v10170_v10, %v8999_v61 }
0x12e2   : > { %v4246_v34 = vsel %vm4216_vm8, %v10266_v24, %v4245_v9  ;;  %v4243_v50 = vrot.slane %v9517_v30, 2  ;;  %v4331_v19 = vmul.f32 %v4313_v43, %v10172_v14  ;;  %v9532_v59 = vmul.f32 %v10268_v62, %v4353_v8 }
0x12e3   : > { %v4284_v58 = vadd.f32 %v4246_v34, %v4086_v35  ;;  %6806 = vpow2.f32 %v4950_v56  ;;  %v9535_v33 = vmul.f32 %v10269_v20, %v4354_v28  ;;  %v4499_v42 = vmul.f32 %v10270_v32, %v4353_v8 }
0x12e4   : > { %v4500_v29 = vmul.f32 %v10271_v1, %v4354_v28  ;;  %v10273_v41 = vrot.slane %v10272_v38, 2  ;;  %v4332_v61 = vmul.f32 %v4314_v15, %v10172_v14  ;;  %v9957_v10 = vrot.slane %v9532_v59, 1  ;;  %v10278_v38 = vld [vmem:[#allocation23_spill] sm:$0xff] }
0x12e5   : > { %v4635_v40 = vmul.f32 %v8299_v5, %v4353_v8  ;;  %v4423_v46 = vrot.slane %v9535_v33, 1  ;;  %v9549_v53 = vmul.f32 %v4499_v42, %v10182_v63  ;;  %v10275_v35 = vrot.slane %v10274_v2, 1 }
0x12e6   : > { %v4244_v54 = vsel %vm4216_vm8, %v10273_v41, %v4243_v50  ;;  %v9552_v27 = vmul.f32 %v4500_v29, %v10182_v63  ;;  %v6799_v23 = vpop.eup %6798  ;;  %v4350_v57 = vadd.f32 %v4332_v61, %v4284_v58  ;;  %v4636_v34 = vmul.f32 %v10117_v12, %v4354_v28  ;;  %v10279_v41 = vld [vmem:[#allocation90_spill] sm:$0xff] }
0x12e7   : > { %v4283_v22 = vadd.f32 %v4244_v54, %v4085_v18  ;;  %v4422_v24 = vsel %vm3920_vm6, %v10275_v35, %v9957_v10  ;;  %v4653_v43 = vmul.f32 %v4635_v40, %v10172_v14  ;;  %v4963_v56 = vadd.f32 1.0, %v6799_v23  ;;  %v10276_v18 = vld [vmem:[#allocation59_spill] sm:$0xff] }
0x12e8   : > { %v10277_v15 = vrot.slane %v10276_v18, 1  ;;  %v9956_v58 = vrot.slane %v9549_v53, 2  ;;  %v6801_v20 = vpop.eup %6800  ;;  %v4567_v1 = vrot.slane %v9552_v27, 2  ;;  %v4654_v29 = vmul.f32 %v4636_v34, %v10172_v14  ;;  %v10280_v40 = vld [vmem:[#allocation99_spill] sm:$0xff]  ;;  %v10284_v14 = vld [vmem:[#allocation52_spill] sm:$0xff] }
0x12e9   : > { %v4349_v52 = vadd.f32 %v4331_v19, %v4283_v22  ;;  %v4669_v54 = vadd.f32 %v10279_v41, %v10278_v38  ;;  %v4960_v61 = vadd.f32 1.0, %v6801_v20  ;;  %6808 = vrcp.f32 %v4963_v56  ;;  %v6803_v2 = vpop.eup %6802  ;;  %v10285_v34 = vld [vmem:[#allocation76_spill] sm:$0xff] }
0x12ea   : > { %v4424_v62 = vsel %vm3920_vm6, %v10277_v15, %v4423_v46  ;;  %v10281_v22 = vrot.slane %v10280_v40, 2  ;;  %v4670_v15 = vadd.f32 %v10285_v34, %v10284_v14  ;;  %v10286_v56 = vld [vmem:[#allocation40_spill] sm:$0xff]  ;;  %v4961_v20 = vadd.f32 1.0, %v6803_v2  ;;  %v4675_v40 = vld [vmem:[#allocation2 + $0xa0] sm:$0xff] }
0x12eb   : > { %v4458_v42 = vadd.f32 %v4424_v62, %v4350_v57  ;;  %v4457_v19 = vadd.f32 %v4422_v24, %v4349_v52  ;;  %v10282_v57 = vld [vmem:[#allocation43_spill] sm:$0xff]  ;;  %v4697_v62 = vmul.f32 %v8310_v4, %v4353_v8  ;;  %v4698_v24 = vmul.f32 %v10286_v56, %v4354_v28  ;;  %v6805_v52 = vpop.eup %6804 }
0x12ec   : > { %v4566_v23 = vsel %vm4216_vm8, %v10281_v22, %v9956_v58  ;;  %v10283_v35 = vrot.slane %v10282_v57, 2  ;;  %6810 = vrcp.f32 %v4960_v61  ;;  %v4676_v22 = vld [vmem:[#allocation2 + $0xa8] sm:$0xff]  ;;  %v4962_v58 = vadd.f32 1.0, %v6805_v52 }
0x12ed   : > { %v4605_v38 = vadd.f32 %v4566_v23, %v4457_v19  ;;  %v9586_v10 = vmul.f32 %v8310_v4, %v4675_v40  ;;  %v9589_v57 = vmul.f32 %v10286_v56, %v4676_v22  ;;  %v6807_v14 = vpop.eup %6806  ;;  %6812 = vrcp.f32 %v4961_v20  ;;  %v10288_v23 = vld [vmem:[#allocation58_spill] sm:$0xff] }
0x12ee   : > { %v4568_v18 = vsel %vm4216_vm8, %v10283_v35, %v4567_v1  ;;  %v4739_v35 = vrot.slane %v4697_v62, 1  ;;  %v4741_v28 = vrot.slane %v4698_v24, 1  ;;  %6814 = vrcp.f32 %v4962_v58 }
0x12ef   : > { %v4606_v41 = vadd.f32 %v4568_v18, %v4458_v42  ;;  %v4671_v8 = vadd.f32 %v4653_v43, %v4605_v38  ;;  %v4964_v2 = vadd.f32 1.0, %v6807_v14  ;;  %v10287_v61 = vrot.slane %v10258_v25, 1  ;;  %v10290_v38 = vld [vmem:[#allocation60_spill] sm:$0xff] }
0x12f0   : > { %v4743_v19 = vrot.slane %v9586_v10, 1  ;;  %v10289_v4 = vrot.slane %v10288_v23, 1  ;;  %v4745_v56 = vrot.slane %v9589_v57, 1  ;;  %v4823_v52 = vmul.f32 %v10132_v17, %v4675_v40 }
0x12f1   : > { %v4672_v34 = vadd.f32 %v4654_v29, %v4606_v41  ;;  %v4740_v42 = vsel %vm3920_vm6, %v10287_v61, %v4739_v35  ;;  %6816 = vrcp.f32 %v4964_v2  ;;  %v4824_v25 = vmul.f32 %v10133_v37, %v4676_v22  ;;  %v10292_v41 = vld [vmem:[#allocation42_spill] sm:$0xff]  ;;  %v10296_v61 = vld [vmem:[#allocation97_spill] sm:$0xff] }
0x12f2   : > { %v4742_v18 = vsel %vm3920_vm6, %v10289_v4, %v4741_v28  ;;  %v4777_v62 = vadd.f32 %v4740_v42, %v4669_v54  ;;  %v4744_v43 = vsel %vm3920_vm6, %v4739_v35, %v4743_v19  ;;  %v4746_v29 = vsel %vm3920_vm6, %v4741_v28, %v4745_v56 }
0x12f3   : > { %v4778_v58 = vadd.f32 %v4742_v18, %v4670_v15  ;;  %v4779_v24 = vadd.f32 %v4744_v43, %v4671_v8  ;;  %v9608_v20 = vmul.f32 %v4823_v52, %v10182_v63  ;;  %v10291_v54 = vrot.slane %v10290_v38, 2  ;;  %v10294_v15 = vld [vmem:[#allocation102_spill] sm:$0xff]  ;;  %v6809_v23 = vpop.eup %6808  ;;  %v10298_v52 = vld [vmem:[#allocation28_spill] sm:$0xff] }
0x12f4   : > { %v10293_v40 = vrot.slane %v10292_v41, 2  ;;  %v4780_v2 = vadd.f32 %v4746_v29, %v4672_v34  ;;  %v9616_v35 = vmul.f32 %v4824_v25, %v10182_v63  ;;  %v10295_v22 = vrot.slane %v10294_v15, 2  ;;  %v10299_v43 = vld [vmem:[#allocation50_spill] sm:$0xff] }
0x12f5   : > { %v10297_v42 = vrot.slane %v10296_v61, 2  ;;  %v4889_v4 = vrot.slane %v9608_v20, 2  ;;  %v4248_v63 = vsel %vm4216_vm8, %v4243_v50, %v4247_v7  ;;  %v4981_v25 = vmul.f32 %v6809_v23, %v9449_v16  ;;  %v10306_v23 = vld [vmem:[#allocation63_spill] sm:$0xff] }
0x12f6   : > { %v4886_v14 = vsel %vm4216_vm8, %v10293_v40, %v10291_v54  ;;  %v10300_v54 = vrot.slane %v10299_v43, 1  ;;  %v4250_v44 = vsel %vm4216_vm8, %v4245_v9, %v4249_v26  ;;  %v6811_v29 = vpop.eup %6810  ;;  %v10301_v7 = vrot.slane %v10290_v38, 2  ;;  %v10304_v40 = vld [vmem:[#allocation29_spill] sm:$0xff] }
0x12f7   : > { %v4888_v28 = vsel %vm4216_vm8, %v10297_v42, %v10295_v22  ;;  %v9623_v8 = vadd.f32 %v4886_v14, %v4777_v62  ;;  %v4866_v62 = vsel %vm4216_vm8, %v4863_v11, %v4865_v0  ;;  %v10302_v0 = vld [vmem:[#allocation61_spill] sm:$0xff]  ;;  %v4978_v30 = vmul.f32 %v6811_v29, %v9474_v45  ;;  %v6813_v50 = vpop.eup %6812  ;;  %v4612_v45 = vld [vmem:[#allocation2 + $0xa8] sm:$0x7f] }
0x12f8   : > { %v9626_v18 = vadd.f32 %v4888_v28, %v4778_v58  ;;  %v4087_v34 = vadd.f32 %v10300_v54, %v10298_v52  ;;  %v4891_v58 = vrot.slane %v9616_v35, 2  ;;  %v4890_v48 = vsel %vm4216_vm8, %v10301_v7, %v4889_v4  ;;  %v6815_v42 = vpop.eup %6814  ;;  %v4800_v7 = vld [vmem:[#allocation2 + $0xb8] sm:$0x1] }
0x12f9   : > { %v4286_v16 = vadd.f32 %v4250_v44, %v10302_v0  ;;  %v4990_v31 = vmul.f32 %v4981_v25, %v9444_v21  ;;  %v10303_v39 = vmov %v10295_v22  ;;  %v9662_v26 = vadd.f32 %v4890_v48, %v4779_v24  ;;  %v10305_v22 = vld [vmem:[#allocation67_spill] sm:$0xff]  ;;  %v10307_v44 = vld [vmem:[#allocation53_spill] sm:$0xff] }
0x12fa   : > { %v4939_v47 = vsub.f32 0.0, %v9626_v18  ;;  %v4285_v11 = vadd.f32 %v4248_v63, %v4087_v34  ;;  %v4892_v9 = vsel %vm4216_vm8, %v10303_v39, %v4891_v58  ;;  %v4917_v21 = vadd.f32 %v4866_v62, %v9424_v51 }
0x12fb   : > { %v9664_v38 = vadd.f32 %v4892_v9, %v4780_v2  ;;  %v4352_v61 = vadd.f32 %v10305_v22, %v4286_v16  ;;  %v4979_v28 = vmul.f32 %v6813_v50, %v9488_v6  ;;  %v4987_v15 = vmul.f32 %v4978_v30, %v9472_v3  ;;  %v6817_v43 = vpop.eup %6816 }
0x12fc   : > { %v4954_v41 = vmul.f32 1.442695, %v4939_v47  ;;  %v9667_v14 = vadd.f32 %v10304_v40, %v4285_v11  ;;  %v4571_v24 = vrot.slane %v10306_v23, 2  ;;  %v4980_v52 = vmul.f32 %v6815_v42, %v9490_v36 }
0x12fd   : > { %v4940_v2 = vsub.f32 0.0, %v9664_v38  ;;  %v4988_v54 = vmul.f32 %v4979_v28, %v4917_v21  ;;  %v4460_v34 = vadd.f32 %v4423_v46, %v4352_v61  ;;  %v4638_v63 = vmul.f32 %v10117_v12, %v4612_v45 }
0x12fe   : > { %6818 = vpow2.f32 %v4954_v41  ;;  %v4989_v51 = vmul.f32 %v4980_v52, %v9481_v49  ;;  %v4982_v6 = vmul.f32 %v6817_v43, %v9502_v55  ;;  %v4572_v3 = vsel %vm4216_vm8, %v4567_v1, %v4571_v24  ;;  %v4475_v52 = vld [vmem:[#allocation2 + $0xa0] sm:$0x1] }
0x12ff   : > { %v4956_v62 = vmul.f32 1.442695, %v4940_v2  ;;  %v5012_v36 = vpack.c.bf16 %v4988_v54, %v4987_v15  ;;  %v4608_v25 = vadd.f32 %v4572_v3, %v4460_v34  ;;  %v4656_v29 = vmul.f32 %v4638_v63, %v10307_v44 }
0x1300   : > { %v5013_v48 = vpack.c.bf16 %v4990_v31, %v4989_v51  ;;  %v4991_v33 = vmul.f32 %v4982_v6, %v9496_v13  ;;  %v4826_v27 = vmul.f32 %v10133_v37, %v4800_v7  ;;  %v10308_v31 = vld [vmem:[#allocation54_spill] sm:$0xff]  ;;  %v4501_v43 = vmul.f32 %v10270_v32, %v4475_v52  ;;  %v4611_v51 = vld [vmem:[#allocation2 + $0xa0] sm:$0x7f] }
0x1301   : > { %6820 = vpow2.f32 %v4956_v62  ;;  %v5019_v46 = vshrl.u32 %v5012_v36, 16  ;;  %v5022_v12 = vshll.u32 %v5012_v36, 16  ;;  %v4674_v47 = vadd.f32 %v4656_v29, %v4608_v25  ;;  %v4799_v36 = vld [vmem:[#allocation2 + $0xb0] sm:$0x1] }
0x1302   : > { %v5027_v49 = vshrl.u32 %v5013_v48, 16  ;;  %v5030_v11 = vshll.u32 %v5013_v48, 16  ;;  %v5014_v55 = vpack.c.bf16 %v9512_v60, %v4991_v33  ;;  %v4844_v50 = vmul.f32 %v4826_v27, %v10308_v31 }
0x1303   : > { %v5021_v0 = vrot.slane %v5019_v46, 3  ;;  %v5024_v1 = vrot.slane %v5022_v12, 4  ;;  %v4782_v13 = vadd.f32 %v4745_v56, %v4674_v47  ;;  %v4519_v35 = vmul.f32 %v4501_v43, %v10308_v31 }
0x1304   : > { %v5029_v16 = vrot.slane %v5027_v49, 3  ;;  %v5032_v30 = vrot.slane %v5030_v11, 4  ;;  %v5036_v39 = vshrl.u32 %v5014_v55, 16  ;;  %v5039_v9 = vshll.u32 %v5014_v55, 16 }
0x1305   : > { %v5025_v40 = vor.u32 %v5024_v1, %v5021_v0  ;;  %v4895_v42 = vrot.slane %v4844_v50, 2  ;;  %v10309_v62 = vrot.slane %v9532_v59, 1  ;;  %v4569_v25 = vrot.slane %v4519_v35, 2 }
0x1306   : > { %v5033_v22 = vor.u32 %v5032_v30, %v5029_v16  ;;  %v5038_v61 = vrot.slane %v5036_v39, 3  ;;  %v5041_v45 = vrot.slane %v5039_v9, 4  ;;  %v4637_v7 = vmul.f32 %v8299_v5, %v4611_v51 }
0x1307   : > { %v4896_v28 = vsel %vm4216_vm8, %v4891_v58, %v4895_v42  ;;  %v4459_v3 = vadd.f32 %v10309_v62, %v9667_v14  ;;  %v10317_v62 = vld [vmem:[#allocation21_spill] sm:$0xff] }
0x1308   : > { %v6819_v41 = vpop.eup %6818  ;;  %v5034_v37 = vsel %vm5017_vm9, %v5025_v40, %v5033_v22  ;;  %v5042_v21 = vor.u32 %v5041_v45, %v5038_v61  ;;  %v4932_v15 = vadd.f32 %v4896_v28, %v4782_v13  ;;  %v4655_v14 = vmul.f32 %v4637_v7, %v10307_v44  ;;  %v10313_v28 = vld [vmem:[#allocation16_spill] sm:$0xff] }
0x1309   : > { %v4966_v60 = vadd.f32 1.0, %v6819_v41  ;;  %6096 = vmatprep.mubr.bf16.mxu1 %v5034_v37  ;;  %v10311_v41 = vld [vmem:[#allocation34_spill] sm:$0xff] }
0x130a   : > { %v5043_v56 = vsel %vm5017_vm9, %v5033_v22, %v5042_v21  ;;  %v4941_v24 = vsub.f32 0.0, %v4932_v15 }
0x130b   : > { %6822 = vrcp.f32 %v4966_v60  ;;  %v6821_v57 = vpop.eup %6820  ;;  %6097 = vmatmul.mubr.bf16.vlgmr.msra.gmra.mrb[68].mxu1 %v5043_v56  ;;  %v10312_v60 = vld [vmem:[#allocation15_spill] sm:$0xff] }
0x130c   : > { %v4967_v23 = vadd.f32 1.0, %v6821_v57  ;;  %v4958_v2 = vmul.f32 1.442695, %v4941_v24  ;;  %v10315_v24 = vld [vmem:[#allocation17_spill] sm:$0xff] }
0x130e   : > { %6824 = vrcp.f32 %v4967_v23 }
0x130f   : > { %6826 = vpow2.f32 %v4958_v2 }
0x1315   : > { %v6823_v54 = vpop.eup %6822 }
0x1316   : > { %v4984_v34 = vmul.f32 %v6823_v54, %v9626_v18  ;;  %v10310_v18 = vrot.slane %v9549_v53, 2 }
0x1318   : > { %v4993_v58 = vmul.f32 %v4984_v34, %v9623_v8  ;;  %v6825_v63 = vpop.eup %6824  ;;  %v4570_v48 = vsel %vm4216_vm8, %v10310_v18, %v4569_v25  ;;  %v4825_v8 = vmul.f32 %v10132_v17, %v4799_v36  ;;  %v10318_v25 = vld [vmem:[#allocation20_spill] sm:$0xff] }
0x1319   : > { %v4985_v6 = vmul.f32 %v6825_v63, %v9664_v38  ;;  %v6827_v29 = vpop.eup %6826  ;;  %v4607_v38 = vadd.f32 %v4570_v48, %v4459_v3 }
0x131a   : > { %v4968_v33 = vadd.f32 1.0, %v6827_v29  ;;  %v4843_v47 = vmul.f32 %v4825_v8, %v10308_v31 }
0x131b   : > { %v4994_v32 = vmul.f32 %v4985_v6, %v9662_v26  ;;  %v4673_v11 = vadd.f32 %v4655_v14, %v4607_v38 }
0x131c   : > { %6828 = vrcp.f32 %v4968_v33  ;;  %v4893_v55 = vrot.slane %v4843_v47, 2 }
0x131d   : > { %v5015_v46 = vpack.c.bf16 %v4994_v32, %v4993_v58  ;;  %v4781_v17 = vadd.f32 %v4743_v19, %v4673_v11  ;;  %v6843_v19 = vld [vmem:[%s7192_s21] sm:$0xff]  ;;  %v10319_v32 = vld [vmem:[#allocation22_spill] sm:$0xff] }
0x131e   : > { %v4894_v0 = vsel %vm4216_vm8, %v4889_v4, %v4893_v55  ;;  %v5182_v20 = vrot.slane %v6843_v19, %v10311_v41  ;;  %v10316_v58 = vld [vmem:[#allocation19_spill] sm:$0xff] }
0x131f   : > { %v5045_v12 = vshrl.u32 %v5015_v46, 16  ;;  %v5048_v59 = vshll.u32 %v5015_v46, 16  ;;  %v4931_v44 = vadd.f32 %v4894_v0, %v4781_v17 }
0x1321   : > { %v5047_v49 = vrot.slane %v5045_v12, 3  ;;  %v5050_v26 = vrot.slane %v5048_v59, 4 }
0x1323   : > { %v5051_v5 = vor.u32 %v5050_v26, %v5047_v49 }
0x1325   : > { %v5052_v53 = vsel %vm5017_vm9, %v5042_v21, %v5051_v5 }
0x1326   : > { %6100 = vmatprep.mubr.bf16.mxu1 %v5052_v53  ;;  %v6829_v27 = vpop.eup %6828 }
0x1327   : > { %v4986_v1 = vmul.f32 %v6829_v27, %v4932_v15  ;;  %v10314_v15 = vld [vmem:[#allocation18_spill] sm:$0xff] }
0x1329   : > { %v4995_v16 = vmul.f32 %v4986_v1, %v4931_v44 }
0x132b   : > { %v5016_v30 = vpack.c.bf16 %v4995_v16, %v4995_v16 }
0x132d   : > { %v5054_v39 = vshrl.u32 %v5016_v30, 16  ;;  %v5057_v9 = vshll.u32 %v5016_v30, 16 }
0x132f   : > { %v5056_v13 = vrot.slane %v5054_v39, 3  ;;  %v5059_v31 = vrot.slane %v5057_v9, 4 }
0x1331   : > { %v5060_v50 = vor.u32 %v5059_v31, %v5056_v13 }
0x1333   : > { %v5061_v10 = vsel %vm5017_vm9, %v5051_v5, %v5060_v50 }
0x1334   : > { %6101 = vmatmul.mubr.bf16.gmra.mrb[72].mxu1 %v5061_v10 }
0x13de   : > { %v6098_v4 = vpop.f32.mrb[68].mxu1 }
0x13df   : > { %v5185_v40 = vmul.f32 %v6098_v4, %v5182_v20  ;;  %v5148_v22 = vpop.f32.mrb[69].mxu1 }
0x13e0   : > { %v5183_v61 = vmul.f32 %v5182_v20, %v5148_v22  ;;  %v6099_v45 = vpop.f32.mrb[70].mxu1 }
0x13e1   : > { %v5193_v42 = vadd.f32 %v5185_v40, %v10312_v60  ;;  %v5186_v37 = vmul.f32 %v6099_v45, %v5182_v20  ;;  %v5151_v21 = vpop.f32.mrb[71].mxu1 }
0x13e2   : > { %v5191_v57 = vadd.f32 %v5183_v61, %v10313_v28  ;;  %v5184_v56 = vmul.f32 %v5182_v20, %v5151_v21 }
0x13e3   : > { %5201 = vst.msk [vmem:[%s7095_s16 + $0x10] sm:$0xff] %vm439_vm1, %v5193_v42  ;;  %v5194_v23 = vadd.f32 %v5186_v37, %v10314_v15 }
0x13e4   : > { %5199 = vst.msk [vmem:[%s7095_s16] sm:$0xff] %vm439_vm1, %v5191_v57  ;;  %v5192_v52 = vadd.f32 %v5184_v56, %v10315_v24 }
0x13e5   : > { %5202 = vst.msk [vmem:[%s7095_s16 + $0x18] sm:$0xff] %vm439_vm1, %v5194_v23 }
0x13e6   : > { %5200 = vst.msk [vmem:[%s7095_s16 + $0x8] sm:$0xff] %vm439_vm1, %v5192_v52 }
0x1407   : > { %v6102_v2 = vpop.f32.mrb[72].mxu1 }
0x1408   : > { %v5189_v43 = vmul.f32 %v6102_v2, %v5182_v20  ;;  %v5164_v54 = vpop.f32.mrb[73].mxu1 }
0x1409   : > { %v5187_v34 = vmul.f32 %v5182_v20, %v5164_v54  ;;  %v6103_v35 = vpop.f32.mrb[74].mxu1 }
0x140a   : > { %v5197_v63 = vadd.f32 %v5189_v43, %v10316_v58  ;;  %v5190_v51 = vmul.f32 %v6103_v35, %v5182_v20  ;;  %v5167_v6 = vpop.f32.mrb[75].mxu1 }
0x140b   : > { %v5195_v3 = vadd.f32 %v5187_v34, %v10317_v62  ;;  %v5188_v36 = vmul.f32 %v5182_v20, %v5167_v6 }
0x140c   : > { %5205 = vst.msk [vmem:[%s7095_s16 + $0x30] sm:$0xff] %vm439_vm1, %v5197_v63  ;;  %v5198_v29 = vadd.f32 %v5190_v51, %v10318_v25 }
0x140d   : > { %5203 = vst.msk [vmem:[%s7095_s16 + $0x20] sm:$0xff] %vm439_vm1, %v5195_v3  ;;  %v5196_v7 = vadd.f32 %v5188_v36, %v10319_v32 }
0x140e   : > { %5206 = vst.msk [vmem:[%s7095_s16 + $0x38] sm:$0xff] %vm439_vm1, %v5198_v29 }
0x140f   : > { %5204 = vst.msk [vmem:[%s7095_s16 + $0x28] sm:$0xff] %vm439_vm1, %v5196_v7 }
0x1410   : > { %6857 = shalt.err (!%p6854_p8)
}
0x1411   : > { %s6858_s16 = scalar_lea.hbm %s9743_s24, 1024  ;;  %s6862_s18 = scalar_lea.hbm %s9816_s8, 2048 }
0x1412   : > { %p6859_p10 = scmp.ne.s32.totalorder %s9743_s24, %s6858_s16  ;;  %p6863_p13 = scmp.lt.u32.totalorder %s9743_s24, %s9816_s8 }
0x1413   : > { %p6864_p0 = scmp.lt.u32.totalorder %s6862_s18, %s6858_s16  ;;  %p6866_p2 = scmp.lt.u32.totalorder %s6858_s16, %s9743_s24 }
0x1414   : > { %p6860_p11 = pnand %p6859_p10, %p7043_p3 }
0x1415   : > { %p6865_p1 = por %p6864_p0, %p6863_p13 }
0x1416   : > { %p6861_p12 = pneg %p6860_p11 }
0x1417   : > { %p6867_p4 = por %p6866_p2, %p6865_p1 }
0x1419   : > { %p6868_p5 = pnand %p6867_p4, %p6861_p12 }
0x141b   : > { %6871 = shalt.err (!%p6868_p5)
}
0x141c   : > { %s6947_s25 = smov 128   ;;  %s6948_s15 = smov 8  }
0x141d   : > { %6314 = dma.vmem_to_hbm [thread:$0]  (%p7043_p3), %s9745_s22, 1024, %s9743_s24, %s9756_s12, %s6947_s25, %s6947_s25, %s6948_s15  }
0x141e PF: > { %s10321_s26 = sld [smem:[#allocation10_spill]]  ;;  %s10322_s19 = sld [smem:[#allocation6_spill]] }
0x1424   : > { %p6320_p6 = scmp.ge.s32.totalorder %s10321_s26, 2  ;;  %s5236_s21 = sand.u32 1, %s10322_s19  }
0x1425   : > { %s5237_s20 = scalar_lea.sflag [#allocation4], %s5236_s21 }
0x1426   : > { %p6317_p7 = pnand %p6320_p6, %p7053_p9 }
0x1428   : > { %6905 = dma.done.wait (!%p6317_p7), %s5237_s20, 1024  }
0x1429   : > { %6907 = vsyncadd (!%p6317_p7), %s5237_s20, 4294966272  ;;  %s21_s12 = sadd.s32 1, %s10321_s26   ;;  %s10324_s9 = sld [smem:[#allocation7_spill]] }
0x142a   : > { %p18_p8 = scmp.ge.s32.totalorder %s21_s12, 6   ;;  %s10325_s29 = sld [smem:[#allocation14_spill]] }
0x142b   : > { %s10326_s30 = sld [smem:[#allocation8_spill]]  ;;  %s10327_s17 = sld [smem:[#allocation9_spill]] }
0x142c   : > { %s10328_s10 = sld [smem:[#allocation11_spill]]  ;;  %s10329_s11 = sld [smem:[#allocation12_spill]] }
0x142d   : > { %s10330_s27 = smov %s6914_s28  ;;  %20 = sbr.rel (!%p18_p8) target bundleno = 7 (0x7), region = 107 }
0x142f   : > { %s10331_s28 = smov %s10324_s9 }
0x1431   : > { %s10332_s9 = smov %s10327_s17 }
0x1434   :  { %5242 = vsyncpa [#allocation4], 1 }
0x1435   :  { %5244 = vsyncpa [#allocation4 + $0x1], 1 }

</bundles_post_ra>
